<compile_context>
chip_gen: v7x
topology: tpu7x:2x2x1
jax: 0.10.0
libtpu: 0.0.40
codegen_flags: <defaults>
</compile_context>

<pallas_src>
import functools
import math

import jax
import jax.numpy as jnp
from jax.experimental import pallas as pl
from jax.experimental.pallas import tpu as pltpu


# ----------------------------------------------------------------------------
# Fused kernel: num_layers x post-LN TransformerEncoderLayer + final Linear
# ----------------------------------------------------------------------------
def gpt2_stack_kernel(x_ref,
                      wq_ref, bq_ref, wk_ref, bk_ref, wv_ref, bv_ref,
                      wo_ref, bo_ref, ln1w_ref, ln1b_ref,
                      w1_ref, b1_ref, w2_ref, b2_ref,
                      ln2w_ref, ln2b_ref, fcw_ref, fcb_ref, hmask_ref,
                      o_ref, *, nhead, num_layers, seq_tile, attn_len, eps=1e-5):
    """x_ref: (rows, E) activation tile, rows ordered (seq position n, attn row l).
    Per-layer weights carry a leading layer axis and are pre-transposed so every
    matmul is `x @ w`.  o_ref: (rows, V) logits tile."""
    rows, E = x_ref.shape
    N, L = seq_tile, attn_len

    xf = x_ref[...]                  # (rows, E), f32
    hmask = hmask_ref[...]           # (nhead, E) one-hot head-column masks, f32

    # Static unroll over layers (num_layers is small here).
    # TODO(synk): for large num_layers switch to a lax.fori_loop / layer grid axis
    # so vreg live ranges stay bounded and per-layer weights can be pipelined.
    for layer in range(num_layers):
        xb = xf.astype(jnp.bfloat16)
        # ---- Q/K/V projections (bf16 MXU, f32 accumulate); 1/sqrt(dh) folded in Wq ----
        q = jnp.dot(xb, wq_ref[layer], preferred_element_type=jnp.float32) + bq_ref[layer]
        k = jnp.dot(xb, wk_ref[layer], preferred_element_type=jnp.float32) + bk_ref[layer]
        v = jnp.dot(xb, wv_ref[layer], preferred_element_type=jnp.float32) + bv_ref[layer]
        q3 = q.reshape(N, L, E)      # leading-dim split only (layout preserving)
        k3 = k.reshape(N, L, E)
        v3 = v.reshape(N, L, E)

        # ---- per-head attention via one-hot column masks: full-E-width contractions,
        #      no dh-wide lane slices, no concatenates ----
        ctx = None
        for h in range(nhead):
            hm = hmask[h:h + 1]                                   # (1, E)
            s = jnp.einsum('nle,nme->nlm', q3, k3 * hm,
                           preferred_element_type=jnp.float32)    # (N, L, L)
            s = s - jnp.max(s, axis=-1, keepdims=True)
            probs = jnp.exp(s)
            probs = probs * pl.reciprocal(
                jnp.sum(probs, axis=-1, keepdims=True), approx=True)
            # v masked too -> contribution lands only in head-h's output columns.
            c = jnp.einsum('nlm,nme->nle', probs, v3 * hm,
                           preferred_element_type=jnp.float32)    # (N, L, E)
            ctx = c if ctx is None else ctx + c
        # TODO(synk): lane-packed softmax layout (keys on sublanes, 128 query/head
        # pairs on lanes) would cut EUP/XLU op count further at larger shapes.

        attn = jnp.dot(ctx.reshape(rows, E).astype(jnp.bfloat16), wo_ref[layer],
                       preferred_element_type=jnp.float32) + bo_ref[layer]

        # ---- residual + LayerNorm1 (post-LN), f32 ----
        y = xf + attn
        mu = jnp.mean(y, axis=-1, keepdims=True)
        var = jnp.mean(jnp.square(y - mu), axis=-1, keepdims=True)
        y = (y - mu) * jax.lax.rsqrt(var + eps) * ln1w_ref[layer] + ln1b_ref[layer]

        # ---- feed-forward (ReLU), bf16 MXU / f32 accumulate ----
        h1 = jnp.dot(y.astype(jnp.bfloat16), w1_ref[layer],
                     preferred_element_type=jnp.float32) + b1_ref[layer]
        h1 = jnp.maximum(h1, 0.0)
        h2 = jnp.dot(h1.astype(jnp.bfloat16), w2_ref[layer],
                     preferred_element_type=jnp.float32) + b2_ref[layer]

        # ---- residual + LayerNorm2 ----
        z = y + h2
        mu2 = jnp.mean(z, axis=-1, keepdims=True)
        var2 = jnp.mean(jnp.square(z - mu2), axis=-1, keepdims=True)
        xf = (z - mu2) * jax.lax.rsqrt(var2 + eps) * ln2w_ref[layer] + ln2b_ref[layer]

    # ---- final vocab projection: flat, lane-dense (rows, V) store ----
    o_ref[...] = jnp.dot(xf.astype(jnp.bfloat16), fcw_ref[...],
                         preferred_element_type=jnp.float32) + fcb_ref[...]


# ----------------------------------------------------------------------------
# Wrapper
# ----------------------------------------------------------------------------
_WEIGHT_NAMES = ('wq', 'bq', 'wk', 'bk', 'wv', 'bv', 'wo', 'bo',
                 'ln1_w', 'ln1_b', 'w1', 'b1', 'w2', 'b2', 'ln2_w', 'ln2_b',
                 'fc_w', 'fc_b', 'head_mask')


def _const_index_map(ndim):
    zeros = (0,) * ndim
    return lambda i: zeros


def gpt2_stack(x_flat, prepared, nhead, seq_positions, attn_len):
    """x_flat: (N*L, E) activations (rows ordered (seq pos, attn row)) -> (N*L, V)."""
    rows, E = x_flat.shape
    num_layers = int(prepared['wq'].shape[0])
    dim_ff = int(prepared['w1'].shape[-1])
    vocab = int(prepared['fc_w'].shape[-1])

    # Grid over the independent seq-position axis: shards across the 2 TensorCores
    # on v7x ("parallel") and enables I/O pipelining as shapes grow; weights keep a
    # constant block index so they stay VMEM-resident across grid steps and layers.
    grid_n = 2 if (seq_positions % 2 == 0
                   and ((seq_positions // 2) * attn_len) % 8 == 0) else 1
    seq_tile = seq_positions // grid_n
    rows_tile = seq_tile * attn_len

    kernel = functools.partial(gpt2_stack_kernel, nhead=nhead, num_layers=num_layers,
                               seq_tile=seq_tile, attn_len=attn_len)

    weight_args = [prepared[k] for k in _WEIGHT_NAMES]
    in_specs = ([pl.BlockSpec((rows_tile, E), lambda i: (i, 0))]
                + [pl.BlockSpec(w.shape, _const_index_map(w.ndim)) for w in weight_args])
    out_specs = pl.BlockSpec((rows_tile, vocab), lambda i: (i, 0))

    # Size the scoped-VMEM request from the actual footprint (stacked weights are
    # ~1.2 MB at these shapes); leave headroom for double-buffering + intermediates.
    io_bytes = (x_flat.size * x_flat.dtype.itemsize
                + sum(w.size * w.dtype.itemsize for w in weight_args)
                + rows * vocab * 4)
    vmem_limit = int(min(48 * 2**20, max(16 * 2**20, 6 * io_bytes)))
    # TODO(synk): at real GPT-2 sizes, tile the final fc over vocab and re-derive
    # row/weight tiles per-generation (v7x has 64 MiB VMEM, not 128 MiB).

    flops = num_layers * (2 * rows * E * (3 * E)                                # q,k,v proj
                          + 2 * 2 * seq_positions * nhead * attn_len ** 2 * E   # scores + ctx
                          + 2 * rows * E * E                                    # out proj
                          + 2 * 2 * rows * E * dim_ff)                          # FFN
    flops += 2 * rows * E * vocab                                               # final fc
    transcendentals = num_layers * seq_positions * nhead * attn_len * attn_len  # exp

    return pl.pallas_call(
        kernel,
        out_shape=jax.ShapeDtypeStruct((rows, vocab), jnp.float32),
        grid=(grid_n,),
        in_specs=in_specs,
        out_specs=out_specs,
        compiler_params=pltpu.CompilerParams(
            dimension_semantics=("parallel",),
            vmem_limit_bytes=vmem_limit),
        cost_estimate=pl.CostEstimate(
            flops=int(flops),
            transcendentals=int(transcendentals),
            bytes_accessed=int(io_bytes)),
    )(x_flat, *weight_args)


# ----------------------------------------------------------------------------
# Parameters (PyTorch-style layout) + one-time host-side prep
# ----------------------------------------------------------------------------
def init_params(key, vocab_size, d_model, num_layers):
    # NOTE: the reference module never forwards `dim_feedforward` to
    # TransformerEncoderLayer, so the FFN width is PyTorch's default 2048.
    dim_ff = 2048
    keys = jax.random.split(key, 4 + num_layers)
    p = {
        'embedding': jax.random.normal(keys[0], (vocab_size, d_model), jnp.float32) * 0.02,
        'pos_embedding': jax.random.normal(keys[1], (5000, d_model), jnp.float32) * 0.02,
        'fc_w': jax.random.normal(keys[2], (vocab_size, d_model), jnp.float32) * 0.02,
        'fc_b': jnp.zeros((vocab_size,), jnp.float32),
        'layers': [],
    }
    for i in range(num_layers):
        ks = jax.random.split(keys[4 + i], 4)
        p['layers'].append({
            'wqkv': jax.random.normal(ks[0], (3 * d_model, d_model), jnp.float32) * 0.02,
            'bqkv': jnp.zeros((3 * d_model,), jnp.float32),
            'wo': jax.random.normal(ks[1], (d_model, d_model), jnp.float32) * 0.02,
            'bo': jnp.zeros((d_model,), jnp.float32),
            'ln1_w': jnp.ones((d_model,), jnp.float32),
            'ln1_b': jnp.zeros((d_model,), jnp.float32),
            'w1': jax.random.normal(ks[2], (dim_ff, d_model), jnp.float32) * 0.02,
            'b1': jnp.zeros((dim_ff,), jnp.float32),
            'w2': jax.random.normal(ks[3], (d_model, dim_ff), jnp.float32) * 0.02,
            'b2': jnp.zeros((d_model,), jnp.float32),
            'ln2_w': jnp.ones((d_model,), jnp.float32),
            'ln2_b': jnp.zeros((d_model,), jnp.float32),
        })
    return p


def prepare_params(p, d_model, nhead):
    """One-time host prep: split packed QKV, stack layers on a leading axis,
    pre-transpose every matmul weight (kernel always does `x @ w`), fold the
    1/sqrt(dh) attention scale into Wq/bq, cast matmul weights to bf16 (biases /
    LayerNorm params stay f32), and build one-hot head-column masks."""
    E = d_model
    dh = d_model // nhead
    scale = 1.0 / math.sqrt(dh)

    def stack(fn):
        return jnp.stack([fn(lp) for lp in p['layers']])

    return {
        'wq': stack(lambda lp: (lp['wqkv'][0:E] * scale).T).astype(jnp.bfloat16),
        'bq': stack(lambda lp: (lp['bqkv'][0:E] * scale).reshape(1, -1)),
        'wk': stack(lambda lp: lp['wqkv'][E:2 * E].T).astype(jnp.bfloat16),
        'bk': stack(lambda lp: lp['bqkv'][E:2 * E].reshape(1, -1)),
        'wv': stack(lambda lp: lp['wqkv'][2 * E:3 * E].T).astype(jnp.bfloat16),
        'bv': stack(lambda lp: lp['bqkv'][2 * E:3 * E].reshape(1, -1)),
        'wo': stack(lambda lp: lp['wo'].T).astype(jnp.bfloat16),
        'bo': stack(lambda lp: lp['bo'].reshape(1, -1)),
        'ln1_w': stack(lambda lp: lp['ln1_w'].reshape(1, -1)),
        'ln1_b': stack(lambda lp: lp['ln1_b'].reshape(1, -1)),
        'w1': stack(lambda lp: lp['w1'].T).astype(jnp.bfloat16),
        'b1': stack(lambda lp: lp['b1'].reshape(1, -1)),
        'w2': stack(lambda lp: lp['w2'].T).astype(jnp.bfloat16),
        'b2': stack(lambda lp: lp['b2'].reshape(1, -1)),
        'ln2_w': stack(lambda lp: lp['ln2_w'].reshape(1, -1)),
        'ln2_b': stack(lambda lp: lp['ln2_b'].reshape(1, -1)),
        'fc_w': p['fc_w'].T.astype(jnp.bfloat16),
        'fc_b': p['fc_b'].reshape(1, -1),
        # head h owns embedding columns [h*dh, (h+1)*dh)
        'head_mask': (jnp.arange(d_model)[None, :] // dh
                      == jnp.arange(nhead)[:, None]).astype(jnp.float32),
    }


# ----------------------------------------------------------------------------
# Forward pass (embedding gather in plain JAX, everything else in the kernel)
# ----------------------------------------------------------------------------
def transformer_gpt2_forward(src, params, prepared, nhead):
    """src: (batch, seq) int32 -> (batch, seq, vocab) f32 logits."""
    batch, seq = src.shape
    positions = jnp.arange(seq, dtype=jnp.int32)
    # batch_first=False semantics: (batch, seq, E) is read as (L=batch, N=seq, E).
    # Build activations directly in (N, L, E) layout by transposing the tiny index
    # array before the gather, then flatten to (rows, E) for lane-dense kernel I/O.
    x_nle = (params['embedding'][src.T]
             + params['pos_embedding'][positions][:, None, :])          # (seq, batch, E)
    N, L, E = x_nle.shape
    logits_flat = gpt2_stack(x_nle.reshape(N * L, E), prepared, nhead,
                             seq_positions=N, attn_len=L)                # (N*L, V)
    return jnp.transpose(logits_flat.reshape(N, L, -1), (1, 0, 2))       # (batch, seq, V)


# ----------------------------------------------------------------------------
if __name__ == "__main__":
    vocab_size = 128
    d_model = 64
    nhead = 4
    num_layers = 2
    batch, seq = 8, 4

    key = jax.random.PRNGKey(0)
    pkey, dkey = jax.random.split(key)
    params = init_params(pkey, vocab_size, d_model, num_layers)
    prepared = prepare_params(params, d_model, nhead)
    src = jax.random.randint(dkey, (batch, seq), 0, vocab_size, dtype=jnp.int32)

    out = transformer_gpt2_forward(src, params, prepared, nhead)
    out = jax.block_until_ready(out)
    assert out.shape == (batch, seq, vocab_size), out.shape
    assert jnp.all(jnp.isfinite(out))
    print("KERNEL_OK")
</pallas_src>

<mosaic_0001>
module attributes {stable_mosaic.version = 11 : i64} {
  func.func @gpt2_stack_kernel(%arg0: i32, %arg1: memref<16x64xf32, #tpu.memory_space<vmem>>, %arg2: memref<2x64x64xbf16, #tpu.memory_space<vmem>>, %arg3: memref<2x1x64xf32, #tpu.memory_space<vmem>>, %arg4: memref<2x64x64xbf16, #tpu.memory_space<vmem>>, %arg5: memref<2x1x64xf32, #tpu.memory_space<vmem>>, %arg6: memref<2x64x64xbf16, #tpu.memory_space<vmem>>, %arg7: memref<2x1x64xf32, #tpu.memory_space<vmem>>, %arg8: memref<2x64x64xbf16, #tpu.memory_space<vmem>>, %arg9: memref<2x1x64xf32, #tpu.memory_space<vmem>>, %arg10: memref<2x1x64xf32, #tpu.memory_space<vmem>>, %arg11: memref<2x1x64xf32, #tpu.memory_space<vmem>>, %arg12: memref<2x64x2048xbf16, #tpu.memory_space<vmem>>, %arg13: memref<2x1x2048xf32, #tpu.memory_space<vmem>>, %arg14: memref<2x2048x64xbf16, #tpu.memory_space<vmem>>, %arg15: memref<2x1x64xf32, #tpu.memory_space<vmem>>, %arg16: memref<2x1x64xf32, #tpu.memory_space<vmem>>, %arg17: memref<2x1x64xf32, #tpu.memory_space<vmem>>, %arg18: memref<64x128xbf16, #tpu.memory_space<vmem>>, %arg19: memref<1x128xf32, #tpu.memory_space<vmem>>, %arg20: memref<4x64xf32, #tpu.memory_space<vmem>>, %arg21: memref<16x128xf32, #tpu.memory_space<vmem>>) attributes {dimension_semantics = [#tpu.dimension_semantics<parallel>], iteration_bounds = array<i64: 2>, scalar_prefetch = 0 : i64, scratch_operands = 0 : i64, tpu.core_type = #tpu.core_type<tc>, window_params = [{transform_indices = @transform_0, window_bounds = array<i64: 16, 64>}, {pipeline_mode = #tpu.pipeline_mode<synchronous>, transform_indices = @transform_1, window_bounds = array<i64: 2, 64, 64>}, {pipeline_mode = #tpu.pipeline_mode<synchronous>, transform_indices = @transform_2, window_bounds = array<i64: 2, 1, 64>}, {pipeline_mode = #tpu.pipeline_mode<synchronous>, transform_indices = @transform_3, window_bounds = array<i64: 2, 64, 64>}, {pipeline_mode = #tpu.pipeline_mode<synchronous>, transform_indices = @transform_4, window_bounds = array<i64: 2, 1, 64>}, {pipeline_mode = #tpu.pipeline_mode<synchronous>, transform_indices = @transform_5, window_bounds = array<i64: 2, 64, 64>}, {pipeline_mode = #tpu.pipeline_mode<synchronous>, transform_indices = @transform_6, window_bounds = array<i64: 2, 1, 64>}, {pipeline_mode = #tpu.pipeline_mode<synchronous>, transform_indices = @transform_7, window_bounds = array<i64: 2, 64, 64>}, {pipeline_mode = #tpu.pipeline_mode<synchronous>, transform_indices = @transform_8, window_bounds = array<i64: 2, 1, 64>}, {pipeline_mode = #tpu.pipeline_mode<synchronous>, transform_indices = @transform_9, window_bounds = array<i64: 2, 1, 64>}, {pipeline_mode = #tpu.pipeline_mode<synchronous>, transform_indices = @transform_10, window_bounds = array<i64: 2, 1, 64>}, {pipeline_mode = #tpu.pipeline_mode<synchronous>, transform_indices = @transform_11, window_bounds = array<i64: 2, 64, 2048>}, {pipeline_mode = #tpu.pipeline_mode<synchronous>, transform_indices = @transform_12, window_bounds = array<i64: 2, 1, 2048>}, {pipeline_mode = #tpu.pipeline_mode<synchronous>, transform_indices = @transform_13, window_bounds = array<i64: 2, 2048, 64>}, {pipeline_mode = #tpu.pipeline_mode<synchronous>, transform_indices = @transform_14, window_bounds = array<i64: 2, 1, 64>}, {pipeline_mode = #tpu.pipeline_mode<synchronous>, transform_indices = @transform_15, window_bounds = array<i64: 2, 1, 64>}, {pipeline_mode = #tpu.pipeline_mode<synchronous>, transform_indices = @transform_16, window_bounds = array<i64: 2, 1, 64>}, {pipeline_mode = #tpu.pipeline_mode<synchronous>, transform_indices = @transform_17, window_bounds = array<i64: 64, 128>}, {pipeline_mode = #tpu.pipeline_mode<synchronous>, transform_indices = @transform_18, window_bounds = array<i64: 1, 128>}, {pipeline_mode = #tpu.pipeline_mode<synchronous>, transform_indices = @transform_19, window_bounds = array<i64: 4, 64>}, {transform_indices = @transform_20, window_bounds = array<i64: 16, 128>}]} {
    %c0 = arith.constant 0 : index
    %c0_0 = arith.constant 0 : index
    %0 = vector.load %arg1[%c0, %c0_0] : memref<16x64xf32, #tpu.memory_space<vmem>>, vector<16x64xf32>
    %c0_1 = arith.constant 0 : index
    %c0_2 = arith.constant 0 : index
    %1 = vector.load %arg20[%c0_1, %c0_2] : memref<4x64xf32, #tpu.memory_space<vmem>>, vector<4x64xf32>
    %2 = arith.truncf %0 : vector<16x64xf32> to vector<16x64xbf16>
    %c0_3 = arith.constant 0 : index
    %c0_4 = arith.constant 0 : index
    %c0_5 = arith.constant 0 : index
    %3 = vector.load %arg2[%c0_3, %c0_4, %c0_5] : memref<2x64x64xbf16, #tpu.memory_space<vmem>>, vector<1x64x64xbf16>
    %4 = vector.shape_cast %3 : vector<1x64x64xbf16> to vector<64x64xbf16>
    %cst = arith.constant dense<0.000000e+00> : vector<16x64xf32>
    %5 = tpu.matmul %2, %4, %cst {dimension_numbers = #tpu.dot_dimension_numbers<[1], [0], [0], [1], [0, 0, 1, 1], [], []>} : vector<16x64xbf16>, vector<64x64xbf16>, vector<16x64xf32> -> vector<16x64xf32>
    %c0_6 = arith.constant 0 : index
    %c0_7 = arith.constant 0 : index
    %c0_8 = arith.constant 0 : index
    %6 = vector.load %arg3[%c0_6, %c0_7, %c0_8] : memref<2x1x64xf32, #tpu.memory_space<vmem>>, vector<1x1x64xf32>
    %7 = vector.shape_cast %6 : vector<1x1x64xf32> to vector<1x64xf32>
    %8 = vector.broadcast %7 : vector<1x64xf32> to vector<16x64xf32>
    %9 = arith.addf %5, %8 : vector<16x64xf32>
    %c0_9 = arith.constant 0 : index
    %c0_10 = arith.constant 0 : index
    %c0_11 = arith.constant 0 : index
    %10 = vector.load %arg4[%c0_9, %c0_10, %c0_11] : memref<2x64x64xbf16, #tpu.memory_space<vmem>>, vector<1x64x64xbf16>
    %11 = vector.shape_cast %10 : vector<1x64x64xbf16> to vector<64x64xbf16>
    %cst_12 = arith.constant dense<0.000000e+00> : vector<16x64xf32>
    %12 = tpu.matmul %2, %11, %cst_12 {dimension_numbers = #tpu.dot_dimension_numbers<[1], [0], [0], [1], [0, 0, 1, 1], [], []>} : vector<16x64xbf16>, vector<64x64xbf16>, vector<16x64xf32> -> vector<16x64xf32>
    %c0_13 = arith.constant 0 : index
    %c0_14 = arith.constant 0 : index
    %c0_15 = arith.constant 0 : index
    %13 = vector.load %arg5[%c0_13, %c0_14, %c0_15] : memref<2x1x64xf32, #tpu.memory_space<vmem>>, vector<1x1x64xf32>
    %14 = vector.shape_cast %13 : vector<1x1x64xf32> to vector<1x64xf32>
    %15 = vector.broadcast %14 : vector<1x64xf32> to vector<16x64xf32>
    %16 = arith.addf %12, %15 : vector<16x64xf32>
    %c0_16 = arith.constant 0 : index
    %c0_17 = arith.constant 0 : index
    %c0_18 = arith.constant 0 : index
    %17 = vector.load %arg6[%c0_16, %c0_17, %c0_18] : memref<2x64x64xbf16, #tpu.memory_space<vmem>>, vector<1x64x64xbf16>
    %18 = vector.shape_cast %17 : vector<1x64x64xbf16> to vector<64x64xbf16>
    %cst_19 = arith.constant dense<0.000000e+00> : vector<16x64xf32>
    %19 = tpu.matmul %2, %18, %cst_19 {dimension_numbers = #tpu.dot_dimension_numbers<[1], [0], [0], [1], [0, 0, 1, 1], [], []>} : vector<16x64xbf16>, vector<64x64xbf16>, vector<16x64xf32> -> vector<16x64xf32>
    %c0_20 = arith.constant 0 : index
    %c0_21 = arith.constant 0 : index
    %c0_22 = arith.constant 0 : index
    %20 = vector.load %arg7[%c0_20, %c0_21, %c0_22] : memref<2x1x64xf32, #tpu.memory_space<vmem>>, vector<1x1x64xf32>
    %21 = vector.shape_cast %20 : vector<1x1x64xf32> to vector<1x64xf32>
    %22 = vector.broadcast %21 : vector<1x64xf32> to vector<16x64xf32>
    %23 = arith.addf %19, %22 : vector<16x64xf32>
    %24 = vector.shape_cast %9 : vector<16x64xf32> to vector<2x8x64xf32>
    %25 = vector.shape_cast %16 : vector<16x64xf32> to vector<2x8x64xf32>
    %26 = vector.shape_cast %23 : vector<16x64xf32> to vector<2x8x64xf32>
    %27 = vector.extract_strided_slice %1 {offsets = [0, 0], sizes = [1, 64], strides = [1, 1]} : vector<4x64xf32> to vector<1x64xf32>
    %28 = vector.shape_cast %27 : vector<1x64xf32> to vector<1x1x64xf32>
    %29 = vector.broadcast %28 : vector<1x1x64xf32> to vector<2x8x64xf32>
    %30 = arith.mulf %25, %29 : vector<2x8x64xf32>
    "tpu.trace_start"() <{level = 10 : i32, message = "nle,nme->nlm"}> : () -> ()
    %cst_23 = arith.constant dense<0.000000e+00> : vector<2x8x8xf32>
    %31 = tpu.matmul %24, %30, %cst_23 {dimension_numbers = #tpu.dot_dimension_numbers<[2], [2], [1], [1], [0, 0, 0, 1, 1, 1], [0], [0]>} : vector<2x8x64xf32>, vector<2x8x64xf32>, vector<2x8x8xf32> -> vector<2x8x8xf32>
    "tpu.trace_stop"() : () -> ()
    %cst_24 = arith.constant dense<0xFF800000> : vector<2x8xf32>
    %32 = vector.multi_reduction <maximumf>, %31, %cst_24 [2] : vector<2x8x8xf32> to vector<2x8xf32>
    %33 = vector.shape_cast %32 : vector<2x8xf32> to vector<2x8x1xf32>
    %34 = vector.broadcast %33 : vector<2x8x1xf32> to vector<2x8x8xf32>
    %35 = arith.subf %31, %34 : vector<2x8x8xf32>
    %36 = math.exp %35 : vector<2x8x8xf32>
    %cst_25 = arith.constant dense<0.000000e+00> : vector<2x8xf32>
    %37 = vector.multi_reduction <add>, %36, %cst_25 [2] : vector<2x8x8xf32> to vector<2x8xf32>
    %38 = vector.shape_cast %37 : vector<2x8xf32> to vector<2x8x1xf32>
    %39 = tpu.reciprocal %38 {approx = true} : vector<2x8x1xf32> -> vector<2x8x1xf32>
    %40 = vector.broadcast %39 : vector<2x8x1xf32> to vector<2x8x8xf32>
    %41 = arith.mulf %36, %40 : vector<2x8x8xf32>
    %42 = vector.shape_cast %27 : vector<1x64xf32> to vector<1x1x64xf32>
    %43 = vector.broadcast %42 : vector<1x1x64xf32> to vector<2x8x64xf32>
    %44 = arith.mulf %26, %43 : vector<2x8x64xf32>
    "tpu.trace_start"() <{level = 10 : i32, message = "nlm,nme->nle"}> : () -> ()
    %cst_26 = arith.constant dense<0.000000e+00> : vector<2x8x64xf32>
    %45 = tpu.matmul %41, %44, %cst_26 {dimension_numbers = #tpu.dot_dimension_numbers<[2], [1], [1], [2], [0, 0, 0, 1, 1, 2], [0], [0]>} : vector<2x8x8xf32>, vector<2x8x64xf32>, vector<2x8x64xf32> -> vector<2x8x64xf32>
    "tpu.trace_stop"() : () -> ()
    %46 = vector.extract_strided_slice %1 {offsets = [1, 0], sizes = [1, 64], strides = [1, 1]} : vector<4x64xf32> to vector<1x64xf32>
    %47 = vector.shape_cast %46 : vector<1x64xf32> to vector<1x1x64xf32>
    %48 = vector.broadcast %47 : vector<1x1x64xf32> to vector<2x8x64xf32>
    %49 = arith.mulf %25, %48 : vector<2x8x64xf32>
    "tpu.trace_start"() <{level = 10 : i32, message = "nle,nme->nlm"}> : () -> ()
    %cst_27 = arith.constant dense<0.000000e+00> : vector<2x8x8xf32>
    %50 = tpu.matmul %24, %49, %cst_27 {dimension_numbers = #tpu.dot_dimension_numbers<[2], [2], [1], [1], [0, 0, 0, 1, 1, 1], [0], [0]>} : vector<2x8x64xf32>, vector<2x8x64xf32>, vector<2x8x8xf32> -> vector<2x8x8xf32>
    "tpu.trace_stop"() : () -> ()
    %cst_28 = arith.constant dense<0xFF800000> : vector<2x8xf32>
    %51 = vector.multi_reduction <maximumf>, %50, %cst_28 [2] : vector<2x8x8xf32> to vector<2x8xf32>
    %52 = vector.shape_cast %51 : vector<2x8xf32> to vector<2x8x1xf32>
    %53 = vector.broadcast %52 : vector<2x8x1xf32> to vector<2x8x8xf32>
    %54 = arith.subf %50, %53 : vector<2x8x8xf32>
    %55 = math.exp %54 : vector<2x8x8xf32>
    %cst_29 = arith.constant dense<0.000000e+00> : vector<2x8xf32>
    %56 = vector.multi_reduction <add>, %55, %cst_29 [2] : vector<2x8x8xf32> to vector<2x8xf32>
    %57 = vector.shape_cast %56 : vector<2x8xf32> to vector<2x8x1xf32>
    %58 = tpu.reciprocal %57 {approx = true} : vector<2x8x1xf32> -> vector<2x8x1xf32>
    %59 = vector.broadcast %58 : vector<2x8x1xf32> to vector<2x8x8xf32>
    %60 = arith.mulf %55, %59 : vector<2x8x8xf32>
    %61 = vector.shape_cast %46 : vector<1x64xf32> to vector<1x1x64xf32>
    %62 = vector.broadcast %61 : vector<1x1x64xf32> to vector<2x8x64xf32>
    %63 = arith.mulf %26, %62 : vector<2x8x64xf32>
    "tpu.trace_start"() <{level = 10 : i32, message = "nlm,nme->nle"}> : () -> ()
    %cst_30 = arith.constant dense<0.000000e+00> : vector<2x8x64xf32>
    %64 = tpu.matmul %60, %63, %cst_30 {dimension_numbers = #tpu.dot_dimension_numbers<[2], [1], [1], [2], [0, 0, 0, 1, 1, 2], [0], [0]>} : vector<2x8x8xf32>, vector<2x8x64xf32>, vector<2x8x64xf32> -> vector<2x8x64xf32>
    "tpu.trace_stop"() : () -> ()
    %65 = arith.addf %45, %64 : vector<2x8x64xf32>
    %66 = vector.extract_strided_slice %1 {offsets = [2, 0], sizes = [1, 64], strides = [1, 1]} : vector<4x64xf32> to vector<1x64xf32>
    %67 = vector.shape_cast %66 : vector<1x64xf32> to vector<1x1x64xf32>
    %68 = vector.broadcast %67 : vector<1x1x64xf32> to vector<2x8x64xf32>
    %69 = arith.mulf %25, %68 : vector<2x8x64xf32>
    "tpu.trace_start"() <{level = 10 : i32, message = "nle,nme->nlm"}> : () -> ()
    %cst_31 = arith.constant dense<0.000000e+00> : vector<2x8x8xf32>
    %70 = tpu.matmul %24, %69, %cst_31 {dimension_numbers = #tpu.dot_dimension_numbers<[2], [2], [1], [1], [0, 0, 0, 1, 1, 1], [0], [0]>} : vector<2x8x64xf32>, vector<2x8x64xf32>, vector<2x8x8xf32> -> vector<2x8x8xf32>
    "tpu.trace_stop"() : () -> ()
    %cst_32 = arith.constant dense<0xFF800000> : vector<2x8xf32>
    %71 = vector.multi_reduction <maximumf>, %70, %cst_32 [2] : vector<2x8x8xf32> to vector<2x8xf32>
    %72 = vector.shape_cast %71 : vector<2x8xf32> to vector<2x8x1xf32>
    %73 = vector.broadcast %72 : vector<2x8x1xf32> to vector<2x8x8xf32>
    %74 = arith.subf %70, %73 : vector<2x8x8xf32>
    %75 = math.exp %74 : vector<2x8x8xf32>
    %cst_33 = arith.constant dense<0.000000e+00> : vector<2x8xf32>
    %76 = vector.multi_reduction <add>, %75, %cst_33 [2] : vector<2x8x8xf32> to vector<2x8xf32>
    %77 = vector.shape_cast %76 : vector<2x8xf32> to vector<2x8x1xf32>
    %78 = tpu.reciprocal %77 {approx = true} : vector<2x8x1xf32> -> vector<2x8x1xf32>
    %79 = vector.broadcast %78 : vector<2x8x1xf32> to vector<2x8x8xf32>
    %80 = arith.mulf %75, %79 : vector<2x8x8xf32>
    %81 = vector.shape_cast %66 : vector<1x64xf32> to vector<1x1x64xf32>
    %82 = vector.broadcast %81 : vector<1x1x64xf32> to vector<2x8x64xf32>
    %83 = arith.mulf %26, %82 : vector<2x8x64xf32>
    "tpu.trace_start"() <{level = 10 : i32, message = "nlm,nme->nle"}> : () -> ()
    %cst_34 = arith.constant dense<0.000000e+00> : vector<2x8x64xf32>
    %84 = tpu.matmul %80, %83, %cst_34 {dimension_numbers = #tpu.dot_dimension_numbers<[2], [1], [1], [2], [0, 0, 0, 1, 1, 2], [0], [0]>} : vector<2x8x8xf32>, vector<2x8x64xf32>, vector<2x8x64xf32> -> vector<2x8x64xf32>
    "tpu.trace_stop"() : () -> ()
    %85 = arith.addf %65, %84 : vector<2x8x64xf32>
    %86 = vector.extract_strided_slice %1 {offsets = [3, 0], sizes = [1, 64], strides = [1, 1]} : vector<4x64xf32> to vector<1x64xf32>
    %87 = vector.shape_cast %86 : vector<1x64xf32> to vector<1x1x64xf32>
    %88 = vector.broadcast %87 : vector<1x1x64xf32> to vector<2x8x64xf32>
    %89 = arith.mulf %25, %88 : vector<2x8x64xf32>
    "tpu.trace_start"() <{level = 10 : i32, message = "nle,nme->nlm"}> : () -> ()
    %cst_35 = arith.constant dense<0.000000e+00> : vector<2x8x8xf32>
    %90 = tpu.matmul %24, %89, %cst_35 {dimension_numbers = #tpu.dot_dimension_numbers<[2], [2], [1], [1], [0, 0, 0, 1, 1, 1], [0], [0]>} : vector<2x8x64xf32>, vector<2x8x64xf32>, vector<2x8x8xf32> -> vector<2x8x8xf32>
    "tpu.trace_stop"() : () -> ()
    %cst_36 = arith.constant dense<0xFF800000> : vector<2x8xf32>
    %91 = vector.multi_reduction <maximumf>, %90, %cst_36 [2] : vector<2x8x8xf32> to vector<2x8xf32>
    %92 = vector.shape_cast %91 : vector<2x8xf32> to vector<2x8x1xf32>
    %93 = vector.broadcast %92 : vector<2x8x1xf32> to vector<2x8x8xf32>
    %94 = arith.subf %90, %93 : vector<2x8x8xf32>
    %95 = math.exp %94 : vector<2x8x8xf32>
    %cst_37 = arith.constant dense<0.000000e+00> : vector<2x8xf32>
    %96 = vector.multi_reduction <add>, %95, %cst_37 [2] : vector<2x8x8xf32> to vector<2x8xf32>
    %97 = vector.shape_cast %96 : vector<2x8xf32> to vector<2x8x1xf32>
    %98 = tpu.reciprocal %97 {approx = true} : vector<2x8x1xf32> -> vector<2x8x1xf32>
    %99 = vector.broadcast %98 : vector<2x8x1xf32> to vector<2x8x8xf32>
    %100 = arith.mulf %95, %99 : vector<2x8x8xf32>
    %101 = vector.shape_cast %86 : vector<1x64xf32> to vector<1x1x64xf32>
    %102 = vector.broadcast %101 : vector<1x1x64xf32> to vector<2x8x64xf32>
    %103 = arith.mulf %26, %102 : vector<2x8x64xf32>
    "tpu.trace_start"() <{level = 10 : i32, message = "nlm,nme->nle"}> : () -> ()
    %cst_38 = arith.constant dense<0.000000e+00> : vector<2x8x64xf32>
    %104 = tpu.matmul %100, %103, %cst_38 {dimension_numbers = #tpu.dot_dimension_numbers<[2], [1], [1], [2], [0, 0, 0, 1, 1, 2], [0], [0]>} : vector<2x8x8xf32>, vector<2x8x64xf32>, vector<2x8x64xf32> -> vector<2x8x64xf32>
    "tpu.trace_stop"() : () -> ()
    %105 = arith.addf %85, %104 : vector<2x8x64xf32>
    %106 = vector.shape_cast %105 : vector<2x8x64xf32> to vector<16x64xf32>
    %107 = arith.truncf %106 : vector<16x64xf32> to vector<16x64xbf16>
    %c0_39 = arith.constant 0 : index
    %c0_40 = arith.constant 0 : index
    %c0_41 = arith.constant 0 : index
    %108 = vector.load %arg8[%c0_39, %c0_40, %c0_41] : memref<2x64x64xbf16, #tpu.memory_space<vmem>>, vector<1x64x64xbf16>
    %109 = vector.shape_cast %108 : vector<1x64x64xbf16> to vector<64x64xbf16>
    %cst_42 = arith.constant dense<0.000000e+00> : vector<16x64xf32>
    %110 = tpu.matmul %107, %109, %cst_42 {dimension_numbers = #tpu.dot_dimension_numbers<[1], [0], [0], [1], [0, 0, 1, 1], [], []>} : vector<16x64xbf16>, vector<64x64xbf16>, vector<16x64xf32> -> vector<16x64xf32>
    %c0_43 = arith.constant 0 : index
    %c0_44 = arith.constant 0 : index
    %c0_45 = arith.constant 0 : index
    %111 = vector.load %arg9[%c0_43, %c0_44, %c0_45] : memref<2x1x64xf32, #tpu.memory_space<vmem>>, vector<1x1x64xf32>
    %112 = vector.shape_cast %111 : vector<1x1x64xf32> to vector<1x64xf32>
    %113 = vector.broadcast %112 : vector<1x64xf32> to vector<16x64xf32>
    %114 = arith.addf %110, %113 : vector<16x64xf32>
    %115 = arith.addf %0, %114 : vector<16x64xf32>
    %cst_46 = arith.constant dense<0.000000e+00> : vector<16xf32>
    %116 = vector.multi_reduction <add>, %115, %cst_46 [1] : vector<16x64xf32> to vector<16xf32>
    %117 = vector.shape_cast %116 : vector<16xf32> to vector<16x1xf32>
    %cst_47 = arith.constant 6.400000e+01 : f32
    %118 = vector.broadcast %cst_47 : f32 to vector<16x1xf32>
    %119 = arith.divf %117, %118 : vector<16x1xf32>
    %120 = vector.broadcast %119 : vector<16x1xf32> to vector<16x64xf32>
    %121 = arith.subf %115, %120 : vector<16x64xf32>
    %122 = arith.mulf %121, %121 : vector<16x64xf32>
    %cst_48 = arith.constant dense<0.000000e+00> : vector<16xf32>
    %123 = vector.multi_reduction <add>, %122, %cst_48 [1] : vector<16x64xf32> to vector<16xf32>
    %124 = vector.shape_cast %123 : vector<16xf32> to vector<16x1xf32>
    %cst_49 = arith.constant 6.400000e+01 : f32
    %125 = vector.broadcast %cst_49 : f32 to vector<16x1xf32>
    %126 = arith.divf %124, %125 : vector<16x1xf32>
    %127 = vector.broadcast %119 : vector<16x1xf32> to vector<16x64xf32>
    %128 = arith.subf %115, %127 : vector<16x64xf32>
    %cst_50 = arith.constant 9.99999974E-6 : f32
    %129 = vector.broadcast %cst_50 : f32 to vector<16x1xf32>
    %130 = arith.addf %126, %129 : vector<16x1xf32>
    %131 = math.rsqrt %130 : vector<16x1xf32>
    %132 = vector.broadcast %131 : vector<16x1xf32> to vector<16x64xf32>
    %133 = arith.mulf %128, %132 : vector<16x64xf32>
    %c0_51 = arith.constant 0 : index
    %c0_52 = arith.constant 0 : index
    %c0_53 = arith.constant 0 : index
    %134 = vector.load %arg10[%c0_51, %c0_52, %c0_53] : memref<2x1x64xf32, #tpu.memory_space<vmem>>, vector<1x1x64xf32>
    %135 = vector.shape_cast %134 : vector<1x1x64xf32> to vector<1x64xf32>
    %136 = vector.broadcast %135 : vector<1x64xf32> to vector<16x64xf32>
    %137 = arith.mulf %133, %136 : vector<16x64xf32>
    %c0_54 = arith.constant 0 : index
    %c0_55 = arith.constant 0 : index
    %c0_56 = arith.constant 0 : index
    %138 = vector.load %arg11[%c0_54, %c0_55, %c0_56] : memref<2x1x64xf32, #tpu.memory_space<vmem>>, vector<1x1x64xf32>
    %139 = vector.shape_cast %138 : vector<1x1x64xf32> to vector<1x64xf32>
    %140 = vector.broadcast %139 : vector<1x64xf32> to vector<16x64xf32>
    %141 = arith.addf %137, %140 : vector<16x64xf32>
    %142 = arith.truncf %141 : vector<16x64xf32> to vector<16x64xbf16>
    %c0_57 = arith.constant 0 : index
    %c0_58 = arith.constant 0 : index
    %c0_59 = arith.constant 0 : index
    %143 = vector.load %arg12[%c0_57, %c0_58, %c0_59] : memref<2x64x2048xbf16, #tpu.memory_space<vmem>>, vector<1x64x2048xbf16>
    %144 = vector.shape_cast %143 : vector<1x64x2048xbf16> to vector<64x2048xbf16>
    %cst_60 = arith.constant dense<0.000000e+00> : vector<16x2048xf32>
    %145 = tpu.matmul %142, %144, %cst_60 {dimension_numbers = #tpu.dot_dimension_numbers<[1], [0], [0], [1], [0, 0, 1, 1], [], []>} : vector<16x64xbf16>, vector<64x2048xbf16>, vector<16x2048xf32> -> vector<16x2048xf32>
    %c0_61 = arith.constant 0 : index
    %c0_62 = arith.constant 0 : index
    %c0_63 = arith.constant 0 : index
    %146 = vector.load %arg13[%c0_61, %c0_62, %c0_63] : memref<2x1x2048xf32, #tpu.memory_space<vmem>>, vector<1x1x2048xf32>
    %147 = vector.shape_cast %146 : vector<1x1x2048xf32> to vector<1x2048xf32>
    %148 = vector.broadcast %147 : vector<1x2048xf32> to vector<16x2048xf32>
    %149 = arith.addf %145, %148 : vector<16x2048xf32>
    %cst_64 = arith.constant 0.000000e+00 : f32
    %150 = vector.broadcast %cst_64 : f32 to vector<16x2048xf32>
    %151 = arith.maximumf %149, %150 : vector<16x2048xf32>
    %152 = arith.truncf %151 : vector<16x2048xf32> to vector<16x2048xbf16>
    %c0_65 = arith.constant 0 : index
    %c0_66 = arith.constant 0 : index
    %c0_67 = arith.constant 0 : index
    %153 = vector.load %arg14[%c0_65, %c0_66, %c0_67] : memref<2x2048x64xbf16, #tpu.memory_space<vmem>>, vector<1x2048x64xbf16>
    %154 = vector.shape_cast %153 : vector<1x2048x64xbf16> to vector<2048x64xbf16>
    %cst_68 = arith.constant dense<0.000000e+00> : vector<16x64xf32>
    %155 = tpu.matmul %152, %154, %cst_68 {dimension_numbers = #tpu.dot_dimension_numbers<[1], [0], [0], [1], [0, 0, 1, 1], [], []>} : vector<16x2048xbf16>, vector<2048x64xbf16>, vector<16x64xf32> -> vector<16x64xf32>
    %c0_69 = arith.constant 0 : index
    %c0_70 = arith.constant 0 : index
    %c0_71 = arith.constant 0 : index
    %156 = vector.load %arg15[%c0_69, %c0_70, %c0_71] : memref<2x1x64xf32, #tpu.memory_space<vmem>>, vector<1x1x64xf32>
    %157 = vector.shape_cast %156 : vector<1x1x64xf32> to vector<1x64xf32>
    %158 = vector.broadcast %157 : vector<1x64xf32> to vector<16x64xf32>
    %159 = arith.addf %155, %158 : vector<16x64xf32>
    %160 = arith.addf %141, %159 : vector<16x64xf32>
    %cst_72 = arith.constant dense<0.000000e+00> : vector<16xf32>
    %161 = vector.multi_reduction <add>, %160, %cst_72 [1] : vector<16x64xf32> to vector<16xf32>
    %162 = vector.shape_cast %161 : vector<16xf32> to vector<16x1xf32>
    %cst_73 = arith.constant 6.400000e+01 : f32
    %163 = vector.broadcast %cst_73 : f32 to vector<16x1xf32>
    %164 = arith.divf %162, %163 : vector<16x1xf32>
    %165 = vector.broadcast %164 : vector<16x1xf32> to vector<16x64xf32>
    %166 = arith.subf %160, %165 : vector<16x64xf32>
    %167 = arith.mulf %166, %166 : vector<16x64xf32>
    %cst_74 = arith.constant dense<0.000000e+00> : vector<16xf32>
    %168 = vector.multi_reduction <add>, %167, %cst_74 [1] : vector<16x64xf32> to vector<16xf32>
    %169 = vector.shape_cast %168 : vector<16xf32> to vector<16x1xf32>
    %cst_75 = arith.constant 6.400000e+01 : f32
    %170 = vector.broadcast %cst_75 : f32 to vector<16x1xf32>
    %171 = arith.divf %169, %170 : vector<16x1xf32>
    %172 = vector.broadcast %164 : vector<16x1xf32> to vector<16x64xf32>
    %173 = arith.subf %160, %172 : vector<16x64xf32>
    %cst_76 = arith.constant 9.99999974E-6 : f32
    %174 = vector.broadcast %cst_76 : f32 to vector<16x1xf32>
    %175 = arith.addf %171, %174 : vector<16x1xf32>
    %176 = math.rsqrt %175 : vector<16x1xf32>
    %177 = vector.broadcast %176 : vector<16x1xf32> to vector<16x64xf32>
    %178 = arith.mulf %173, %177 : vector<16x64xf32>
    %c0_77 = arith.constant 0 : index
    %c0_78 = arith.constant 0 : index
    %c0_79 = arith.constant 0 : index
    %179 = vector.load %arg16[%c0_77, %c0_78, %c0_79] : memref<2x1x64xf32, #tpu.memory_space<vmem>>, vector<1x1x64xf32>
    %180 = vector.shape_cast %179 : vector<1x1x64xf32> to vector<1x64xf32>
    %181 = vector.broadcast %180 : vector<1x64xf32> to vector<16x64xf32>
    %182 = arith.mulf %178, %181 : vector<16x64xf32>
    %c0_80 = arith.constant 0 : index
    %c0_81 = arith.constant 0 : index
    %c0_82 = arith.constant 0 : index
    %183 = vector.load %arg17[%c0_80, %c0_81, %c0_82] : memref<2x1x64xf32, #tpu.memory_space<vmem>>, vector<1x1x64xf32>
    %184 = vector.shape_cast %183 : vector<1x1x64xf32> to vector<1x64xf32>
    %185 = vector.broadcast %184 : vector<1x64xf32> to vector<16x64xf32>
    %186 = arith.addf %182, %185 : vector<16x64xf32>
    %187 = arith.truncf %186 : vector<16x64xf32> to vector<16x64xbf16>
    %c1 = arith.constant 1 : index
    %c0_83 = arith.constant 0 : index
    %c0_84 = arith.constant 0 : index
    %188 = vector.load %arg2[%c1, %c0_83, %c0_84] : memref<2x64x64xbf16, #tpu.memory_space<vmem>>, vector<1x64x64xbf16>
    %189 = vector.shape_cast %188 : vector<1x64x64xbf16> to vector<64x64xbf16>
    %cst_85 = arith.constant dense<0.000000e+00> : vector<16x64xf32>
    %190 = tpu.matmul %187, %189, %cst_85 {dimension_numbers = #tpu.dot_dimension_numbers<[1], [0], [0], [1], [0, 0, 1, 1], [], []>} : vector<16x64xbf16>, vector<64x64xbf16>, vector<16x64xf32> -> vector<16x64xf32>
    %c1_86 = arith.constant 1 : index
    %c0_87 = arith.constant 0 : index
    %c0_88 = arith.constant 0 : index
    %191 = vector.load %arg3[%c1_86, %c0_87, %c0_88] : memref<2x1x64xf32, #tpu.memory_space<vmem>>, vector<1x1x64xf32>
    %192 = vector.shape_cast %191 : vector<1x1x64xf32> to vector<1x64xf32>
    %193 = vector.broadcast %192 : vector<1x64xf32> to vector<16x64xf32>
    %194 = arith.addf %190, %193 : vector<16x64xf32>
    %c1_89 = arith.constant 1 : index
    %c0_90 = arith.constant 0 : index
    %c0_91 = arith.constant 0 : index
    %195 = vector.load %arg4[%c1_89, %c0_90, %c0_91] : memref<2x64x64xbf16, #tpu.memory_space<vmem>>, vector<1x64x64xbf16>
    %196 = vector.shape_cast %195 : vector<1x64x64xbf16> to vector<64x64xbf16>
    %cst_92 = arith.constant dense<0.000000e+00> : vector<16x64xf32>
    %197 = tpu.matmul %187, %196, %cst_92 {dimension_numbers = #tpu.dot_dimension_numbers<[1], [0], [0], [1], [0, 0, 1, 1], [], []>} : vector<16x64xbf16>, vector<64x64xbf16>, vector<16x64xf32> -> vector<16x64xf32>
    %c1_93 = arith.constant 1 : index
    %c0_94 = arith.constant 0 : index
    %c0_95 = arith.constant 0 : index
    %198 = vector.load %arg5[%c1_93, %c0_94, %c0_95] : memref<2x1x64xf32, #tpu.memory_space<vmem>>, vector<1x1x64xf32>
    %199 = vector.shape_cast %198 : vector<1x1x64xf32> to vector<1x64xf32>
    %200 = vector.broadcast %199 : vector<1x64xf32> to vector<16x64xf32>
    %201 = arith.addf %197, %200 : vector<16x64xf32>
    %c1_96 = arith.constant 1 : index
    %c0_97 = arith.constant 0 : index
    %c0_98 = arith.constant 0 : index
    %202 = vector.load %arg6[%c1_96, %c0_97, %c0_98] : memref<2x64x64xbf16, #tpu.memory_space<vmem>>, vector<1x64x64xbf16>
    %203 = vector.shape_cast %202 : vector<1x64x64xbf16> to vector<64x64xbf16>
    %cst_99 = arith.constant dense<0.000000e+00> : vector<16x64xf32>
    %204 = tpu.matmul %187, %203, %cst_99 {dimension_numbers = #tpu.dot_dimension_numbers<[1], [0], [0], [1], [0, 0, 1, 1], [], []>} : vector<16x64xbf16>, vector<64x64xbf16>, vector<16x64xf32> -> vector<16x64xf32>
    %c1_100 = arith.constant 1 : index
    %c0_101 = arith.constant 0 : index
    %c0_102 = arith.constant 0 : index
    %205 = vector.load %arg7[%c1_100, %c0_101, %c0_102] : memref<2x1x64xf32, #tpu.memory_space<vmem>>, vector<1x1x64xf32>
    %206 = vector.shape_cast %205 : vector<1x1x64xf32> to vector<1x64xf32>
    %207 = vector.broadcast %206 : vector<1x64xf32> to vector<16x64xf32>
    %208 = arith.addf %204, %207 : vector<16x64xf32>
    %209 = vector.shape_cast %194 : vector<16x64xf32> to vector<2x8x64xf32>
    %210 = vector.shape_cast %201 : vector<16x64xf32> to vector<2x8x64xf32>
    %211 = vector.shape_cast %208 : vector<16x64xf32> to vector<2x8x64xf32>
    %212 = vector.extract_strided_slice %1 {offsets = [0, 0], sizes = [1, 64], strides = [1, 1]} : vector<4x64xf32> to vector<1x64xf32>
    %213 = vector.shape_cast %212 : vector<1x64xf32> to vector<1x1x64xf32>
    %214 = vector.broadcast %213 : vector<1x1x64xf32> to vector<2x8x64xf32>
    %215 = arith.mulf %210, %214 : vector<2x8x64xf32>
    "tpu.trace_start"() <{level = 10 : i32, message = "nle,nme->nlm"}> : () -> ()
    %cst_103 = arith.constant dense<0.000000e+00> : vector<2x8x8xf32>
    %216 = tpu.matmul %209, %215, %cst_103 {dimension_numbers = #tpu.dot_dimension_numbers<[2], [2], [1], [1], [0, 0, 0, 1, 1, 1], [0], [0]>} : vector<2x8x64xf32>, vector<2x8x64xf32>, vector<2x8x8xf32> -> vector<2x8x8xf32>
    "tpu.trace_stop"() : () -> ()
    %cst_104 = arith.constant dense<0xFF800000> : vector<2x8xf32>
    %217 = vector.multi_reduction <maximumf>, %216, %cst_104 [2] : vector<2x8x8xf32> to vector<2x8xf32>
    %218 = vector.shape_cast %217 : vector<2x8xf32> to vector<2x8x1xf32>
    %219 = vector.broadcast %218 : vector<2x8x1xf32> to vector<2x8x8xf32>
    %220 = arith.subf %216, %219 : vector<2x8x8xf32>
    %221 = math.exp %220 : vector<2x8x8xf32>
    %cst_105 = arith.constant dense<0.000000e+00> : vector<2x8xf32>
    %222 = vector.multi_reduction <add>, %221, %cst_105 [2] : vector<2x8x8xf32> to vector<2x8xf32>
    %223 = vector.shape_cast %222 : vector<2x8xf32> to vector<2x8x1xf32>
    %224 = tpu.reciprocal %223 {approx = true} : vector<2x8x1xf32> -> vector<2x8x1xf32>
    %225 = vector.broadcast %224 : vector<2x8x1xf32> to vector<2x8x8xf32>
    %226 = arith.mulf %221, %225 : vector<2x8x8xf32>
    %227 = vector.shape_cast %212 : vector<1x64xf32> to vector<1x1x64xf32>
    %228 = vector.broadcast %227 : vector<1x1x64xf32> to vector<2x8x64xf32>
    %229 = arith.mulf %211, %228 : vector<2x8x64xf32>
    "tpu.trace_start"() <{level = 10 : i32, message = "nlm,nme->nle"}> : () -> ()
    %cst_106 = arith.constant dense<0.000000e+00> : vector<2x8x64xf32>
    %230 = tpu.matmul %226, %229, %cst_106 {dimension_numbers = #tpu.dot_dimension_numbers<[2], [1], [1], [2], [0, 0, 0, 1, 1, 2], [0], [0]>} : vector<2x8x8xf32>, vector<2x8x64xf32>, vector<2x8x64xf32> -> vector<2x8x64xf32>
    "tpu.trace_stop"() : () -> ()
    %231 = vector.extract_strided_slice %1 {offsets = [1, 0], sizes = [1, 64], strides = [1, 1]} : vector<4x64xf32> to vector<1x64xf32>
    %232 = vector.shape_cast %231 : vector<1x64xf32> to vector<1x1x64xf32>
    %233 = vector.broadcast %232 : vector<1x1x64xf32> to vector<2x8x64xf32>
    %234 = arith.mulf %210, %233 : vector<2x8x64xf32>
    "tpu.trace_start"() <{level = 10 : i32, message = "nle,nme->nlm"}> : () -> ()
    %cst_107 = arith.constant dense<0.000000e+00> : vector<2x8x8xf32>
    %235 = tpu.matmul %209, %234, %cst_107 {dimension_numbers = #tpu.dot_dimension_numbers<[2], [2], [1], [1], [0, 0, 0, 1, 1, 1], [0], [0]>} : vector<2x8x64xf32>, vector<2x8x64xf32>, vector<2x8x8xf32> -> vector<2x8x8xf32>
    "tpu.trace_stop"() : () -> ()
    %cst_108 = arith.constant dense<0xFF800000> : vector<2x8xf32>
    %236 = vector.multi_reduction <maximumf>, %235, %cst_108 [2] : vector<2x8x8xf32> to vector<2x8xf32>
    %237 = vector.shape_cast %236 : vector<2x8xf32> to vector<2x8x1xf32>
    %238 = vector.broadcast %237 : vector<2x8x1xf32> to vector<2x8x8xf32>
    %239 = arith.subf %235, %238 : vector<2x8x8xf32>
    %240 = math.exp %239 : vector<2x8x8xf32>
    %cst_109 = arith.constant dense<0.000000e+00> : vector<2x8xf32>
    %241 = vector.multi_reduction <add>, %240, %cst_109 [2] : vector<2x8x8xf32> to vector<2x8xf32>
    %242 = vector.shape_cast %241 : vector<2x8xf32> to vector<2x8x1xf32>
    %243 = tpu.reciprocal %242 {approx = true} : vector<2x8x1xf32> -> vector<2x8x1xf32>
    %244 = vector.broadcast %243 : vector<2x8x1xf32> to vector<2x8x8xf32>
    %245 = arith.mulf %240, %244 : vector<2x8x8xf32>
    %246 = vector.shape_cast %231 : vector<1x64xf32> to vector<1x1x64xf32>
    %247 = vector.broadcast %246 : vector<1x1x64xf32> to vector<2x8x64xf32>
    %248 = arith.mulf %211, %247 : vector<2x8x64xf32>
    "tpu.trace_start"() <{level = 10 : i32, message = "nlm,nme->nle"}> : () -> ()
    %cst_110 = arith.constant dense<0.000000e+00> : vector<2x8x64xf32>
    %249 = tpu.matmul %245, %248, %cst_110 {dimension_numbers = #tpu.dot_dimension_numbers<[2], [1], [1], [2], [0, 0, 0, 1, 1, 2], [0], [0]>} : vector<2x8x8xf32>, vector<2x8x64xf32>, vector<2x8x64xf32> -> vector<2x8x64xf32>
    "tpu.trace_stop"() : () -> ()
    %250 = arith.addf %230, %249 : vector<2x8x64xf32>
    %251 = vector.extract_strided_slice %1 {offsets = [2, 0], sizes = [1, 64], strides = [1, 1]} : vector<4x64xf32> to vector<1x64xf32>
    %252 = vector.shape_cast %251 : vector<1x64xf32> to vector<1x1x64xf32>
    %253 = vector.broadcast %252 : vector<1x1x64xf32> to vector<2x8x64xf32>
    %254 = arith.mulf %210, %253 : vector<2x8x64xf32>
    "tpu.trace_start"() <{level = 10 : i32, message = "nle,nme->nlm"}> : () -> ()
    %cst_111 = arith.constant dense<0.000000e+00> : vector<2x8x8xf32>
    %255 = tpu.matmul %209, %254, %cst_111 {dimension_numbers = #tpu.dot_dimension_numbers<[2], [2], [1], [1], [0, 0, 0, 1, 1, 1], [0], [0]>} : vector<2x8x64xf32>, vector<2x8x64xf32>, vector<2x8x8xf32> -> vector<2x8x8xf32>
    "tpu.trace_stop"() : () -> ()
    %cst_112 = arith.constant dense<0xFF800000> : vector<2x8xf32>
    %256 = vector.multi_reduction <maximumf>, %255, %cst_112 [2] : vector<2x8x8xf32> to vector<2x8xf32>
    %257 = vector.shape_cast %256 : vector<2x8xf32> to vector<2x8x1xf32>
    %258 = vector.broadcast %257 : vector<2x8x1xf32> to vector<2x8x8xf32>
    %259 = arith.subf %255, %258 : vector<2x8x8xf32>
    %260 = math.exp %259 : vector<2x8x8xf32>
    %cst_113 = arith.constant dense<0.000000e+00> : vector<2x8xf32>
    %261 = vector.multi_reduction <add>, %260, %cst_113 [2] : vector<2x8x8xf32> to vector<2x8xf32>
    %262 = vector.shape_cast %261 : vector<2x8xf32> to vector<2x8x1xf32>
    %263 = tpu.reciprocal %262 {approx = true} : vector<2x8x1xf32> -> vector<2x8x1xf32>
    %264 = vector.broadcast %263 : vector<2x8x1xf32> to vector<2x8x8xf32>
    %265 = arith.mulf %260, %264 : vector<2x8x8xf32>
    %266 = vector.shape_cast %251 : vector<1x64xf32> to vector<1x1x64xf32>
    %267 = vector.broadcast %266 : vector<1x1x64xf32> to vector<2x8x64xf32>
    %268 = arith.mulf %211, %267 : vector<2x8x64xf32>
    "tpu.trace_start"() <{level = 10 : i32, message = "nlm,nme->nle"}> : () -> ()
    %cst_114 = arith.constant dense<0.000000e+00> : vector<2x8x64xf32>
    %269 = tpu.matmul %265, %268, %cst_114 {dimension_numbers = #tpu.dot_dimension_numbers<[2], [1], [1], [2], [0, 0, 0, 1, 1, 2], [0], [0]>} : vector<2x8x8xf32>, vector<2x8x64xf32>, vector<2x8x64xf32> -> vector<2x8x64xf32>
    "tpu.trace_stop"() : () -> ()
    %270 = arith.addf %250, %269 : vector<2x8x64xf32>
    %271 = vector.extract_strided_slice %1 {offsets = [3, 0], sizes = [1, 64], strides = [1, 1]} : vector<4x64xf32> to vector<1x64xf32>
    %272 = vector.shape_cast %271 : vector<1x64xf32> to vector<1x1x64xf32>
    %273 = vector.broadcast %272 : vector<1x1x64xf32> to vector<2x8x64xf32>
    %274 = arith.mulf %210, %273 : vector<2x8x64xf32>
    "tpu.trace_start"() <{level = 10 : i32, message = "nle,nme->nlm"}> : () -> ()
    %cst_115 = arith.constant dense<0.000000e+00> : vector<2x8x8xf32>
    %275 = tpu.matmul %209, %274, %cst_115 {dimension_numbers = #tpu.dot_dimension_numbers<[2], [2], [1], [1], [0, 0, 0, 1, 1, 1], [0], [0]>} : vector<2x8x64xf32>, vector<2x8x64xf32>, vector<2x8x8xf32> -> vector<2x8x8xf32>
    "tpu.trace_stop"() : () -> ()
    %cst_116 = arith.constant dense<0xFF800000> : vector<2x8xf32>
    %276 = vector.multi_reduction <maximumf>, %275, %cst_116 [2] : vector<2x8x8xf32> to vector<2x8xf32>
    %277 = vector.shape_cast %276 : vector<2x8xf32> to vector<2x8x1xf32>
    %278 = vector.broadcast %277 : vector<2x8x1xf32> to vector<2x8x8xf32>
    %279 = arith.subf %275, %278 : vector<2x8x8xf32>
    %280 = math.exp %279 : vector<2x8x8xf32>
    %cst_117 = arith.constant dense<0.000000e+00> : vector<2x8xf32>
    %281 = vector.multi_reduction <add>, %280, %cst_117 [2] : vector<2x8x8xf32> to vector<2x8xf32>
    %282 = vector.shape_cast %281 : vector<2x8xf32> to vector<2x8x1xf32>
    %283 = tpu.reciprocal %282 {approx = true} : vector<2x8x1xf32> -> vector<2x8x1xf32>
    %284 = vector.broadcast %283 : vector<2x8x1xf32> to vector<2x8x8xf32>
    %285 = arith.mulf %280, %284 : vector<2x8x8xf32>
    %286 = vector.shape_cast %271 : vector<1x64xf32> to vector<1x1x64xf32>
    %287 = vector.broadcast %286 : vector<1x1x64xf32> to vector<2x8x64xf32>
    %288 = arith.mulf %211, %287 : vector<2x8x64xf32>
    "tpu.trace_start"() <{level = 10 : i32, message = "nlm,nme->nle"}> : () -> ()
    %cst_118 = arith.constant dense<0.000000e+00> : vector<2x8x64xf32>
    %289 = tpu.matmul %285, %288, %cst_118 {dimension_numbers = #tpu.dot_dimension_numbers<[2], [1], [1], [2], [0, 0, 0, 1, 1, 2], [0], [0]>} : vector<2x8x8xf32>, vector<2x8x64xf32>, vector<2x8x64xf32> -> vector<2x8x64xf32>
    "tpu.trace_stop"() : () -> ()
    %290 = arith.addf %270, %289 : vector<2x8x64xf32>
    %291 = vector.shape_cast %290 : vector<2x8x64xf32> to vector<16x64xf32>
    %292 = arith.truncf %291 : vector<16x64xf32> to vector<16x64xbf16>
    %c1_119 = arith.constant 1 : index
    %c0_120 = arith.constant 0 : index
    %c0_121 = arith.constant 0 : index
    %293 = vector.load %arg8[%c1_119, %c0_120, %c0_121] : memref<2x64x64xbf16, #tpu.memory_space<vmem>>, vector<1x64x64xbf16>
    %294 = vector.shape_cast %293 : vector<1x64x64xbf16> to vector<64x64xbf16>
    %cst_122 = arith.constant dense<0.000000e+00> : vector<16x64xf32>
    %295 = tpu.matmul %292, %294, %cst_122 {dimension_numbers = #tpu.dot_dimension_numbers<[1], [0], [0], [1], [0, 0, 1, 1], [], []>} : vector<16x64xbf16>, vector<64x64xbf16>, vector<16x64xf32> -> vector<16x64xf32>
    %c1_123 = arith.constant 1 : index
    %c0_124 = arith.constant 0 : index
    %c0_125 = arith.constant 0 : index
    %296 = vector.load %arg9[%c1_123, %c0_124, %c0_125] : memref<2x1x64xf32, #tpu.memory_space<vmem>>, vector<1x1x64xf32>
    %297 = vector.shape_cast %296 : vector<1x1x64xf32> to vector<1x64xf32>
    %298 = vector.broadcast %297 : vector<1x64xf32> to vector<16x64xf32>
    %299 = arith.addf %295, %298 : vector<16x64xf32>
    %300 = arith.addf %186, %299 : vector<16x64xf32>
    %cst_126 = arith.constant dense<0.000000e+00> : vector<16xf32>
    %301 = vector.multi_reduction <add>, %300, %cst_126 [1] : vector<16x64xf32> to vector<16xf32>
    %302 = vector.shape_cast %301 : vector<16xf32> to vector<16x1xf32>
    %cst_127 = arith.constant 6.400000e+01 : f32
    %303 = vector.broadcast %cst_127 : f32 to vector<16x1xf32>
    %304 = arith.divf %302, %303 : vector<16x1xf32>
    %305 = vector.broadcast %304 : vector<16x1xf32> to vector<16x64xf32>
    %306 = arith.subf %300, %305 : vector<16x64xf32>
    %307 = arith.mulf %306, %306 : vector<16x64xf32>
    %cst_128 = arith.constant dense<0.000000e+00> : vector<16xf32>
    %308 = vector.multi_reduction <add>, %307, %cst_128 [1] : vector<16x64xf32> to vector<16xf32>
    %309 = vector.shape_cast %308 : vector<16xf32> to vector<16x1xf32>
    %cst_129 = arith.constant 6.400000e+01 : f32
    %310 = vector.broadcast %cst_129 : f32 to vector<16x1xf32>
    %311 = arith.divf %309, %310 : vector<16x1xf32>
    %312 = vector.broadcast %304 : vector<16x1xf32> to vector<16x64xf32>
    %313 = arith.subf %300, %312 : vector<16x64xf32>
    %cst_130 = arith.constant 9.99999974E-6 : f32
    %314 = vector.broadcast %cst_130 : f32 to vector<16x1xf32>
    %315 = arith.addf %311, %314 : vector<16x1xf32>
    %316 = math.rsqrt %315 : vector<16x1xf32>
    %317 = vector.broadcast %316 : vector<16x1xf32> to vector<16x64xf32>
    %318 = arith.mulf %313, %317 : vector<16x64xf32>
    %c1_131 = arith.constant 1 : index
    %c0_132 = arith.constant 0 : index
    %c0_133 = arith.constant 0 : index
    %319 = vector.load %arg10[%c1_131, %c0_132, %c0_133] : memref<2x1x64xf32, #tpu.memory_space<vmem>>, vector<1x1x64xf32>
    %320 = vector.shape_cast %319 : vector<1x1x64xf32> to vector<1x64xf32>
    %321 = vector.broadcast %320 : vector<1x64xf32> to vector<16x64xf32>
    %322 = arith.mulf %318, %321 : vector<16x64xf32>
    %c1_134 = arith.constant 1 : index
    %c0_135 = arith.constant 0 : index
    %c0_136 = arith.constant 0 : index
    %323 = vector.load %arg11[%c1_134, %c0_135, %c0_136] : memref<2x1x64xf32, #tpu.memory_space<vmem>>, vector<1x1x64xf32>
    %324 = vector.shape_cast %323 : vector<1x1x64xf32> to vector<1x64xf32>
    %325 = vector.broadcast %324 : vector<1x64xf32> to vector<16x64xf32>
    %326 = arith.addf %322, %325 : vector<16x64xf32>
    %327 = arith.truncf %326 : vector<16x64xf32> to vector<16x64xbf16>
    %c1_137 = arith.constant 1 : index
    %c0_138 = arith.constant 0 : index
    %c0_139 = arith.constant 0 : index
    %328 = vector.load %arg12[%c1_137, %c0_138, %c0_139] : memref<2x64x2048xbf16, #tpu.memory_space<vmem>>, vector<1x64x2048xbf16>
    %329 = vector.shape_cast %328 : vector<1x64x2048xbf16> to vector<64x2048xbf16>
    %cst_140 = arith.constant dense<0.000000e+00> : vector<16x2048xf32>
    %330 = tpu.matmul %327, %329, %cst_140 {dimension_numbers = #tpu.dot_dimension_numbers<[1], [0], [0], [1], [0, 0, 1, 1], [], []>} : vector<16x64xbf16>, vector<64x2048xbf16>, vector<16x2048xf32> -> vector<16x2048xf32>
    %c1_141 = arith.constant 1 : index
    %c0_142 = arith.constant 0 : index
    %c0_143 = arith.constant 0 : index
    %331 = vector.load %arg13[%c1_141, %c0_142, %c0_143] : memref<2x1x2048xf32, #tpu.memory_space<vmem>>, vector<1x1x2048xf32>
    %332 = vector.shape_cast %331 : vector<1x1x2048xf32> to vector<1x2048xf32>
    %333 = vector.broadcast %332 : vector<1x2048xf32> to vector<16x2048xf32>
    %334 = arith.addf %330, %333 : vector<16x2048xf32>
    %cst_144 = arith.constant 0.000000e+00 : f32
    %335 = vector.broadcast %cst_144 : f32 to vector<16x2048xf32>
    %336 = arith.maximumf %334, %335 : vector<16x2048xf32>
    %337 = arith.truncf %336 : vector<16x2048xf32> to vector<16x2048xbf16>
    %c1_145 = arith.constant 1 : index
    %c0_146 = arith.constant 0 : index
    %c0_147 = arith.constant 0 : index
    %338 = vector.load %arg14[%c1_145, %c0_146, %c0_147] : memref<2x2048x64xbf16, #tpu.memory_space<vmem>>, vector<1x2048x64xbf16>
    %339 = vector.shape_cast %338 : vector<1x2048x64xbf16> to vector<2048x64xbf16>
    %cst_148 = arith.constant dense<0.000000e+00> : vector<16x64xf32>
    %340 = tpu.matmul %337, %339, %cst_148 {dimension_numbers = #tpu.dot_dimension_numbers<[1], [0], [0], [1], [0, 0, 1, 1], [], []>} : vector<16x2048xbf16>, vector<2048x64xbf16>, vector<16x64xf32> -> vector<16x64xf32>
    %c1_149 = arith.constant 1 : index
    %c0_150 = arith.constant 0 : index
    %c0_151 = arith.constant 0 : index
    %341 = vector.load %arg15[%c1_149, %c0_150, %c0_151] : memref<2x1x64xf32, #tpu.memory_space<vmem>>, vector<1x1x64xf32>
    %342 = vector.shape_cast %341 : vector<1x1x64xf32> to vector<1x64xf32>
    %343 = vector.broadcast %342 : vector<1x64xf32> to vector<16x64xf32>
    %344 = arith.addf %340, %343 : vector<16x64xf32>
    %345 = arith.addf %326, %344 : vector<16x64xf32>
    %cst_152 = arith.constant dense<0.000000e+00> : vector<16xf32>
    %346 = vector.multi_reduction <add>, %345, %cst_152 [1] : vector<16x64xf32> to vector<16xf32>
    %347 = vector.shape_cast %346 : vector<16xf32> to vector<16x1xf32>
    %cst_153 = arith.constant 6.400000e+01 : f32
    %348 = vector.broadcast %cst_153 : f32 to vector<16x1xf32>
    %349 = arith.divf %347, %348 : vector<16x1xf32>
    %350 = vector.broadcast %349 : vector<16x1xf32> to vector<16x64xf32>
    %351 = arith.subf %345, %350 : vector<16x64xf32>
    %352 = arith.mulf %351, %351 : vector<16x64xf32>
    %cst_154 = arith.constant dense<0.000000e+00> : vector<16xf32>
    %353 = vector.multi_reduction <add>, %352, %cst_154 [1] : vector<16x64xf32> to vector<16xf32>
    %354 = vector.shape_cast %353 : vector<16xf32> to vector<16x1xf32>
    %cst_155 = arith.constant 6.400000e+01 : f32
    %355 = vector.broadcast %cst_155 : f32 to vector<16x1xf32>
    %356 = arith.divf %354, %355 : vector<16x1xf32>
    %357 = vector.broadcast %349 : vector<16x1xf32> to vector<16x64xf32>
    %358 = arith.subf %345, %357 : vector<16x64xf32>
    %cst_156 = arith.constant 9.99999974E-6 : f32
    %359 = vector.broadcast %cst_156 : f32 to vector<16x1xf32>
    %360 = arith.addf %356, %359 : vector<16x1xf32>
    %361 = math.rsqrt %360 : vector<16x1xf32>
    %362 = vector.broadcast %361 : vector<16x1xf32> to vector<16x64xf32>
    %363 = arith.mulf %358, %362 : vector<16x64xf32>
    %c1_157 = arith.constant 1 : index
    %c0_158 = arith.constant 0 : index
    %c0_159 = arith.constant 0 : index
    %364 = vector.load %arg16[%c1_157, %c0_158, %c0_159] : memref<2x1x64xf32, #tpu.memory_space<vmem>>, vector<1x1x64xf32>
    %365 = vector.shape_cast %364 : vector<1x1x64xf32> to vector<1x64xf32>
    %366 = vector.broadcast %365 : vector<1x64xf32> to vector<16x64xf32>
    %367 = arith.mulf %363, %366 : vector<16x64xf32>
    %c1_160 = arith.constant 1 : index
    %c0_161 = arith.constant 0 : index
    %c0_162 = arith.constant 0 : index
    %368 = vector.load %arg17[%c1_160, %c0_161, %c0_162] : memref<2x1x64xf32, #tpu.memory_space<vmem>>, vector<1x1x64xf32>
    %369 = vector.shape_cast %368 : vector<1x1x64xf32> to vector<1x64xf32>
    %370 = vector.broadcast %369 : vector<1x64xf32> to vector<16x64xf32>
    %371 = arith.addf %367, %370 : vector<16x64xf32>
    %372 = arith.truncf %371 : vector<16x64xf32> to vector<16x64xbf16>
    %c0_163 = arith.constant 0 : index
    %c0_164 = arith.constant 0 : index
    %373 = vector.load %arg18[%c0_163, %c0_164] : memref<64x128xbf16, #tpu.memory_space<vmem>>, vector<64x128xbf16>
    %cst_165 = arith.constant dense<0.000000e+00> : vector<16x128xf32>
    %374 = tpu.matmul %372, %373, %cst_165 {dimension_numbers = #tpu.dot_dimension_numbers<[1], [0], [0], [1], [0, 0, 1, 1], [], []>} : vector<16x64xbf16>, vector<64x128xbf16>, vector<16x128xf32> -> vector<16x128xf32>
    %c0_166 = arith.constant 0 : index
    %c0_167 = arith.constant 0 : index
    %375 = vector.load %arg19[%c0_166, %c0_167] : memref<1x128xf32, #tpu.memory_space<vmem>>, vector<1x128xf32>
    %376 = vector.broadcast %375 : vector<1x128xf32> to vector<16x128xf32>
    %377 = arith.addf %374, %376 : vector<16x128xf32>
    %c0_168 = arith.constant 0 : index
    %c0_169 = arith.constant 0 : index
    %378 = vector.load %arg21[%c0_168, %c0_169] : memref<16x128xf32, #tpu.memory_space<vmem>>, vector<16x128xf32>
    tpu.vector_store %arg21[%c0_168, %c0_169], %377 {strides = array<i32>} : memref<16x128xf32, #tpu.memory_space<vmem>>, vector<16x128xf32>,
    return
  }
  func.func @transform_0(%arg0: i32) -> (i32, i32) {
    %c0_i32 = arith.constant 0 : i32
    %c0_i32_0 = arith.constant 0 : i32
    return %arg0, %c0_i32 : i32, i32
  }
  func.func @transform_1(%arg0: i32) -> (i32, i32, i32) {
    %c0_i32 = arith.constant 0 : i32
    %c0_i32_0 = arith.constant 0 : i32
    %c0_i32_1 = arith.constant 0 : i32
    %c0_i32_2 = arith.constant 0 : i32
    return %c0_i32, %c0_i32_0, %c0_i32_1 : i32, i32, i32
  }
  func.func @transform_2(%arg0: i32) -> (i32, i32, i32) {
    %c0_i32 = arith.constant 0 : i32
    %c0_i32_0 = arith.constant 0 : i32
    %c0_i32_1 = arith.constant 0 : i32
    %c0_i32_2 = arith.constant 0 : i32
    return %c0_i32, %c0_i32_0, %c0_i32_1 : i32, i32, i32
  }
  func.func @transform_3(%arg0: i32) -> (i32, i32, i32) {
    %c0_i32 = arith.constant 0 : i32
    %c0_i32_0 = arith.constant 0 : i32
    %c0_i32_1 = arith.constant 0 : i32
    %c0_i32_2 = arith.constant 0 : i32
    return %c0_i32, %c0_i32_0, %c0_i32_1 : i32, i32, i32
  }
  func.func @transform_4(%arg0: i32) -> (i32, i32, i32) {
    %c0_i32 = arith.constant 0 : i32
    %c0_i32_0 = arith.constant 0 : i32
    %c0_i32_1 = arith.constant 0 : i32
    %c0_i32_2 = arith.constant 0 : i32
    return %c0_i32, %c0_i32_0, %c0_i32_1 : i32, i32, i32
  }
  func.func @transform_5(%arg0: i32) -> (i32, i32, i32) {
    %c0_i32 = arith.constant 0 : i32
    %c0_i32_0 = arith.constant 0 : i32
    %c0_i32_1 = arith.constant 0 : i32
    %c0_i32_2 = arith.constant 0 : i32
    return %c0_i32, %c0_i32_0, %c0_i32_1 : i32, i32, i32
  }
  func.func @transform_6(%arg0: i32) -> (i32, i32, i32) {
    %c0_i32 = arith.constant 0 : i32
    %c0_i32_0 = arith.constant 0 : i32
    %c0_i32_1 = arith.constant 0 : i32
    %c0_i32_2 = arith.constant 0 : i32
    return %c0_i32, %c0_i32_0, %c0_i32_1 : i32, i32, i32
  }
  func.func @transform_7(%arg0: i32) -> (i32, i32, i32) {
    %c0_i32 = arith.constant 0 : i32
    %c0_i32_0 = arith.constant 0 : i32
    %c0_i32_1 = arith.constant 0 : i32
    %c0_i32_2 = arith.constant 0 : i32
    return %c0_i32, %c0_i32_0, %c0_i32_1 : i32, i32, i32
  }
  func.func @transform_8(%arg0: i32) -> (i32, i32, i32) {
    %c0_i32 = arith.constant 0 : i32
    %c0_i32_0 = arith.constant 0 : i32
    %c0_i32_1 = arith.constant 0 : i32
    %c0_i32_2 = arith.constant 0 : i32
    return %c0_i32, %c0_i32_0, %c0_i32_1 : i32, i32, i32
  }
  func.func @transform_9(%arg0: i32) -> (i32, i32, i32) {
    %c0_i32 = arith.constant 0 : i32
    %c0_i32_0 = arith.constant 0 : i32
    %c0_i32_1 = arith.constant 0 : i32
    %c0_i32_2 = arith.constant 0 : i32
    return %c0_i32, %c0_i32_0, %c0_i32_1 : i32, i32, i32
  }
  func.func @transform_10(%arg0: i32) -> (i32, i32, i32) {
    %c0_i32 = arith.constant 0 : i32
    %c0_i32_0 = arith.constant 0 : i32
    %c0_i32_1 = arith.constant 0 : i32
    %c0_i32_2 = arith.constant 0 : i32
    return %c0_i32, %c0_i32_0, %c0_i32_1 : i32, i32, i32
  }
  func.func @transform_11(%arg0: i32) -> (i32, i32, i32) {
    %c0_i32 = arith.constant 0 : i32
    %c0_i32_0 = arith.constant 0 : i32
    %c0_i32_1 = arith.constant 0 : i32
    %c0_i32_2 = arith.constant 0 : i32
    return %c0_i32, %c0_i32_0, %c0_i32_1 : i32, i32, i32
  }
  func.func @transform_12(%arg0: i32) -> (i32, i32, i32) {
    %c0_i32 = arith.constant 0 : i32
    %c0_i32_0 = arith.constant 0 : i32
    %c0_i32_1 = arith.constant 0 : i32
    %c0_i32_2 = arith.constant 0 : i32
    return %c0_i32, %c0_i32_0, %c0_i32_1 : i32, i32, i32
  }
  func.func @transform_13(%arg0: i32) -> (i32, i32, i32) {
    %c0_i32 = arith.constant 0 : i32
    %c0_i32_0 = arith.constant 0 : i32
    %c0_i32_1 = arith.constant 0 : i32
    %c0_i32_2 = arith.constant 0 : i32
    return %c0_i32, %c0_i32_0, %c0_i32_1 : i32, i32, i32
  }
  func.func @transform_14(%arg0: i32) -> (i32, i32, i32) {
    %c0_i32 = arith.constant 0 : i32
    %c0_i32_0 = arith.constant 0 : i32
    %c0_i32_1 = arith.constant 0 : i32
    %c0_i32_2 = arith.constant 0 : i32
    return %c0_i32, %c0_i32_0, %c0_i32_1 : i32, i32, i32
  }
  func.func @transform_15(%arg0: i32) -> (i32, i32, i32) {
    %c0_i32 = arith.constant 0 : i32
    %c0_i32_0 = arith.constant 0 : i32
    %c0_i32_1 = arith.constant 0 : i32
    %c0_i32_2 = arith.constant 0 : i32
    return %c0_i32, %c0_i32_0, %c0_i32_1 : i32, i32, i32
  }
  func.func @transform_16(%arg0: i32) -> (i32, i32, i32) {
    %c0_i32 = arith.constant 0 : i32
    %c0_i32_0 = arith.constant 0 : i32
    %c0_i32_1 = arith.constant 0 : i32
    %c0_i32_2 = arith.constant 0 : i32
    return %c0_i32, %c0_i32_0, %c0_i32_1 : i32, i32, i32
  }
  func.func @transform_17(%arg0: i32) -> (i32, i32) {
    %c0_i32 = arith.constant 0 : i32
    %c0_i32_0 = arith.constant 0 : i32
    %c0_i32_1 = arith.constant 0 : i32
    return %c0_i32, %c0_i32_0 : i32, i32
  }
  func.func @transform_18(%arg0: i32) -> (i32, i32) {
    %c0_i32 = arith.constant 0 : i32
    %c0_i32_0 = arith.constant 0 : i32
    %c0_i32_1 = arith.constant 0 : i32
    return %c0_i32, %c0_i32_0 : i32, i32
  }
  func.func @transform_19(%arg0: i32) -> (i32, i32) {
    %c0_i32 = arith.constant 0 : i32
    %c0_i32_0 = arith.constant 0 : i32
    %c0_i32_1 = arith.constant 0 : i32
    return %c0_i32, %c0_i32_0 : i32, i32
  }
  func.func @transform_20(%arg0: i32) -> (i32, i32) {
    %c0_i32 = arith.constant 0 : i32
    %c0_i32_0 = arith.constant 0 : i32
    return %arg0, %c0_i32 : i32, i32
  }
}

</mosaic_0001>

<bundles_post_ra>
// kernel: tpu_custom_call.1
= control target key start
LH: loop header
LB: loop body
LE: loop exit
PB: predicated region body
PF: predicated region fallthrough
CT: control target
= control target key end

     0   :  { %s12943_s0 = inlined_call_operand.vmem [shape: f32[32,64], index: 0, kind: input, shape index: {}]   ;;  %s12944_s1 = inlined_call_operand.vmem [shape: bf16[2,64,64], index: 1, kind: input, shape index: {}]   ;;  %s12945_s2 = inlined_call_operand.vmem [shape: f32[2,1,64], index: 2, kind: input, shape index: {}]   ;;  %s12946_s3 = inlined_call_operand.vmem [shape: bf16[2,64,64], index: 3, kind: input, shape index: {}]   ;;  %s12947_s4 = inlined_call_operand.vmem [shape: f32[2,1,64], index: 4, kind: input, shape index: {}]   ;;  %s12948_s5 = inlined_call_operand.vmem [shape: bf16[2,64,64], index: 5, kind: input, shape index: {}]   ;;  %s12949_s6 = inlined_call_operand.vmem [shape: f32[2,1,64], index: 6, kind: input, shape index: {}]   ;;  %s12950_s7 = inlined_call_operand.vmem [shape: bf16[2,64,64], index: 7, kind: input, shape index: {}]   ;;  %s12951_s8 = inlined_call_operand.vmem [shape: f32[2,1,64], index: 8, kind: input, shape index: {}]   ;;  %s12952_s9 = inlined_call_operand.vmem [shape: f32[2,1,64], index: 9, kind: input, shape index: {}]   ;;  %s12953_s10 = inlined_call_operand.vmem [shape: f32[2,1,64], index: 10, kind: input, shape index: {}]   ;;  %s12954_s11 = inlined_call_operand.vmem [shape: bf16[2,64,2048], index: 11, kind: input, shape index: {}]   ;;  %s12955_s12 = inlined_call_operand.vmem [shape: f32[2,1,2048], index: 12, kind: input, shape index: {}]   ;;  %s12956_s13 = inlined_call_operand.vmem [shape: bf16[2,2048,64], index: 13, kind: input, shape index: {}]   ;;  %s12957_s14 = inlined_call_operand.vmem [shape: f32[2,1,64], index: 14, kind: input, shape index: {}]   ;;  %s12958_s15 = inlined_call_operand.vmem [shape: f32[2,1,64], index: 15, kind: input, shape index: {}]   ;;  %s12959_s16 = inlined_call_operand.vmem [shape: f32[2,1,64], index: 16, kind: input, shape index: {}]   ;;  %s12960_s17 = inlined_call_operand.vmem [shape: bf16[64,128], index: 17, kind: input, shape index: {}]   ;;  %s12961_s18 = inlined_call_operand.vmem [shape: f32[1,128], index: 18, kind: input, shape index: {}]   ;;  %s12962_s19 = inlined_call_operand.vmem [shape: f32[4,64], index: 19, kind: input, shape index: {}]   ;;  %s12963_s20 = inlined_call_operand.hbm [shape: f32[32,128], index: 20, kind: output, shape index: {}]  }
   0x1   :  { %12978 = sst [smem:[#allocation12_spill]] %s12943_s0 }
   0x2   :  { %12979 = sst [smem:[#allocation13_spill]] %s12944_s1 }
   0x3   :  { %12980 = sst [smem:[#allocation14_spill]] %s12945_s2 }
   0x4   :  { %12981 = sst [smem:[#allocation15_spill]] %s12946_s3 }
   0x5   :  { %12982 = sst [smem:[#allocation16_spill]] %s12947_s4 }
   0x6   :  { %12983 = sst [smem:[#allocation17_spill]] %s12948_s5 }
   0x7   :  { %12984 = sst [smem:[#allocation18_spill]] %s12949_s6 }
   0x8   :  { %12985 = sst [smem:[#allocation19_spill]] %s12963_s20 }
   0x9   :  { %25 = vsyncpa [#allocation3], 0 }
   0xa   :  { %27 = vsyncpa [#allocation3 + $0x1], 0  ;;  %s10916_s1 = smov 0   ;;  %s10918_s22 = smov 0  }
   0xb   :  { %s10920_s23 = smov 0   ;;  %s10922_s24 = smov 0  }
   0xc LB: > { %12986 = sst [smem:[#allocation5_spill]] %s10791_s1  ;;  %s10937_s2 = sadd.s32 4294967295, %s10803_s24   ;;  %s10803_s24 = sphi %s10922_s24, %s13007_s24   ;;  %s10799_s23 = sphi %s10920_s23, %s13009_s23   ;;  %s10795_s22 = sphi %s10918_s22, %s13011_s22   ;;  %s10791_s1 = sphi %s10916_s1, %s13010_s1  }
   0xd   : > { %12987 = sst [smem:[#allocation6_spill]] %s10799_s23  ;;  %s8682_s25 = sadd.s32 4294967294, %s10803_s24  }
   0xe   : > { %12988 = sst [smem:[#allocation7_spill]] %s10803_s24  ;;  %s10941_s3 = sadd.s32 1, %s10803_s24  }
   0xf   : > { %12989 = sst [smem:[#allocation8_spill]] %s10941_s3  ;;  %s465_s26 = sadd.s32 1, %s10799_s23 }
  0x10   : > { %s462_s27 = ssub.s32 %s10803_s24, %s10941_s3  ;;  %p475_p0 = scmp.ne.s32.totalorder %s10799_s23, %s10795_s22 }
  0x11   : > { %p463_p1 = scmp.eq.s32.totalorder %s462_s27, 0  ;;  %p476_p2 = scmp.eq.s32.totalorder %s10937_s2, 1 }
  0x12   : > { %p481_p3 = scmp.ne.s32.totalorder %s10795_s22, %s10791_s1  ;;  %p482_p4 = scmp.eq.s32.totalorder %s8682_s25, 1 }
  0x13   : > { %s10952_s28 = scalar_select %p463_p1, %s10799_s23, %s465_s26  }
  0x14   : > { %p10954_p5 = por %p476_p2, %p475_p0  ;;  %p10958_p6 = por %p482_p4, %p481_p3 }
  0x15   : > { %12990 = sst [smem:[#allocation9_spill]] %s10952_s28  ;;  %p8685_p7 = scmp.ge.s32.totalorder %s10803_s24, 1 }
  0x16   : > { %s12991_s4 = scalar_select %p10954_p5, 1, 0 }
  0x17   : > { %s12993_s29 = scalar_select %p10958_p6, 1, 0 }
  0x18   : > { %12992 = sst [smem:[#allocation10_spill]] %s12991_s4  ;;  %p566_p8 = scmp.lt.s32.totalorder %s10803_s24, 3 }
  0x19   : > { %12994 = sst [smem:[#allocation11_spill]] %s12993_s29 }
  0x1a   : > { %p567_p9 = pnand %p8685_p7, %p566_p8 }
  0x1b   : > { %s12995_s21 = sld [smem:[#allocation15_spill]] (!%p567_p9)  ;;  %v10805_v1 = vmov (!%p567_p9), 0.0   ;;  %s12996_s27 = sld [smem:[#allocation13_spill]] (!%p567_p9)  ;;  %vm10806_vm0 = vmmov (!%p567_p9), 0   ;;  %vm675_vm1 = vcmask (!%p567_p9), 523264   ;;  %v880_v12 = vlaneseq (!%p567_p9) }
  0x1c   : > { %570 = sbr.rel (%p567_p9) target bundleno = 7130 (0x1bda), region = 100  ;;  %10043 = vmatprep.subr.bf16.mxu1 (!%p567_p9), %v10805_v1  ;;  %10031 = vmatprep.subr.bf16.mxu0 (!%p567_p9), %v10805_v1  ;;  %s8687_s30 = sshll.u32 (!%p567_p9), %s10937_s2, 1  ;;  %v11024_v15 = vld [vmem:[%s12962_s19] sm:$0xf] (!%p567_p9)  ;;  %vm1038_vm2 = vcmask (!%p567_p9), 64512  }
  0x1d   : > { %10051 = vmatprep.mubr.msk.bf16.mxu1 (!%p567_p9), %vm10806_vm0, %v10805_v1  ;;  %p625_p10 = scmp.lt.s32.totalorder (!%p567_p9), %s8687_s30, 3  ;;  %10039 = vmatprep.mubr.msk.bf16.mxu0 (!%p567_p9), %vm10806_vm0, %v10805_v1  ;;  %s12997_s20 = sld [smem:[#allocation12_spill]] (!%p567_p9)  ;;  %v11016_v13 = vshrl.u32 (!%p567_p9), %v880_v12, 7 }
  0x1e   : > { %s13000_s5 = sld [smem:[#allocation17_spill]] (!%p567_p9)  ;;  %s13001_s6 = sld [smem:[#allocation18_spill]] (!%p567_p9) }
  0x1f   : > { %v11019_v14 = vsub.s32 (!%p567_p9), 0, %v11016_v13  ;;  %v11041_v26 = vsub.s32 (!%p567_p9), 1, %v11016_v13  ;;  %s621_s24 = sand.u32 (!%p567_p9), 1, %s10795_s22   ;;  %s9569_s28 = sshll.u32 (!%p567_p9), %s10937_s2, 8 }
  0x20   : > { %s8686_s29 = sshll.u32 (!%p567_p9), %s621_s24, 4  ;;  %s13003_s25 = sld [smem:[#allocation19_spill]] (!%p567_p9) }
  0x21   : > { %v10367_v0 = vld [vmem:[%s12995_s21] sm:$0xff] (!%p567_p9)   ;;  %v10369_v3 = vld [vmem:[%s12995_s21 + $0x8] sm:$0xff] (!%p567_p9)   ;;  %v10371_v5 = vld [vmem:[%s12995_s21 + $0x10] sm:$0xff] (!%p567_p9)   ;;  %v11031_v17 = vrot.slane (!%p567_p9), %v11024_v15, %v11019_v14  ;;  %v11051_v32 = vrot.slane (!%p567_p9), %v11024_v15, %v11041_v26  ;;  %s623_s0 = scalar_lea.vmem (!%p567_p9), [#allocation2], %s8686_s29  ;;  %s12902_s29 = scalar_lea.sflag (!%p567_p9), [#allocation3], %s621_s24 }
  0x22   : > { %v10368_v2 = vld [vmem:[%s12996_s27] sm:$0xff] (!%p567_p9)   ;;  %10044 = vmatpush3.bf16.msra.mxu1 (!%p567_p9), %v10367_v0  ;;  %v10370_v4 = vld [vmem:[%s12996_s27 + $0x8] sm:$0xff] (!%p567_p9)   ;;  %v10372_v6 = vld [vmem:[%s12996_s27 + $0x10] sm:$0xff] (!%p567_p9)  }
  0x23   : > { %10032 = vmatpush3.bf16.msra.mxu0 %v10368_v2  ;;  %10045 = vmatprep.subr.bf16.mxu1 %v10805_v1  ;;  %s13013_s30 = smov (!%p625_p10, %s8687_s30), 3  ;;  %v10373_v7 = vld [vmem:[%s12995_s21 + $0x18] sm:$0xff]  }
  0x24   : > { %10033 = vmatprep.subr.bf16.mxu0 %v10805_v1  ;;  %s8688_s3 = sshll.u32 %s13013_s30, 3  ;;  %v10374_v8 = vld [vmem:[%s12996_s27 + $0x18] sm:$0xff]   ;;  %s12998_s30 = sld [smem:[#allocation16_spill]]  ;;  %v10375_v37 = vld [vmem:[%s13000_s5] sm:$0xff]   ;;  %v10376_v38 = vld [vmem:[%s13000_s5 + $0x8] sm:$0xff]  }
  0x25   : > { %s10999_s4 = scalar_lea.vmem %s12997_s20, %s8688_s3  ;;  %s12999_s3 = sld [smem:[#allocation14_spill]]  ;;  %v10377_v39 = vld [vmem:[%s13000_s5 + $0x10] sm:$0xff]   ;;  %v10378_v40 = vld [vmem:[%s13000_s5 + $0x18] sm:$0xff]  }
  0x26   : > { %10046 = vmatpush3.bf16.msra.mxu1 %v10369_v3  ;;  %v632_v9 = vld [vmem:[%s10999_s4] sm:$0xff]  ;;  %v633_v10 = vld [vmem:[%s10999_s4 + $0x8] sm:$0xff]  ;;  %s12900_s26 = scalar_lea.hbm %s13003_s25, %s9569_s28 }
  0x27   : > { %10034 = vmatpush3.bf16.msra.mxu0 %v10370_v4  ;;  %10047 = vmatprep.subr.bf16.mxu1 %v10805_v1  ;;  %v635_v11 = vpack.c.bf16 %v633_v10, %v632_v9 }
  0x28   : > { %10035 = vmatprep.subr.bf16.mxu0 %v10805_v1 }
  0x2a   : > { %10048 = vmatpush3.bf16.msra.mxu1 %v10371_v5  ;;  %v8695_v16 = vld [vmem:[%s12998_s30] ss:$0 sm:$0xff] }
  0x2b   : > { %10036 = vmatpush3.bf16.msra.mxu0 %v10372_v6  ;;  %10049 = vmatprep.subr.bf16.mxu1 %v10805_v1  ;;  %v8689_v21 = vld [vmem:[%s12999_s3] ss:$0 sm:$0xff] }
  0x2c   : > { %10037 = vmatprep.subr.bf16.mxu0 %v10805_v1 }
  0x2e   : > { %10050 = vmatpush3.bf16.msra.mxu1 %v10373_v7 }
  0x2f   : > { %10038 = vmatpush3.bf16.msra.mxu0 %v10374_v8  ;;  %10067 = vmatprep.subr.mxu1 %v10805_v1 }
  0x30   : > { %10055 = vmatprep.subr.bf16.mxu0 %v10805_v1 }
  0x31   : > { %10052 = vmatmul.mubr.msk.bf16.vlgmr.msra.gmra.mrb[0].mxu1 %vm675_vm1, %v635_v11 }
  0x32   : > { %10040 = vmatmul.mubr.msk.bf16.vlgmr.msra.gmra.mrb[0].mxu0 %vm675_vm1, %v635_v11  ;;  %10069 = vmatprep.mubr.msk.f32.mxu1 %vm10806_vm0, %v10805_v1 }
  0x33   : > { %10063 = vmatprep.mubr.msk.bf16.mxu0 %vm10806_vm0, %v10805_v1  ;;  %10056 = vmatpush3.bf16.msra.mxu0 %v10375_v37 }
  0x34   : > { %10057 = vmatprep.subr.bf16.mxu0 %v10805_v1 }
  0x37   : > { %10058 = vmatpush3.bf16.msra.mxu0 %v10376_v38 }
  0x38   : > { %10059 = vmatprep.subr.bf16.mxu0 %v10805_v1 }
  0x3b   : > { %10060 = vmatpush3.bf16.msra.mxu0 %v10377_v39 }
  0x3c   : > { %10061 = vmatprep.subr.bf16.mxu0 %v10805_v1 }
  0x3f   : > { %10062 = vmatpush3.bf16.msra.mxu0 %v10378_v40 }
  0x40   : > { %10087 = vmatprep.subr.mxu0 %v10805_v1 }
  0x42   : > { %10064 = vmatmul.mubr.msk.bf16.vlgmr.msra.gmra.mrb[4].mxu0 %vm675_vm1, %v635_v11  ;;  %v8701_v11 = vld [vmem:[%s13001_s6] ss:$0 sm:$0xff] }
  0x43   : > { %10089 = vmatprep.mubr.msk.f32.mxu0 %vm10806_vm0, %v10805_v1 }
 0x104   : > { %v793_v18 = vpop.f32.mrb[0].mxu1 }
 0x105   : > { %v11033_v19 = vadd.f32 %v8695_v16, %v793_v18  ;;  %v10053_v20 = vpop.f32.mrb[1].mxu1  ;;  %v713_v22 = vpop.f32.mrb[0].mxu0 }
 0x106   : > { %v796_v23 = vpop.f32.mrb[2].mxu1  ;;  %v10041_v24 = vpop.f32.mrb[1].mxu0  ;;  %v11043_v29 = vadd.f32 %v8689_v21, %v713_v22 }
 0x107   : > { %v884_v25 = vmul.f32 %v11031_v17, %v11033_v19  ;;  %v10054_v27 = vpop.f32.mrb[3].mxu1  ;;  %v716_v28 = vpop.f32.mrb[2].mxu0  ;;  %v11045_v30 = vadd.f32 %v8695_v16, %v796_v23  ;;  %v1067_v35 = vmul.f32 %v11051_v32, %v11033_v19 }
 0x108   : > { %v10042_v31 = vpop.f32.mrb[3].mxu0  ;;  %v11060_v34 = vadd.f32 %v8689_v21, %v716_v28 }
 0x109   : > { %10068 = vmatpush3.xpose.msk.msra.mxu1 %vm675_vm1, %v884_v25  ;;  %v885_v33 = vmul.f32 %v11031_v17, %v11045_v30  ;;  %v1068_v36 = vmul.f32 %v11051_v32, %v11045_v30 }
 0x10a   : > { %10072 = vmatprep.subr.mxu1 %v10805_v1 }
 0x10c   : > { %10070 = vmatmul.mubr.msk.f32.vlgmr.msra.gmra.mrb[4].mxu1 %vm675_vm1, %v11043_v29 }
 0x10d   : > { %10073 = vmatpush3.xpose.msk.msra.mxu1 %vm675_vm1, %v885_v33  ;;  %10074 = vmatprep.mubr.msk.f32.mxu1 %vm10806_vm0, %v10805_v1 }
 0x10e   : > { %10077 = vmatprep.subr.mxu1 %v10805_v1 }
 0x110   : > { %10075 = vmatmul.mubr.msk.f32.vlgmr.msra.gmra.mrb[6].mxu1 %vm675_vm1, %v11060_v34 }
 0x111   : > { %10078 = vmatpush3.xpose.msk.msra.mxu1 %vm675_vm1, %v1067_v35  ;;  %10079 = vmatprep.mubr.msk.f32.mxu1 %vm10806_vm0, %v10805_v1 }
 0x112   : > { %10082 = vmatprep.subr.mxu1 %v10805_v1 }
 0x114   : > { %10080 = vmatmul.mubr.msk.f32.vlgmr.msra.gmra.mrb[8].mxu1 %vm675_vm1, %v11043_v29 }
 0x115   : > { %10083 = vmatpush3.xpose.msk.msra.mxu1 %vm675_vm1, %v1068_v36  ;;  %10084 = vmatprep.mubr.msk.f32.mxu1 %vm10806_vm0, %v10805_v1  ;;  %v873_v10 = vpop.f32.mrb[4].mxu0  ;;  %v11126_v36 = vsub.s32 2, %v11016_v13 }
 0x116   : > { %10092 = vmatprep.subr.mxu1 %v10805_v1  ;;  %v10065_v12 = vpop.f32.mrb[5].mxu0  ;;  %v11113_v16 = vadd.f32 %v8701_v11, %v873_v10 }
 0x117   : > { %v876_v18 = vpop.f32.mrb[6].mxu0  ;;  %v11134_v40 = vrot.slane %v11024_v15, %v11126_v36 }
 0x118   : > { %10085 = vmatmul.mubr.msk.f32.vlgmr.msra.gmra.mrb[10].mxu1 %vm675_vm1, %v11060_v34  ;;  %v10066_v20 = vpop.f32.mrb[7].mxu0  ;;  %v11115_v21 = vadd.f32 %v8701_v11, %v876_v18  ;;  %v1237_v22 = vmul.f32 %v11051_v32, %v11113_v16  ;;  %v1061_v33 = vmul.f32 %v11031_v17, %v11113_v16 }
 0x119   : > { %10094 = vmatprep.mubr.msk.f32.mxu1 %vm10806_vm0, %v10805_v1 }
 0x11a   : > { %10088 = vmatpush3.msra.mxu0 %v1237_v22  ;;  %v1238_v23 = vmul.f32 %v11051_v32, %v11115_v21 }
 0x11b   : > { %10097 = vmatprep.subr.mxu0 %v10805_v1 }
 0x11c   : > { %10093 = vmatpush3.msra.mxu1 %v1238_v23 }
 0x11d   : > { %10102 = vmatprep.subr.mxu1 %v10805_v1 }
 0x1df   : > { %v958_v41 = vpop.f32.mrb[4].mxu1 }
 0x1e0   : > { %v10071_v42 = vpop.f32.mrb[5].mxu1  ;;  %v1039_v43 = vsel %vm1038_vm2, %v958_v41, -inf }
 0x1e1   : > { %1040 = vmax.xlane.f32.xlu1 %v1039_v43 }
 0x1e3   : > { %v1034_v44 = vpop.f32.mrb[6].mxu1 }
 0x1e4   : > { %v10076_v45 = vpop.f32.mrb[7].mxu1  ;;  %v1042_v46 = vsel %vm1038_vm2, %v1034_v44, -inf }
 0x1e5   : > { %1043 = vmax.xlane.f32.xlu1 %v1042_v46  ;;  %v1536_v46 = vmul.f32 %v11134_v40, %v11045_v30 }
 0x1e7   : > { %v1138_v47 = vpop.f32.mrb[8].mxu1 }
 0x1e8   : > { %v10081_v48 = vpop.f32.mrb[9].mxu1  ;;  %v1215_v49 = vsel %vm1038_vm2, %v1138_v47, -inf }
 0x1e9   : > { %1216 = vmax.xlane.f32.xlu0 %v1215_v49  ;;  %v1706_v48 = vmul.f32 %v11134_v40, %v11115_v21 }
 0x1eb   : > { %v1211_v50 = vpop.f32.mrb[10].mxu1 }
 0x1ec   : > { %v10086_v51 = vpop.f32.mrb[11].mxu1  ;;  %v1218_v52 = vsel %vm1038_vm2, %v1211_v50, -inf }
 0x1ed   : > { %1219 = vmax.xlane.f32.xlu0 %v1218_v52 }
 0x26e   : > { %v1041_v53 = vpop.xlane.xlu1 %1040 }
 0x26f   : > { %v1045_v54 = vsub.f32 %v958_v41, %v1041_v53  ;;  %v1062_v41 = vmul.f32 %v11031_v17, %v11115_v21 }
 0x271   : > { %v1047_v58 = vmul.f32 1.442695, %v1045_v54 }
 0x272   : > { %v1044_v55 = vpop.xlane.xlu1 %1043 }
 0x273   : > { %v1046_v59 = vsub.f32 %v1034_v44, %v1044_v55  ;;  %v1535_v44 = vmul.f32 %v11134_v40, %v11033_v19 }
 0x275   : > { %v1049_v63 = vmul.f32 1.442695, %v1046_v59 }
 0x276   : > { %v1217_v56 = vpop.xlane.xlu0 %1216 }
 0x277   : > { %v1221_v57 = vsub.f32 %v1138_v47, %v1217_v56  ;;  %v1705_v47 = vmul.f32 %v11134_v40, %v11113_v16 }
 0x279   : > { %v1223_v60 = vmul.f32 1.442695, %v1221_v57 }
 0x27a   : > { %v1220_v61 = vpop.xlane.xlu0 %1219 }
 0x27b   : > { %10659 = vpow2.f32 %v1223_v60  ;;  %v1222_v62 = vsub.f32 %v1211_v50, %v1220_v61 }
 0x27c   : > { %10661 = vpow2.f32 %v1047_v58 }
 0x27d   : > { %v1225_v0 = vmul.f32 1.442695, %v1222_v62 }
 0x27f   : > { %10663 = vpow2.f32 %v1225_v0 }
 0x280   : > { %10665 = vpow2.f32 %v1049_v63 }
 0x285   : > { %v10660_v2 = vpop.eup %10659 }
 0x286   : > { %v1227_v3 = vsel %vm1038_vm2, %v10660_v2, 0.0  ;;  %v10662_v4 = vpop.eup %10661 }
 0x287   : > { %1228 = vadd.xlane.f32.xlu0 %v1227_v3  ;;  %v1051_v6 = vsel %vm1038_vm2, %v10662_v4, 0.0 }
 0x289   : > { %v10664_v5 = vpop.eup %10663 }
 0x28a   : > { %v1230_v7 = vsel %vm1038_vm2, %v10664_v5, 0.0  ;;  %v10666_v8 = vpop.eup %10665 }
 0x28b   : > { %1052 = vadd.xlane.f32.xlu0 %v1051_v6  ;;  %1231 = vadd.xlane.f32.xlu1 %v1230_v7  ;;  %v1054_v9 = vsel %vm1038_vm2, %v10666_v8, 0.0 }
 0x28f   : > { %1055 = vadd.xlane.f32.xlu1 %v1054_v9 }
 0x314   : > { %v1229_v24 = vpop.xlane.xlu0 %1228 }
 0x315   : > { %10667 = vrcp.f32 %v1229_v24 }
 0x318   : > { %v1232_v25 = vpop.xlane.xlu1 %1231  ;;  %v1053_v27 = vpop.xlane.xlu0 %1052 }
 0x319   : > { %10669 = vrcp.f32 %v1232_v25 }
 0x31a   : > { %10671 = vrcp.f32 %v1053_v27 }
 0x31c   : > { %v1056_v28 = vpop.xlane.xlu1 %1055 }
 0x31d   : > { %10673 = vrcp.f32 %v1056_v28 }
 0x31f   : > { %v10668_v31 = vpop.eup %10667 }
 0x320   : > { %v1235_v35 = vmul.f32 %v10668_v31, %v10660_v2 }
 0x322   : > { %10090 = vmatmul.mubr.msk.f32.vlgmr.msra.gmra.mrb[8].mxu0 %vm1038_vm2, %v1235_v35 }
 0x323   : > { %v10670_v37 = vpop.eup %10669  ;;  %10098 = vmatpush3.msra.mxu0 %v1061_v33  ;;  %10099 = vmatprep.mubr.msk.f32.mxu0 %vm10806_vm0, %v10805_v1 }
 0x324   : > { %v1236_v38 = vmul.f32 %v10670_v37, %v10664_v5  ;;  %10107 = vmatprep.subr.mxu0 %v10805_v1  ;;  %v10672_v39 = vpop.eup %10671 }
 0x325   : > { %v1059_v42 = vmul.f32 %v10672_v39, %v10662_v4  ;;  %v11175_v4 = vsub.s32 3, %v11016_v13  ;;  %v10379_v39 = vld [vmem:[%s12950_s7] sm:$0xff]  }
 0x326   : > { %10095 = vmatmul.mubr.msk.f32.vlgmr.msra.gmra.mrb[12].mxu1 %vm1038_vm2, %v1236_v38 }
 0x327   : > { %10103 = vmatpush3.msra.mxu1 %v1062_v41  ;;  %10104 = vmatprep.mubr.msk.f32.mxu1 %vm10806_vm0, %v10805_v1  ;;  %v10674_v43 = vpop.eup %10673  ;;  %v11179_v5 = vrot.slane %v11024_v15, %v11175_v4 }
 0x328   : > { %10112 = vmatprep.subr.mxu1 %v10805_v1  ;;  %v1060_v45 = vmul.f32 %v10674_v43, %v10666_v8  ;;  %v10380_v43 = vld [vmem:[%s12950_s7 + $0x8] sm:$0xff]  }
 0x329   : > { %v1859_v8 = vmul.f32 %v11179_v5, %v11033_v19  ;;  %v1860_v15 = vmul.f32 %v11179_v5, %v11045_v30  ;;  %v2029_v11 = vmul.f32 %v11179_v5, %v11113_v16  ;;  %v2030_v19 = vmul.f32 %v11179_v5, %v11115_v21 }
 0x32a   : > { %10100 = vmatmul.mubr.msk.f32.vlgmr.msra.gmra.mrb[8].mxu0 %vm1038_vm2, %v1059_v42 }
 0x32b   : > { %10108 = vmatpush3.xpose.msk.msra.mxu0 %vm675_vm1, %v1535_v44  ;;  %10109 = vmatprep.mubr.msk.f32.mxu0 %vm10806_vm0, %v10805_v1 }
 0x32c   : > { %10117 = vmatprep.subr.mxu0 %v10805_v1 }
 0x32e   : > { %10105 = vmatmul.mubr.msk.f32.vlgmr.msra.gmra.mrb[12].mxu1 %vm1038_vm2, %v1060_v45  ;;  %10110 = vmatmul.mubr.msk.f32.vlgmr.msra.gmra.mrb[10].mxu0 %vm675_vm1, %v11043_v29  ;;  %v10381_v45 = vld [vmem:[%s12950_s7 + $0x10] sm:$0xff]  }
 0x32f   : > { %10113 = vmatpush3.xpose.msk.msra.mxu1 %vm675_vm1, %v1536_v46  ;;  %10118 = vmatpush3.msra.mxu0 %v1705_v47  ;;  %v10382_v46 = vld [vmem:[%s12950_s7 + $0x18] sm:$0xff]  }
 0x330   : > { %10114 = vmatprep.mubr.msk.f32.mxu1 %vm10806_vm0, %v10805_v1  ;;  %10122 = vmatprep.subr.mxu1 %v10805_v1 }
 0x331   : > { %10119 = vmatprep.mubr.msk.f32.mxu0 %vm10806_vm0, %v10805_v1  ;;  %10127 = vmatprep.subr.mxu0 %v10805_v1 }
 0x332   : > { %10115 = vmatmul.mubr.msk.f32.vlgmr.msra.gmra.mrb[14].mxu1 %vm675_vm1, %v11060_v34 }
 0x333   : > { %10123 = vmatpush3.msra.mxu1 %v1706_v48  ;;  %10124 = vmatprep.mubr.msk.f32.mxu1 %vm10806_vm0, %v10805_v1 }
 0x334   : > { %10132 = vmatprep.subr.mxu1 %v10805_v1 }
 0x401   : > { %v1606_v49 = vpop.f32.mrb[10].mxu0 }
 0x402   : > { %v10111_v50 = vpop.f32.mrb[11].mxu0  ;;  %v1683_v51 = vsel %vm1038_vm2, %v1606_v49, -inf }
 0x403   : > { %1684 = vmax.xlane.f32.xlu0 %v1683_v51 }
 0x405   : > { %v1679_v52 = vpop.f32.mrb[14].mxu1 }
 0x406   : > { %v10116_v53 = vpop.f32.mrb[15].mxu1  ;;  %v1686_v54 = vsel %vm1038_vm2, %v1679_v52, -inf }
 0x407   : > { %1687 = vmax.xlane.f32.xlu1 %v1686_v54 }
 0x490   : > { %v1685_v55 = vpop.xlane.xlu0 %1684 }
 0x491   : > { %v1689_v56 = vsub.f32 %v1606_v49, %v1685_v55 }
 0x493   : > { %v1691_v57 = vmul.f32 1.442695, %v1689_v56 }
 0x494   : > { %v1688_v58 = vpop.xlane.xlu1 %1687 }
 0x495   : > { %10675 = vpow2.f32 %v1691_v57  ;;  %v1690_v59 = vsub.f32 %v1679_v52, %v1688_v58  ;;  %v8731_v52 = vld [vmem:[%s12951_s8] ss:$0 sm:$0xff] }
 0x497   : > { %v1693_v60 = vmul.f32 1.442695, %v1690_v59  ;;  %v10739_v59 = vld [vmem:[%s10999_s4] sm:$0xff] }
 0x499   : > { %10677 = vpow2.f32 %v1693_v60 }
 0x49f   : > { %v10676_v61 = vpop.eup %10675 }
 0x4a0   : > { %v1695_v62 = vsel %vm1038_vm2, %v10676_v61, 0.0 }
 0x4a1   : > { %1696 = vadd.xlane.f32.xlu0 %v1695_v62  ;;  %v10740_v62 = vld [vmem:[%s10999_s4 + $0x8] sm:$0xff]  ;;  %s8620_s4 = sshll.u32 %s623_s0, 4  ;;  %s12895_s4 = int_to_ptr.vmem [resolvable:$true] %s8620_s4 }
 0x4a2   : > { %s10741_s2 = scalar_lea.vmem %s12895_s4, 256 }
 0x4a3   : > { %v10678_v63 = vpop.eup %10677  ;;  %p10742_p11 = scmp.ne.s32.totalorder %s12895_s4, %s10741_s2 }
 0x4a4   : > { %v1698_v0 = vsel %vm1038_vm2, %v10678_v63, 0.0 }
 0x4a5   : > { %1699 = vadd.xlane.f32.xlu1 %v1698_v0  ;;  %p10743_p12 = pnand %p10742_p11, %p10954_p5 }
 0x4a7   : > { %p10744_p13 = pneg %p10743_p12 }
 0x52e   : > { %v1697_v2 = vpop.xlane.xlu0 %1696 }
 0x52f   : > { %10679 = vrcp.f32 %v1697_v2 }
 0x532   : > { %v1700_v3 = vpop.xlane.xlu1 %1699 }
 0x533   : > { %10681 = vrcp.f32 %v1700_v3 }
 0x539   : > { %v10680_v6 = vpop.eup %10679 }
 0x53a   : > { %v1703_v7 = vmul.f32 %v10680_v6, %v10676_v61 }
 0x53c   : > { %10120 = vmatmul.mubr.msk.f32.vlgmr.msra.gmra.mrb[8].mxu0 %vm1038_vm2, %v1703_v7 }
 0x53d   : > { %v10682_v9 = vpop.eup %10681  ;;  %10128 = vmatpush3.xpose.msk.msra.mxu0 %vm675_vm1, %v1859_v8  ;;  %10129 = vmatprep.mubr.msk.f32.mxu0 %vm10806_vm0, %v10805_v1 }
 0x53e   : > { %v1704_v10 = vmul.f32 %v10682_v9, %v10678_v63  ;;  %10137 = vmatprep.subr.mxu0 %v10805_v1 }
 0x540   : > { %10125 = vmatmul.mubr.msk.f32.vlgmr.msra.gmra.mrb[12].mxu1 %vm1038_vm2, %v1704_v10  ;;  %10130 = vmatmul.mubr.msk.f32.vlgmr.msra.gmra.mrb[12].mxu0 %vm675_vm1, %v11043_v29 }
 0x541   : > { %10133 = vmatpush3.xpose.msk.msra.mxu1 %vm675_vm1, %v1860_v15  ;;  %10138 = vmatpush3.msra.mxu0 %v2029_v11 }
 0x542   : > { %10134 = vmatprep.mubr.msk.f32.mxu1 %vm10806_vm0, %v10805_v1  ;;  %10142 = vmatprep.subr.mxu1 %v10805_v1 }
 0x543   : > { %10139 = vmatprep.mubr.msk.f32.mxu0 %vm10806_vm0, %v10805_v1  ;;  %10147 = vmatprep.subr.bf16.mxu0 %v10805_v1 }
 0x544   : > { %10135 = vmatmul.mubr.msk.f32.vlgmr.msra.gmra.mrb[16].mxu1 %vm675_vm1, %v11060_v34 }
 0x545   : > { %10143 = vmatpush3.msra.mxu1 %v2030_v19  ;;  %10144 = vmatprep.mubr.msk.f32.mxu1 %vm10806_vm0, %v10805_v1 }
 0x613   : > { %v1930_v29 = vpop.f32.mrb[12].mxu0 }
 0x614   : > { %v10131_v30 = vpop.f32.mrb[13].mxu0  ;;  %v2007_v12 = vsel %vm1038_vm2, %v1930_v29, -inf }
 0x615   : > { %2008 = vmax.xlane.f32.xlu0 %v2007_v12  ;;  %v2319_v30 = vld [vmem:[%s12954_s11 + $0x40] sm:$0xff]  ;;  %v2312_v12 = vld [vmem:[%s12954_s11 + $0x8] sm:$0xff] }
 0x617   : > { %v2003_v16 = vpop.f32.mrb[16].mxu1 }
 0x618   : > { %v10136_v18 = vpop.f32.mrb[17].mxu1  ;;  %v2010_v20 = vsel %vm1038_vm2, %v2003_v16, -inf }
 0x619   : > { %2011 = vmax.xlane.f32.xlu1 %v2010_v20  ;;  %v2320_v18 = vld [vmem:[%s12954_s11 + $0x48] sm:$0xff] }
 0x6a2   : > { %v2009_v21 = vpop.xlane.xlu0 %2008 }
 0x6a3   : > { %v2013_v22 = vsub.f32 %v1930_v29, %v2009_v21  ;;  %v2311_v29 = vld [vmem:[%s12954_s11] sm:$0xff]  ;;  %v8741_v21 = vcombine.low %v2312_v12, %v2320_v18 }
 0x6a4   : > { %v8739_v20 = vcombine.low %v2311_v29, %v2319_v30 }
 0x6a5   : > { %v2015_v23 = vmul.f32 1.442695, %v2013_v22  ;;  %v8742_v22 = vcombine.high %v2312_v12, %v2320_v18  ;;  %v2337_v18 = vld [vmem:[%s12954_s11 + $0xd0] sm:$0xff] }
 0x6a6   : > { %v2012_v24 = vpop.xlane.xlu1 %2011 }
 0x6a7   : > { %10683 = vpow2.f32 %v2015_v23  ;;  %v2014_v34 = vsub.f32 %v2003_v16, %v2012_v24  ;;  %v8740_v16 = vcombine.high %v2311_v29, %v2319_v30  ;;  %v2327_v23 = vld [vmem:[%s12954_s11 + $0x80] sm:$0xff] }
 0x6a8   : > { %v2335_v24 = vld [vmem:[%s12954_s11 + $0xc0] sm:$0xff] }
 0x6a9   : > { %v2017_v25 = vmul.f32 1.442695, %v2014_v34  ;;  %2782 = vmatprep.subr.bf16.mxu1 %v8740_v16  ;;  %v2328_v34 = vld [vmem:[%s12954_s11 + $0x88] sm:$0xff]  ;;  %v8738_v30 = vld [vmem:[%s12953_s10] ss:$0 sm:$0xff]  ;;  %v2329_v16 = vld [vmem:[%s12954_s11 + $0x90] sm:$0xff] }
 0x6ab   : > { %10685 = vpow2.f32 %v2017_v25  ;;  %v8756_v25 = vcombine.high %v2327_v23, %v2335_v24 }
 0x6b1   : > { %v10684_v27 = vpop.eup %10683 }
 0x6b2   : > { %v2019_v28 = vsel %vm1038_vm2, %v10684_v27, 0.0 }
 0x6b3   : > { %2020 = vadd.xlane.f32.xlu0 %v2019_v28  ;;  %v8755_v28 = vcombine.low %v2327_v23, %v2335_v24  ;;  %v8760_v23 = vcombine.high %v2329_v16, %v2337_v18 }
 0x6b5   : > { %v10686_v31 = vpop.eup %10685 }
 0x6b6   : > { %v2022_v33 = vsel %vm1038_vm2, %v10686_v31, 0.0 }
 0x6b7   : > { %2023 = vadd.xlane.f32.xlu1 %v2022_v33 }
 0x740   : > { %v2021_v35 = vpop.xlane.xlu0 %2020 }
 0x741   : > { %10687 = vrcp.f32 %v2021_v35  ;;  %v2343_v35 = vld [vmem:[%s12954_s11 + $0x100] sm:$0xff] }
 0x744   : > { %v2024_v37 = vpop.xlane.xlu1 %2023 }
 0x745   : > { %10689 = vrcp.f32 %v2024_v37  ;;  %v2351_v37 = vld [vmem:[%s12954_s11 + $0x140] sm:$0xff] }
 0x74b   : > { %v10688_v38 = vpop.eup %10687 }
 0x74c   : > { %v2027_v41 = vmul.f32 %v10688_v38, %v10684_v27  ;;  %v2336_v27 = vld [vmem:[%s12954_s11 + $0xc8] sm:$0xff] }
 0x74d   : > { %v8758_v33 = vcombine.high %v2328_v34, %v2336_v27  ;;  %v2344_v38 = vld [vmem:[%s12954_s11 + $0x108] sm:$0xff] }
 0x74e   : > { %10140 = vmatmul.mubr.msk.f32.vlgmr.msra.gmra.mrb[8].mxu0 %vm1038_vm2, %v2027_v41  ;;  %v2352_v41 = vld [vmem:[%s12954_s11 + $0x148] sm:$0xff] }
 0x74f   : > { %v10690_v42 = vpop.eup %10689  ;;  %10148 = vmatpush3.bf16.msra.mxu0 %v10379_v39  ;;  %10155 = vmatprep.mubr.msk.bf16.mxu0 %vm10806_vm0, %v10805_v1  ;;  %v8772_v39 = vcombine.high %v2343_v35, %v2351_v37 }
 0x750   : > { %v2028_v44 = vmul.f32 %v10690_v42, %v10686_v31  ;;  %10149 = vmatprep.subr.bf16.mxu0 %v10805_v1  ;;  %v8757_v31 = vcombine.low %v2328_v34, %v2336_v27  ;;  %v8771_v42 = vcombine.low %v2343_v35, %v2351_v37  ;;  %v2345_v34 = vld [vmem:[%s12954_s11 + $0x110] sm:$0xff]  ;;  %v2346_v27 = vld [vmem:[%s12954_s11 + $0x118] sm:$0xff] }
 0x752   : > { %10145 = vmatmul.mubr.msk.f32.vlgmr.msra.gmra.mrb[12].mxu1 %vm1038_vm2, %v2028_v44  ;;  %v8774_v44 = vcombine.high %v2344_v38, %v2352_v41 }
 0x753   : > { %10150 = vmatpush3.bf16.msra.mxu0 %v10380_v43  ;;  %2783 = vmatpush1.bf16.msra.mxu1 %v8739_v20  ;;  %v8773_v43 = vcombine.low %v2344_v38, %v2352_v41  ;;  %v2361_v38 = vld [vmem:[%s12954_s11 + $0x190] sm:$0xff]  ;;  %v2362_v41 = vld [vmem:[%s12954_s11 + $0x198] sm:$0xff] }
 0x754   : > { %10151 = vmatprep.subr.bf16.mxu0 %v10805_v1  ;;  %2784 = vmatprep.subr.bf16.mxu1 %v8756_v25  ;;  %v2353_v25 = vld [vmem:[%s12954_s11 + $0x150] sm:$0xff] }
 0x755   : > { %v8776_v35 = vcombine.high %v2345_v34, %v2353_v25 }
 0x757   : > { %10152 = vmatpush3.bf16.msra.mxu0 %v10381_v45  ;;  %2785 = vmatpush1.bf16.msra.mxu1 %v8755_v28  ;;  %v2359_v45 = vld [vmem:[%s12954_s11 + $0x180] sm:$0xff]  ;;  %v2354_v28 = vld [vmem:[%s12954_s11 + $0x158] sm:$0xff] }
 0x758   : > { %10153 = vmatprep.subr.bf16.mxu0 %v10805_v1  ;;  %2786 = vmatprep.subr.bf16.mxu1 %v8772_v39  ;;  %v8778_v37 = vcombine.high %v2346_v27, %v2354_v28  ;;  %v2369_v39 = vld [vmem:[%s12954_s11 + $0x1d0] sm:$0xff] }
 0x75b   : > { %10154 = vmatpush3.bf16.msra.mxu0 %v10382_v46  ;;  %2787 = vmatpush1.bf16.msra.mxu1 %v8771_v42  ;;  %v2367_v46 = vld [vmem:[%s12954_s11 + $0x1c0] sm:$0xff]  ;;  %v2370_v42 = vld [vmem:[%s12954_s11 + $0x1d8] sm:$0xff] }
 0x75c   : > { %2825 = vmatprep.subr.bf16.mxu0 %v8742_v22 }
 0x821   : > { %v2100_v47 = vpop.f32.mrb[8].mxu0 }
 0x822   : > { %v10141_v48 = vpop.f32.mrb[9].mxu0 }
 0x823   : > { %v8788_v48 = vcombine.high %v2359_v45, %v2367_v46 }
 0x825   : > { %v2173_v49 = vpop.f32.mrb[12].mxu1  ;;  %2788 = vmatprep.subr.bf16.mxu1 %v8788_v48  ;;  %v2323_v48 = vld [vmem:[%s12954_s11 + $0x60] sm:$0xff] }
 0x826   : > { %v2179_v50 = vpack.c.bf16 %v2173_v49, %v2100_v47  ;;  %v10146_v51 = vpop.f32.mrb[13].mxu1  ;;  %v2360_v47 = vld [vmem:[%s12954_s11 + $0x188] sm:$0xff] }
 0x827   : > { %v2368_v49 = vld [vmem:[%s12954_s11 + $0x1c8] sm:$0xff] }
 0x828   : > { %10156 = vmatmul.mubr.msk.bf16.vlgmr.msra.gmra.mrb[16].mxu0 %vm675_vm1, %v2179_v50  ;;  %v8787_v50 = vcombine.low %v2359_v45, %v2367_v46  ;;  %v8789_v51 = vcombine.low %v2360_v47, %v2368_v49  ;;  %v8792_v45 = vcombine.high %v2361_v38, %v2369_v39  ;;  %v8794_v46 = vcombine.high %v2362_v41, %v2370_v42 }
 0x829   : > { %2826 = vmatpush1.bf16.msra.mxu0 %v8741_v21 }
 0x82a   : > { %2827 = vmatprep.subr.bf16.mxu0 %v8758_v33  ;;  %2789 = vmatpush1.bf16.msra.mxu1 %v8787_v50  ;;  %v2324_v50 = vld [vmem:[%s12954_s11 + $0x68] sm:$0xff] }
 0x82d   : > { %2828 = vmatpush1.bf16.msra.mxu0 %v8757_v31  ;;  %v8759_v31 = vcombine.low %v2329_v16, %v2337_v18 }
 0x82e   : > { %2829 = vmatprep.subr.bf16.mxu0 %v8774_v44  ;;  %v8777_v44 = vcombine.low %v2346_v27, %v2354_v28 }
 0x831   : > { %2830 = vmatpush1.bf16.msra.mxu0 %v8773_v43  ;;  %v8775_v43 = vcombine.low %v2345_v34, %v2353_v25  ;;  %v2318_v34 = vld [vmem:[%s12954_s11 + $0x38] sm:$0xff] }
 0x832   : > { %v2326_v25 = vld [vmem:[%s12954_s11 + $0x78] sm:$0xff] }
 0x8fb   : > { %v2256_v53 = vpop.f32.mrb[16].mxu0 }
 0x8fc   : > { %v2257_v54 = vadd.f32 %v8731_v52, %v2256_v53  ;;  %v10157_v55 = vpop.f32.mrb[17].mxu0  ;;  %v2313_v53 = vld [vmem:[%s12954_s11 + $0x10] sm:$0xff] }
 0x8fd   : > { %v2259_v56 = vpop.f32.mrb[18].mxu0  ;;  %v2314_v55 = vld [vmem:[%s12954_s11 + $0x18] sm:$0xff] }
 0x8fe   : > { %v2260_v57 = vadd.f32 %v8731_v52, %v2259_v56  ;;  %v10158_v58 = vpop.f32.mrb[19].mxu0  ;;  %v2263_v60 = vadd.f32 %v10739_v59, %v2257_v54  ;;  %v8790_v52 = vcombine.high %v2360_v47, %v2368_v49  ;;  %v2321_v54 = vld [vmem:[%s12954_s11 + $0x50] sm:$0xff]  ;;  %v10807_v59 = vmov 0   ;;  %v2315_v47 = vld [vmem:[%s12954_s11 + $0x20] sm:$0xff]  ;;  %v2316_v49 = vld [vmem:[%s12954_s11 + $0x28] sm:$0xff] }
 0x8ff   : > { %v8743_v56 = vcombine.low %v2313_v53, %v2321_v54  ;;  %v2322_v58 = vld [vmem:[%s12954_s11 + $0x58] sm:$0xff]  ;;  %2814 = vmatprep.mubr.bf16.mxu1 %v10807_v59  ;;  %2857 = vmatprep.mubr.bf16.mxu0 %v10807_v59 }
 0x900   : > { %v2265_v61 = vsel %vm675_vm1, %v2263_v60, 0.0  ;;  %v2264_v63 = vadd.f32 %v10740_v62, %v2260_v57  ;;  %2831 = vmatprep.subr.bf16.mxu0 %v8790_v52  ;;  %v8744_v57 = vcombine.high %v2313_v53, %v2321_v54  ;;  %v8793_v52 = vcombine.low %v2362_v41, %v2370_v42 }
 0x901   : > { %2266 = vadd.xlane.f32.xlu0 %v2265_v61  ;;  %2832 = vmatpush1.bf16.msra.mxu0 %v8789_v51  ;;  %v8746_v61 = vcombine.high %v2314_v55, %v2322_v58  ;;  %v8791_v51 = vcombine.low %v2361_v38, %v2369_v39  ;;  %v8748_v53 = vcombine.high %v2315_v47, %v2323_v48  ;;  %v2334_v38 = vld [vmem:[%s12954_s11 + $0xb8] sm:$0xff] }
 0x902   : > { %v2268_v0 = vsel %vm675_vm1, %v2264_v63, 0.0  ;;  %2868 = vmatprep.subr.bf16.mxu1 %v8744_v57  ;;  %v8750_v54 = vcombine.high %v2316_v49, %v2324_v50  ;;  %v2332_v57 = vld [vmem:[%s12954_s11 + $0xa8] sm:$0xff]  ;;  %v2342_v39 = vld [vmem:[%s12954_s11 + $0xf8] sm:$0xff]  ;;  %v8753_v42 = vcombine.low %v2318_v34, %v2326_v25 }
 0x903   : > { %2269 = vadd.xlane.f32.xlu1 %v2268_v0  ;;  %2911 = vmatprep.subr.bf16.mxu0 %v8746_v61  ;;  %v8749_v61 = vcombine.low %v2316_v49, %v2324_v50  ;;  %v8769_v50 = vcombine.low %v2334_v38, %v2342_v39 }
 0x98e   : > { %v2267_v2 = vpop.xlane.xlu0 %2266 }
 0x98f   : > { %v2272_v3 = vmul.f32 0.015625, %v2267_v2 }
 0x990   : > { %v2270_v6 = vpop.xlane.xlu1 %2269 }
 0x991   : > { %v11239_v7 = vsub.f32 %v2263_v60, %v2272_v3  ;;  %v2273_v8 = vmul.f32 0.015625, %v2270_v6  ;;  %v8745_v60 = vcombine.low %v2314_v55, %v2322_v58  ;;  %v2331_v55 = vld [vmem:[%s12954_s11 + $0xa0] sm:$0xff]  ;;  %v2340_v58 = vld [vmem:[%s12954_s11 + $0xe8] sm:$0xff] }
 0x993   : > { %v11241_v9 = vsub.f32 %v2264_v63, %v2273_v8  ;;  %v2276_v10 = vmul.f32 %v11239_v7, %v11239_v7 }
 0x995   : > { %v2278_v15 = vsel %vm675_vm1, %v2276_v10, 0.0  ;;  %v2277_v11 = vmul.f32 %v11241_v9, %v11241_v9  ;;  %v8737_v10 = vld [vmem:[%s12952_s9] ss:$0 sm:$0xff] }
 0x996   : > { %2279 = vadd.xlane.f32.xlu0 %v2278_v15 }
 0x997   : > { %v2281_v19 = vsel %vm675_vm1, %v2277_v11, 0.0 }
 0x998   : > { %2282 = vadd.xlane.f32.xlu1 %v2281_v19 }
 0xa23   : > { %v2280_v62 = vpop.xlane.xlu0 %2279 }
 0xa24   : > { %v2284_v63 = vmul.f32 0.015625, %v2280_v62 }
 0xa25   : > { %v2283_v0 = vpop.xlane.xlu1 %2282 }
 0xa26   : > { %v2286_v2 = vadd.f32 1e-05, %v2284_v63  ;;  %v2285_v3 = vmul.f32 0.015625, %v2283_v0  ;;  %v8766_v63 = vcombine.high %v2332_v57, %v2340_v58  ;;  %v2347_v0 = vld [vmem:[%s12954_s11 + $0x120] sm:$0xff] }
 0xa28   : > { %10691 = vrsqrt.f32 %v2286_v2  ;;  %v2287_v6 = vadd.f32 1e-05, %v2285_v3  ;;  %v2355_v2 = vld [vmem:[%s12954_s11 + $0x160] sm:$0xff]  ;;  %v2348_v3 = vld [vmem:[%s12954_s11 + $0x128] sm:$0xff] }
 0xa29   : > { %v8779_v16 = vcombine.low %v2347_v0, %v2355_v2 }
 0xa2a   : > { %10693 = vrsqrt.f32 %v2287_v6  ;;  %v2356_v6 = vld [vmem:[%s12954_s11 + $0x168] sm:$0xff] }
 0xa2b   : > { %v8781_v18 = vcombine.low %v2348_v3, %v2356_v6 }
 0xa32   : > { %v10692_v8 = vpop.eup %10691 }
 0xa33   : > { %v2290_v15 = vmul.f32 %v10692_v8, %v11239_v7  ;;  %v2330_v7 = vld [vmem:[%s12954_s11 + $0x98] sm:$0xff] }
 0xa34   : > { %v10694_v11 = vpop.eup %10693 }
 0xa35   : > { %v2299_v19 = vmul.f32 %v8737_v10, %v2290_v15  ;;  %v2291_v29 = vmul.f32 %v10694_v11, %v11241_v9  ;;  %v2338_v9 = vld [vmem:[%s12954_s11 + $0xd8] sm:$0xff]  ;;  %v8780_v15 = vcombine.high %v2347_v0, %v2355_v2  ;;  %v8782_v11 = vcombine.high %v2348_v3, %v2356_v6  ;;  %v10383_v0 = vld [vmem:[%s12956_s13 + $0x40] sm:$0xff]  }
 0xa36   : > { %v8762_v24 = vcombine.high %v2330_v7, %v2338_v9  ;;  %v8761_v33 = vcombine.low %v2330_v7, %v2338_v9  ;;  %v10384_v2 = vld [vmem:[%s12956_s13 + $0xc0] sm:$0xff]  }
 0xa37   : > { %v2300_v12 = vmul.f32 %v8737_v10, %v2291_v29  ;;  %v11331_v20 = vadd.f32 %v8738_v30, %v2299_v19  ;;  %v8765_v10 = vcombine.low %v2332_v57, %v2340_v58  ;;  %v2363_v19 = vld [vmem:[%s12954_s11 + $0x1a0] sm:$0xff] }
 0xa38   : > { %v2371_v29 = vld [vmem:[%s12954_s11 + $0x1e0] sm:$0xff] }
 0xa39   : > { %v11333_v21 = vadd.f32 %v8738_v30, %v2300_v12  ;;  %v2364_v30 = vld [vmem:[%s12954_s11 + $0x1a8] sm:$0xff]  ;;  %v8796_v7 = vcombine.high %v2363_v19, %v2371_v29  ;;  %v8795_v27 = vcombine.low %v2363_v19, %v2371_v29  ;;  %v10385_v3 = vld [vmem:[%s12956_s13] sm:$0xff]   ;;  %v10391_v19 = vld [vmem:[%s12956_s13 + $0x50] sm:$0xff]  }
 0xa3a   : > { %v2372_v12 = vld [vmem:[%s12954_s11 + $0x1e8] sm:$0xff]  ;;  %v10386_v6 = vld [vmem:[%s12956_s13 + $0x80] sm:$0xff]   ;;  %v10393_v29 = vld [vmem:[%s12956_s13 + $0x10] sm:$0xff]  }
 0xa3b   : > { %v11337_v22 = vpack.c.bf16 %v11333_v21, %v11331_v20  ;;  %v8798_v9 = vcombine.high %v2364_v30, %v2372_v12  ;;  %v8797_v28 = vcombine.low %v2364_v30, %v2372_v12  ;;  %v10394_v30 = vld [vmem:[%s12956_s13 + $0x90] sm:$0xff]   ;;  %v10395_v12 = vld [vmem:[%s12956_s13 + $0x58] sm:$0xff]  }
 0xa3d   : > { %8803 = vmatmul.mubr.msk.bf16.vlgmr.msra.gmra.mrb[20].mxu1 %vm675_vm1, %v11337_v22  ;;  %8804 = vmatmul.mubr.msk.bf16.vlgmr.msra.gmra.mrb[20].mxu0 %vm675_vm1, %v11337_v22 }
 0xa3e   : > { %2869 = vmatpush1.bf16.msra.mxu1 %v8743_v56  ;;  %2912 = vmatpush1.bf16.msra.mxu0 %v8745_v60  ;;  %v2339_v56 = vld [vmem:[%s12954_s11 + $0xe0] sm:$0xff]  ;;  %v8747_v60 = vcombine.low %v2315_v47, %v2323_v48  ;;  %v2350_v47 = vld [vmem:[%s12954_s11 + $0x138] sm:$0xff] }
 0xa3f   : > { %2870 = vmatprep.subr.bf16.mxu1 %v8760_v23  ;;  %2913 = vmatprep.subr.bf16.mxu0 %v8762_v24  ;;  %v8764_v62 = vcombine.high %v2331_v55, %v2339_v56  ;;  %v8763_v8 = vcombine.low %v2331_v55, %v2339_v56  ;;  %v2317_v23 = vld [vmem:[%s12954_s11 + $0x30] sm:$0xff]  ;;  %v2358_v48 = vld [vmem:[%s12954_s11 + $0x178] sm:$0xff] }
 0xa40   : > { %2900 = vmatprep.mubr.bf16.mxu1 %v10807_v59  ;;  %2943 = vmatprep.mubr.bf16.mxu0 %v10807_v59  ;;  %v2325_v24 = vld [vmem:[%s12954_s11 + $0x70] sm:$0xff]  ;;  %v2366_v55 = vld [vmem:[%s12954_s11 + $0x1b8] sm:$0xff]  ;;  %v8785_v58 = vcombine.low %v2350_v47, %v2358_v48 }
 0xa41   : > { %v8751_v41 = vcombine.low %v2317_v23, %v2325_v24  ;;  %v2374_v56 = vld [vmem:[%s12954_s11 + $0x1f8] sm:$0xff] }
 0xa42   : > { %2871 = vmatpush1.bf16.msra.mxu1 %v8759_v31  ;;  %2914 = vmatpush1.bf16.msra.mxu0 %v8761_v33  ;;  %v8752_v31 = vcombine.high %v2317_v23, %v2325_v24  ;;  %v8754_v33 = vcombine.high %v2318_v34, %v2326_v25  ;;  %v10400_v23 = vld [vmem:[%s12956_s13 + $0xe0] sm:$0xff]   ;;  %v10403_v25 = vld [vmem:[%s12956_s13 + $0x68] sm:$0xff]  }
 0xa43   : > { %2872 = vmatprep.subr.bf16.mxu1 %v8776_v35  ;;  %2915 = vmatprep.subr.bf16.mxu0 %v8778_v37  ;;  %v2333_v35 = vld [vmem:[%s12954_s11 + $0xb0] sm:$0xff]  ;;  %v10401_v24 = vld [vmem:[%s12956_s13 + $0x20] sm:$0xff]  }
 0xa44   : > { %v2341_v37 = vld [vmem:[%s12954_s11 + $0xf0] sm:$0xff]  ;;  %v10402_v34 = vld [vmem:[%s12956_s13 + $0xa0] sm:$0xff]  }
 0xa45   : > { %v8767_v49 = vcombine.low %v2333_v35, %v2341_v37 }
 0xa46   : > { %2873 = vmatpush1.bf16.msra.mxu1 %v8775_v43  ;;  %2916 = vmatpush1.bf16.msra.mxu0 %v8777_v44  ;;  %v8768_v43 = vcombine.high %v2333_v35, %v2341_v37  ;;  %v8770_v44 = vcombine.high %v2334_v38, %v2342_v39  ;;  %v10408_v35 = vld [vmem:[%s12956_s13 + $0xf0] sm:$0xff]   ;;  %v10411_v39 = vld [vmem:[%s12956_s13 + $0x78] sm:$0xff]  }
 0xa47   : > { %2874 = vmatprep.subr.bf16.mxu1 %v8792_v45  ;;  %2917 = vmatprep.subr.bf16.mxu0 %v8794_v46  ;;  %v2349_v45 = vld [vmem:[%s12954_s11 + $0x130] sm:$0xff] }
 0xa48   : > { %v2357_v46 = vld [vmem:[%s12954_s11 + $0x170] sm:$0xff] }
 0xa49   : > { %v8783_v57 = vcombine.low %v2349_v45, %v2357_v46  ;;  %v10409_v37 = vld [vmem:[%s12956_s13 + $0x30] sm:$0xff]  }
 0xa4a   : > { %2875 = vmatpush1.bf16.msra.mxu1 %v8791_v51  ;;  %2918 = vmatpush1.bf16.msra.mxu0 %v8793_v52  ;;  %v8784_v51 = vcombine.high %v2349_v45, %v2357_v46  ;;  %v8786_v52 = vcombine.high %v2350_v47, %v2358_v48  ;;  %v10410_v38 = vld [vmem:[%s12956_s13 + $0xb0] sm:$0xff]   ;;  %v10416_v45 = vld [vmem:[%s12956_s13 + $0x1c0] sm:$0xff]  }
 0xa4b   : > { %2954 = vmatprep.subr.bf16.mxu1 %v8748_v53  ;;  %2997 = vmatprep.subr.bf16.mxu0 %v8750_v54  ;;  %v2365_v53 = vld [vmem:[%s12954_s11 + $0x1b0] sm:$0xff]  ;;  %v2375_v46 = vld [vmem:[%s12955_s12] sm:$0xff] }
 0xa4c   : > { %v2373_v54 = vld [vmem:[%s12954_s11 + $0x1f0] sm:$0xff]  ;;  %v2382_v47 = vrot.slane %v2375_v46, %v11019_v14  ;;  %v2390_v48 = vrot.slane %v2375_v46, %v11126_v36 }
 0xa4d   : > { %8805 = vmatmul.mubr.msk.bf16.vlgmr.msra.gmra.mrb[24].mxu1 %vm675_vm1, %v11337_v22  ;;  %8806 = vmatmul.mubr.msk.bf16.vlgmr.msra.gmra.mrb[24].mxu0 %vm675_vm1, %v11337_v22 }
 0xa4e   : > { %2955 = vmatpush1.bf16.msra.mxu1 %v8747_v60  ;;  %2998 = vmatpush1.bf16.msra.mxu0 %v8749_v61  ;;  %v8800_v60 = vcombine.high %v2365_v53, %v2373_v54  ;;  %v8802_v61 = vcombine.high %v2366_v55, %v2374_v56 }
 0xa4f   : > { %2956 = vmatprep.subr.bf16.mxu1 %v8764_v62  ;;  %2999 = vmatprep.subr.bf16.mxu0 %v8766_v63  ;;  %v8799_v62 = vcombine.low %v2365_v53, %v2373_v54  ;;  %v8801_v63 = vcombine.low %v2366_v55, %v2374_v56 }
 0xa50   : > { %2986 = vmatprep.mubr.bf16.mxu1 %v10807_v59  ;;  %3029 = vmatprep.mubr.bf16.mxu0 %v10807_v59 }
 0xa52   : > { %2957 = vmatpush1.bf16.msra.mxu1 %v8763_v8  ;;  %3000 = vmatpush1.bf16.msra.mxu0 %v8765_v10  ;;  %v10387_v8 = vld [vmem:[%s12956_s13 + $0x48] sm:$0xff]  }
 0xa53   : > { %2958 = vmatprep.subr.bf16.mxu1 %v8780_v15  ;;  %3001 = vmatprep.subr.bf16.mxu0 %v8782_v11  ;;  %v10388_v10 = vld [vmem:[%s12956_s13 + $0xc8] sm:$0xff]  }
 0xa54   : > { %v10389_v15 = vld [vmem:[%s12956_s13 + $0x8] sm:$0xff]  }
 0xa55   : > { %v10390_v11 = vld [vmem:[%s12956_s13 + $0x88] sm:$0xff]  }
 0xa56   : > { %2959 = vmatpush1.bf16.msra.mxu1 %v8779_v16  ;;  %3002 = vmatpush1.bf16.msra.mxu0 %v8781_v18  ;;  %v10396_v16 = vld [vmem:[%s12956_s13 + $0xd8] sm:$0xff]  }
 0xa57   : > { %2960 = vmatprep.subr.bf16.mxu1 %v8796_v7  ;;  %3003 = vmatprep.subr.bf16.mxu0 %v8798_v9  ;;  %v10397_v18 = vld [vmem:[%s12956_s13 + $0x18] sm:$0xff]   ;;  %v10399_v9 = vld [vmem:[%s12956_s13 + $0x60] sm:$0xff]  }
 0xa58   : > { %v10398_v7 = vld [vmem:[%s12956_s13 + $0x98] sm:$0xff]  }
 0xa5a   : > { %2961 = vmatpush1.bf16.msra.mxu1 %v8795_v27  ;;  %3004 = vmatpush1.bf16.msra.mxu0 %v8797_v28  ;;  %v10404_v27 = vld [vmem:[%s12956_s13 + $0xe8] sm:$0xff]  }
 0xa5b   : > { %3040 = vmatprep.subr.bf16.mxu1 %v8752_v31  ;;  %3083 = vmatprep.subr.bf16.mxu0 %v8754_v33  ;;  %v10405_v28 = vld [vmem:[%s12956_s13 + $0x28] sm:$0xff]   ;;  %v10407_v33 = vld [vmem:[%s12956_s13 + $0x70] sm:$0xff]  }
 0xa5c   : > { %v10406_v31 = vld [vmem:[%s12956_s13 + $0xa8] sm:$0xff]  }
 0xa5d   : > { %8807 = vmatmul.mubr.msk.bf16.vlgmr.msra.gmra.mrb[28].mxu1 %vm675_vm1, %v11337_v22  ;;  %8808 = vmatmul.mubr.msk.bf16.vlgmr.msra.gmra.mrb[28].mxu0 %vm675_vm1, %v11337_v22 }
 0xa5e   : > { %3041 = vmatpush1.bf16.msra.mxu1 %v8751_v41  ;;  %3084 = vmatpush1.bf16.msra.mxu0 %v8753_v42  ;;  %v10412_v41 = vld [vmem:[%s12956_s13 + $0xf8] sm:$0xff]  }
 0xa5f   : > { %3042 = vmatprep.subr.bf16.mxu1 %v8768_v43  ;;  %3085 = vmatprep.subr.bf16.mxu0 %v8770_v44  ;;  %v10413_v42 = vld [vmem:[%s12956_s13 + $0x38] sm:$0xff]   ;;  %v10415_v44 = vld [vmem:[%s12956_s13 + $0x140] sm:$0xff]  }
 0xa60   : > { %3072 = vmatprep.mubr.bf16.mxu1 %v10807_v59  ;;  %3115 = vmatprep.mubr.bf16.mxu0 %v10807_v59  ;;  %v10414_v43 = vld [vmem:[%s12956_s13 + $0xb8] sm:$0xff]  }
 0xa62   : > { %3043 = vmatpush1.bf16.msra.mxu1 %v8767_v49  ;;  %3086 = vmatpush1.bf16.msra.mxu0 %v8769_v50  ;;  %v2386_v49 = vrot.slane %v2375_v46, %v11041_v26  ;;  %v2394_v50 = vrot.slane %v2375_v46, %v11175_v4 }
 0xa63   : > { %3044 = vmatprep.subr.bf16.mxu1 %v8784_v51  ;;  %3087 = vmatprep.subr.bf16.mxu0 %v8786_v52 }
 0xa66   : > { %3045 = vmatpush1.bf16.msra.mxu1 %v8783_v57  ;;  %3088 = vmatpush1.bf16.msra.mxu0 %v8785_v58 }
 0xa67   : > { %3046 = vmatprep.subr.bf16.mxu1 %v8800_v60  ;;  %3089 = vmatprep.subr.bf16.mxu0 %v8802_v61 }
 0xa6a   : > { %3047 = vmatpush1.bf16.msra.mxu1 %v8799_v62  ;;  %3090 = vmatpush1.bf16.msra.mxu0 %v8801_v63 }
 0xa6b   : > { %9622 = vmatprep.subr.bf16.mxu1 %v10383_v0  ;;  %9644 = vmatprep.subr.bf16.mxu0 %v10384_v2 }
 0xa6d   : > { %8809 = vmatmul.mubr.msk.bf16.vlgmr.msra.gmra.mrb[32].mxu1 %vm675_vm1, %v11337_v22  ;;  %8810 = vmatmul.mubr.msk.bf16.vlgmr.msra.gmra.mrb[32].mxu0 %vm675_vm1, %v11337_v22  ;;  %v10392_v22 = vld [vmem:[%s12956_s13 + $0xd0] sm:$0xff]  }
 0xa6e   : > { %9623 = vmatpush3.bf16.msra.mxu1 %v10385_v3  ;;  %9645 = vmatpush3.bf16.msra.mxu0 %v10386_v6 }
 0xa6f   : > { %9624 = vmatprep.subr.bf16.mxu1 %v10387_v8  ;;  %9646 = vmatprep.subr.bf16.mxu0 %v10388_v10 }
 0xa72   : > { %9625 = vmatpush3.bf16.msra.mxu1 %v10389_v15  ;;  %9647 = vmatpush3.bf16.msra.mxu0 %v10390_v11 }
 0xa73   : > { %9626 = vmatprep.subr.bf16.mxu1 %v10391_v19  ;;  %9648 = vmatprep.subr.bf16.mxu0 %v10392_v22 }
 0xa76   : > { %9627 = vmatpush3.bf16.msra.mxu1 %v10393_v29  ;;  %9649 = vmatpush3.bf16.msra.mxu0 %v10394_v30 }
 0xa77   : > { %9628 = vmatprep.subr.bf16.mxu1 %v10395_v12  ;;  %9650 = vmatprep.subr.bf16.mxu0 %v10396_v16 }
 0xa7a   : > { %9629 = vmatpush3.bf16.msra.mxu1 %v10397_v18  ;;  %9651 = vmatpush3.bf16.msra.mxu0 %v10398_v7 }
 0xa7b   : > { %9630 = vmatprep.subr.bf16.mxu1 %v10399_v9  ;;  %9652 = vmatprep.subr.bf16.mxu0 %v10400_v23  ;;  %v10417_v9 = vld [vmem:[%s12956_s13 + $0x100] sm:$0xff]  }
 0xa7c   : > { %v10418_v23 = vld [vmem:[%s12956_s13 + $0x180] sm:$0xff]  }
 0xa7e   : > { %9631 = vmatpush3.bf16.msra.mxu1 %v10401_v24  ;;  %9653 = vmatpush3.bf16.msra.mxu0 %v10402_v34  ;;  %v10419_v24 = vld [vmem:[%s12956_s13 + $0x148] sm:$0xff]  }
 0xa7f   : > { %9632 = vmatprep.subr.bf16.mxu1 %v10403_v25  ;;  %9654 = vmatprep.subr.bf16.mxu0 %v10404_v27  ;;  %v10420_v34 = vld [vmem:[%s12956_s13 + $0x1c8] sm:$0xff]   ;;  %v11603_v25 = vsub.s32 4, %v11016_v13  ;;  %v11606_v27 = vsub.s32 6, %v11016_v13 }
 0xa82   : > { %9633 = vmatpush3.bf16.msra.mxu1 %v10405_v28  ;;  %9655 = vmatpush3.bf16.msra.mxu0 %v10406_v31  ;;  %v11609_v28 = vsub.s32 5, %v11016_v13  ;;  %v11612_v31 = vsub.s32 7, %v11016_v13  ;;  %v10423_v13 = vld [vmem:[%s12956_s13 + $0x150] sm:$0xff]  }
 0xa83   : > { %9634 = vmatprep.subr.bf16.mxu1 %v10407_v33  ;;  %9656 = vmatprep.subr.bf16.mxu0 %v10408_v35  ;;  %v10421_v33 = vld [vmem:[%s12956_s13 + $0x108] sm:$0xff]  }
 0xa84   : > { %v10422_v35 = vld [vmem:[%s12956_s13 + $0x188] sm:$0xff]  }
 0xa86   : > { %9635 = vmatpush3.bf16.msra.mxu1 %v10409_v37  ;;  %9657 = vmatpush3.bf16.msra.mxu0 %v10410_v38  ;;  %v2398_v37 = vrot.slane %v2375_v46, %v11603_v25  ;;  %v2406_v38 = vrot.slane %v2375_v46, %v11606_v27 }
 0xa87   : > { %9636 = vmatprep.subr.bf16.mxu1 %v10411_v39  ;;  %9658 = vmatprep.subr.bf16.mxu0 %v10412_v41  ;;  %v10424_v39 = vld [vmem:[%s12956_s13 + $0x1d0] sm:$0xff]   ;;  %v2402_v41 = vrot.slane %v2375_v46, %v11609_v28 }
 0xa8a   : > { %9637 = vmatpush3.bf16.msra.mxu1 %v10413_v42  ;;  %9659 = vmatpush3.bf16.msra.mxu0 %v10414_v43  ;;  %v2410_v42 = vrot.slane %v2375_v46, %v11612_v31  ;;  %v10427_v46 = vld [vmem:[%s12956_s13 + $0x158] sm:$0xff]  }
 0xa8b   : > { %9666 = vmatprep.subr.bf16.mxu1 %v10415_v44  ;;  %9688 = vmatprep.subr.bf16.mxu0 %v10416_v45  ;;  %v10425_v45 = vld [vmem:[%s12956_s13 + $0x110] sm:$0xff]  }
 0xb10   : > { %v2816_v51 = vpop.f32.mrb[20].mxu1  ;;  %v2859_v52 = vpop.f32.mrb[20].mxu0 }
 0xb11   : > { %v2817_v53 = vadd.f32 %v2816_v51, %v2382_v47  ;;  %v2860_v54 = vadd.f32 %v2859_v52, %v2390_v48  ;;  %v2818_v55 = vpop.f32.mrb[21].mxu1  ;;  %v2861_v56 = vpop.f32.mrb[21].mxu0  ;;  %v10428_v52 = vld [vmem:[%s12956_s13 + $0x1d8] sm:$0xff]  }
 0xb12   : > { %v2819_v57 = vadd.f32 %v2818_v55, %v2386_v49  ;;  %v2862_v58 = vadd.f32 %v2861_v56, %v2394_v50  ;;  %v2820_v60 = vpop.f32.mrb[22].mxu1  ;;  %v2863_v61 = vpop.f32.mrb[22].mxu0 }
 0xb13   : > { %v2821_v62 = vadd.f32 %v2820_v60, %v2382_v47  ;;  %v2864_v63 = vadd.f32 %v2863_v61, %v2390_v48  ;;  %v2822_v0 = vpop.f32.mrb[23].mxu1  ;;  %v2865_v2 = vpop.f32.mrb[23].mxu0  ;;  %v3126_v8 = vmax.f32 %v2817_v53, 0.0  ;;  %v3128_v10 = vmax.f32 %v2860_v54, 0.0  ;;  %v10426_v47 = vld [vmem:[%s12956_s13 + $0x190] sm:$0xff]  }
 0xb14   : > { %v2823_v3 = vadd.f32 %v2822_v0, %v2386_v49  ;;  %v2866_v6 = vadd.f32 %v2865_v2, %v2394_v50  ;;  %v3127_v19 = vmax.f32 %v2819_v57, 0.0  ;;  %v3129_v22 = vmax.f32 %v2862_v58, 0.0  ;;  %v10429_v0 = vld [vmem:[%s12956_s13 + $0x118] sm:$0xff]  }
 0xb15   : > { %v3142_v15 = vmax.f32 %v2821_v62, 0.0  ;;  %v3144_v11 = vmax.f32 %v2864_v63, 0.0  ;;  %v10430_v2 = vld [vmem:[%s12956_s13 + $0x198] sm:$0xff]  }
 0xb16   : > { %v3143_v29 = vmax.f32 %v2823_v3, 0.0  ;;  %v3145_v30 = vmax.f32 %v2866_v6, 0.0 }
 0xb17   : > { %v3158_v12 = vpack.c.bf16 %v3142_v15, %v3126_v8  ;;  %v3160_v16 = vpack.c.bf16 %v3144_v11, %v3128_v10  ;;  %v10431_v15 = vld [vmem:[%s12956_s13 + $0x160] sm:$0xff]  }
 0xb18   : > { %v3159_v18 = vpack.c.bf16 %v3143_v29, %v3127_v19  ;;  %v3161_v7 = vpack.c.bf16 %v3145_v30, %v3129_v22  ;;  %v10432_v11 = vld [vmem:[%s12956_s13 + $0x1e0] sm:$0xff]  }
 0xb1a   : > { %4237 = vmatprep.mubr.bf16.mxu1 %v3159_v18  ;;  %4278 = vmatprep.mubr.bf16.mxu0 %v3161_v7 }
 0xb1b   : > { %4238 = vmatmul.mubr.bf16.vlgmr.msra.gmra.mrb[36].mxu1 %v3158_v12  ;;  %4279 = vmatmul.mubr.bf16.vlgmr.msra.gmra.mrb[36].mxu0 %v3160_v16 }
 0xb1c   : > { %9667 = vmatpush3.bf16.msra.mxu1 %v10417_v9  ;;  %9689 = vmatpush3.bf16.msra.mxu0 %v10418_v23  ;;  %v10433_v9 = vld [vmem:[%s12956_s13 + $0x120] sm:$0xff]  }
 0xb1d   : > { %9668 = vmatprep.subr.bf16.mxu1 %v10419_v24  ;;  %9690 = vmatprep.subr.bf16.mxu0 %v10420_v34  ;;  %v10434_v23 = vld [vmem:[%s12956_s13 + $0x1a0] sm:$0xff]   ;;  %v10435_v24 = vld [vmem:[%s12956_s13 + $0x168] sm:$0xff]  }
 0xb1e   : > { %v10436_v34 = vld [vmem:[%s12956_s13 + $0x1e8] sm:$0xff]  }
 0xb20   : > { %v2902_v43 = vpop.f32.mrb[24].mxu1  ;;  %v2945_v44 = vpop.f32.mrb[24].mxu0  ;;  %9669 = vmatpush3.bf16.msra.mxu1 %v10421_v33  ;;  %9691 = vmatpush3.bf16.msra.mxu0 %v10422_v35  ;;  %v11673_v33 = vld [vmem:[%s12955_s12 + $0x8] sm:$0xff] }
 0xb21   : > { %v2903_v48 = vadd.f32 %v2902_v43, %v2398_v37  ;;  %v2946_v49 = vadd.f32 %v2945_v44, %v2406_v38  ;;  %v2904_v50 = vpop.f32.mrb[25].mxu1  ;;  %v2947_v51 = vpop.f32.mrb[25].mxu0  ;;  %9670 = vmatprep.subr.bf16.mxu1 %v10423_v13  ;;  %9692 = vmatprep.subr.bf16.mxu0 %v10424_v39  ;;  %v10437_v35 = vld [vmem:[%s12956_s13 + $0x128] sm:$0xff]   ;;  %v2422_v13 = vrot.slane %v11673_v33, %v11126_v36  ;;  %v10439_v39 = vld [vmem:[%s12956_s13 + $0x170] sm:$0xff]  }
 0xb22   : > { %v2905_v53 = vadd.f32 %v2904_v50, %v2402_v41  ;;  %v2948_v54 = vadd.f32 %v2947_v51, %v2410_v42  ;;  %v2906_v55 = vpop.f32.mrb[26].mxu1  ;;  %v2949_v56 = vpop.f32.mrb[26].mxu0  ;;  %v2426_v43 = vrot.slane %v11673_v33, %v11175_v4 }
 0xb23   : > { %v2907_v57 = vadd.f32 %v2906_v55, %v2398_v37  ;;  %v2950_v58 = vadd.f32 %v2949_v56, %v2406_v38  ;;  %v2908_v60 = vpop.f32.mrb[27].mxu1  ;;  %v2951_v61 = vpop.f32.mrb[27].mxu0  ;;  %v3130_v3 = vmax.f32 %v2903_v48, 0.0  ;;  %v3132_v6 = vmax.f32 %v2946_v49, 0.0  ;;  %v10438_v37 = vld [vmem:[%s12956_s13 + $0x1a8] sm:$0xff]   ;;  %v10442_v48 = vld [vmem:[%s12956_s13 + $0x1b0] sm:$0xff]  }
 0xb24   : > { %v2909_v62 = vadd.f32 %v2908_v60, %v2402_v41  ;;  %v2952_v63 = vadd.f32 %v2951_v61, %v2410_v42  ;;  %9671 = vmatpush3.bf16.msra.mxu1 %v10425_v45  ;;  %9693 = vmatpush3.bf16.msra.mxu0 %v10426_v47  ;;  %v3131_v19 = vmax.f32 %v2905_v53, 0.0  ;;  %v3133_v22 = vmax.f32 %v2948_v54, 0.0  ;;  %v10440_v41 = vld [vmem:[%s12956_s13 + $0x1f0] sm:$0xff]   ;;  %v10444_v53 = vld [vmem:[%s12956_s13 + $0x1f8] sm:$0xff]  }
 0xb25   : > { %v3146_v8 = vmax.f32 %v2907_v57, 0.0  ;;  %v3148_v10 = vmax.f32 %v2950_v58, 0.0  ;;  %9672 = vmatprep.subr.bf16.mxu1 %v10427_v46  ;;  %9694 = vmatprep.subr.bf16.mxu0 %v10428_v52  ;;  %v2414_v38 = vrot.slane %v11673_v33, %v11019_v14  ;;  %v2418_v42 = vrot.slane %v11673_v33, %v11041_v26  ;;  %v10441_v47 = vld [vmem:[%s12956_s13 + $0x130] sm:$0xff]   ;;  %v10443_v52 = vld [vmem:[%s12956_s13 + $0x178] sm:$0xff]  }
 0xb26   : > { %v3147_v29 = vmax.f32 %v2909_v62, 0.0  ;;  %v3149_v30 = vmax.f32 %v2952_v63, 0.0 }
 0xb27   : > { %v11654_v12 = vpack.c.bf16 %v3146_v8, %v3130_v3  ;;  %v11656_v16 = vpack.c.bf16 %v3148_v10, %v3132_v6  ;;  %v10446_v3 = vld [vmem:[%s12956_s13 + $0x1b8] sm:$0xff]  }
 0xb28   : > { %v3163_v18 = vpack.c.bf16 %v3147_v29, %v3131_v19  ;;  %v3165_v7 = vpack.c.bf16 %v3149_v30, %v3133_v22  ;;  %9673 = vmatpush3.bf16.msra.mxu1 %v10429_v0  ;;  %9695 = vmatpush3.bf16.msra.mxu0 %v10430_v2  ;;  %v10445_v2 = vld [vmem:[%s12956_s13 + $0x138] sm:$0xff]   ;;  %v10448_v19 = vld [vmem:[%s12956_s13 + $0x2c0] sm:$0xff]  }
 0xb29   : > { %9674 = vmatprep.subr.bf16.mxu1 %v10431_v15  ;;  %9696 = vmatprep.subr.bf16.mxu0 %v10432_v11  ;;  %v10447_v11 = vld [vmem:[%s12956_s13 + $0x240] sm:$0xff]  }
 0xb2a   : > { %4319 = vmatprep.mubr.bf16.mxu1 %v3163_v18  ;;  %4360 = vmatprep.mubr.bf16.mxu0 %v3165_v7 }
 0xb2c   : > { %9675 = vmatpush3.bf16.msra.mxu1 %v10433_v9  ;;  %9697 = vmatpush3.bf16.msra.mxu0 %v10434_v23 }
 0xb2d   : > { %9676 = vmatprep.subr.bf16.mxu1 %v10435_v24  ;;  %9698 = vmatprep.subr.bf16.mxu0 %v10436_v34  ;;  %v10449_v34 = vld [vmem:[%s12956_s13 + $0x200] sm:$0xff]  }
 0xb30   : > { %v2988_v44 = vpop.f32.mrb[28].mxu1  ;;  %v3031_v45 = vpop.f32.mrb[28].mxu0  ;;  %9677 = vmatpush3.bf16.msra.mxu1 %v10437_v35  ;;  %9699 = vmatpush3.bf16.msra.mxu0 %v10438_v37  ;;  %v10450_v35 = vld [vmem:[%s12956_s13 + $0x280] sm:$0xff]   ;;  %v10451_v37 = vld [vmem:[%s12956_s13 + $0x248] sm:$0xff]  }
 0xb31   : > { %v2989_v49 = vadd.f32 %v2988_v44, %v2414_v38  ;;  %v3032_v50 = vadd.f32 %v3031_v45, %v2422_v13  ;;  %v2990_v51 = vpop.f32.mrb[29].mxu1  ;;  %v3033_v46 = vpop.f32.mrb[29].mxu0  ;;  %9678 = vmatprep.subr.bf16.mxu1 %v10439_v39  ;;  %9700 = vmatprep.subr.bf16.mxu0 %v10440_v41  ;;  %v2430_v39 = vrot.slane %v11673_v33, %v11603_v25  ;;  %v10456_v44 = vld [vmem:[%s12956_s13 + $0x2d0] sm:$0xff]  }
 0xb32   : > { %v2991_v54 = vadd.f32 %v2990_v51, %v2418_v42  ;;  %v3034_v55 = vadd.f32 %v3033_v46, %v2426_v43  ;;  %v2992_v56 = vpop.f32.mrb[30].mxu1  ;;  %v3035_v57 = vpop.f32.mrb[30].mxu0  ;;  %v2438_v41 = vrot.slane %v11673_v33, %v11606_v27 }
 0xb33   : > { %v2993_v58 = vadd.f32 %v2992_v56, %v2414_v38  ;;  %v3036_v60 = vadd.f32 %v3035_v57, %v2422_v13  ;;  %v2994_v61 = vpop.f32.mrb[31].mxu1  ;;  %v3037_v62 = vpop.f32.mrb[31].mxu0  ;;  %v3134_v6 = vmax.f32 %v2989_v49, 0.0  ;;  %v3136_v8 = vmax.f32 %v3032_v50, 0.0  ;;  %v10452_v38 = vld [vmem:[%s12956_s13 + $0x2c8] sm:$0xff]   ;;  %v10460_v57 = vld [vmem:[%s12956_s13 + $0x2d8] sm:$0xff]  }
 0xb34   : > { %v2995_v63 = vadd.f32 %v2994_v61, %v2418_v42  ;;  %v3038_v0 = vadd.f32 %v3037_v62, %v2426_v43  ;;  %9679 = vmatpush3.bf16.msra.mxu1 %v10441_v47  ;;  %9701 = vmatpush3.bf16.msra.mxu0 %v10442_v48  ;;  %v3135_v22 = vmax.f32 %v2991_v54, 0.0  ;;  %v3137_v29 = vmax.f32 %v3034_v55, 0.0  ;;  %v10453_v13 = vld [vmem:[%s12956_s13 + $0x208] sm:$0xff]   ;;  %v10457_v48 = vld [vmem:[%s12956_s13 + $0x210] sm:$0xff]  }
 0xb35   : > { %v3150_v10 = vmax.f32 %v2993_v58, 0.0  ;;  %v3152_v15 = vmax.f32 %v3036_v60, 0.0  ;;  %9680 = vmatprep.subr.bf16.mxu1 %v10443_v52  ;;  %9702 = vmatprep.subr.bf16.mxu0 %v10444_v53  ;;  %v2434_v42 = vrot.slane %v11673_v33, %v11609_v28  ;;  %v2442_v43 = vrot.slane %v11673_v33, %v11612_v31  ;;  %v10458_v33 = vld [vmem:[%s12956_s13 + $0x290] sm:$0xff]   ;;  %v10459_v52 = vld [vmem:[%s12956_s13 + $0x258] sm:$0xff]  }
 0xb36   : > { %v3151_v30 = vmax.f32 %v2995_v63, 0.0  ;;  %v3153_v18 = vmax.f32 %v3038_v0, 0.0 }
 0xb37   : > { %v11719_v7 = vpack.c.bf16 %v3150_v10, %v3134_v6  ;;  %v11721_v9 = vpack.c.bf16 %v3152_v15, %v3136_v8  ;;  %v10462_v15 = vld [vmem:[%s12956_s13 + $0x298] sm:$0xff]  }
 0xb38   : > { %v3167_v23 = vpack.c.bf16 %v3151_v30, %v3135_v22  ;;  %v3169_v24 = vpack.c.bf16 %v3153_v18, %v3137_v29  ;;  %9681 = vmatpush3.bf16.msra.mxu1 %v10445_v2  ;;  %9703 = vmatpush3.bf16.msra.mxu0 %v10446_v3  ;;  %v10461_v2 = vld [vmem:[%s12956_s13 + $0x218] sm:$0xff]   ;;  %v10464_v18 = vld [vmem:[%s12956_s13 + $0x2e0] sm:$0xff]  }
 0xb39   : > { %9710 = vmatprep.subr.bf16.mxu1 %v10447_v11  ;;  %9732 = vmatprep.subr.bf16.mxu0 %v10448_v19  ;;  %v10463_v11 = vld [vmem:[%s12956_s13 + $0x260] sm:$0xff]  }
 0xb3b   : > { %4320 = vmatmul.mubr.bf16.vlgmr.msra.gmra.mrb[40].mxu1 %v11654_v12  ;;  %4361 = vmatmul.mubr.bf16.vlgmr.msra.gmra.mrb[40].mxu0 %v11656_v16  ;;  %v10454_v12 = vld [vmem:[%s12956_s13 + $0x288] sm:$0xff]   ;;  %v10455_v16 = vld [vmem:[%s12956_s13 + $0x250] sm:$0xff]  }
 0xb3c   : > { %9711 = vmatpush3.bf16.msra.mxu1 %v10449_v34  ;;  %4401 = vmatprep.mubr.bf16.mxu1 %v3167_v23 }
 0xb3d   : > { %9733 = vmatpush3.bf16.msra.mxu0 %v10450_v35  ;;  %4442 = vmatprep.mubr.bf16.mxu0 %v3169_v24 }
 0xb3e   : > { %9712 = vmatprep.subr.bf16.mxu1 %v10451_v37  ;;  %9734 = vmatprep.subr.bf16.mxu0 %v10452_v38  ;;  %v10465_v37 = vld [vmem:[%s12956_s13 + $0x220] sm:$0xff]  }
 0xb3f   : > { %v10466_v38 = vld [vmem:[%s12956_s13 + $0x2a0] sm:$0xff]  }
 0xb40   : > { %v3074_v45 = vpop.f32.mrb[32].mxu1  ;;  %v3117_v47 = vpop.f32.mrb[32].mxu0  ;;  %9713 = vmatpush3.bf16.msra.mxu1 %v10453_v13  ;;  %v10467_v13 = vld [vmem:[%s12956_s13 + $0x268] sm:$0xff]  }
 0xb41   : > { %v3075_v49 = vadd.f32 %v3074_v45, %v2430_v39  ;;  %v3118_v50 = vadd.f32 %v3117_v47, %v2438_v41  ;;  %9735 = vmatpush3.bf16.msra.mxu0 %v10454_v12  ;;  %v3076_v51 = vpop.f32.mrb[33].mxu1  ;;  %v3119_v46 = vpop.f32.mrb[33].mxu0  ;;  %9714 = vmatprep.subr.bf16.mxu1 %v10455_v16  ;;  %v10470_v12 = vld [vmem:[%s12956_s13 + $0x2a8] sm:$0xff]   ;;  %v10471_v16 = vld [vmem:[%s12956_s13 + $0x270] sm:$0xff]   ;;  %v10475_v45 = vld [vmem:[%s12956_s13 + $0x278] sm:$0xff]  }
 0xb42   : > { %v3077_v53 = vadd.f32 %v3076_v51, %v2434_v42  ;;  %v3120_v54 = vadd.f32 %v3119_v46, %v2442_v43  ;;  %v3078_v55 = vpop.f32.mrb[34].mxu1  ;;  %v3121_v56 = vpop.f32.mrb[34].mxu0  ;;  %9736 = vmatprep.subr.bf16.mxu0 %v10456_v44  ;;  %v10474_v44 = vld [vmem:[%s12956_s13 + $0x2b0] sm:$0xff]   ;;  %v10476_v47 = vld [vmem:[%s12956_s13 + $0x2f8] sm:$0xff]   ;;  %v10480_v51 = vld [vmem:[%s12956_s13 + $0x3c0] sm:$0xff]  }
 0xb43   : > { %v3079_v58 = vadd.f32 %v3078_v55, %v2430_v39  ;;  %v3122_v60 = vadd.f32 %v3121_v56, %v2438_v41  ;;  %v3080_v61 = vpop.f32.mrb[35].mxu1  ;;  %v3123_v62 = vpop.f32.mrb[35].mxu0  ;;  %v3138_v3 = vmax.f32 %v3075_v49, 0.0  ;;  %v3140_v6 = vmax.f32 %v3118_v50, 0.0  ;;  %v10468_v39 = vld [vmem:[%s12956_s13 + $0x2e8] sm:$0xff]   ;;  %v10478_v49 = vld [vmem:[%s12956_s13 + $0x2b8] sm:$0xff]  }
 0xb44   : > { %v3081_v63 = vadd.f32 %v3080_v61, %v2434_v42  ;;  %v3124_v0 = vadd.f32 %v3123_v62, %v2442_v43  ;;  %9715 = vmatpush3.bf16.msra.mxu1 %v10457_v48  ;;  %v3139_v19 = vmax.f32 %v3077_v53, 0.0  ;;  %v3141_v22 = vmax.f32 %v3120_v54, 0.0  ;;  %v10469_v41 = vld [vmem:[%s12956_s13 + $0x228] sm:$0xff]   ;;  %v10472_v42 = vld [vmem:[%s12956_s13 + $0x2f0] sm:$0xff]   ;;  %v10477_v48 = vld [vmem:[%s12956_s13 + $0x238] sm:$0xff]  }
 0xb45   : > { %v3154_v8 = vmax.f32 %v3079_v58, 0.0  ;;  %v3156_v10 = vmax.f32 %v3122_v60, 0.0  ;;  %9737 = vmatpush3.bf16.msra.mxu0 %v10458_v33  ;;  %9716 = vmatprep.subr.bf16.mxu1 %v10459_v52  ;;  %v10473_v43 = vld [vmem:[%s12956_s13 + $0x230] sm:$0xff]   ;;  %v10479_v50 = vld [vmem:[%s12956_s13 + $0x340] sm:$0xff]   ;;  %v10483_v52 = vld [vmem:[%s12956_s13 + $0x348] sm:$0xff]  }
 0xb46   : > { %v3155_v29 = vmax.f32 %v3081_v63, 0.0  ;;  %v3157_v30 = vmax.f32 %v3124_v0, 0.0  ;;  %9738 = vmatprep.subr.bf16.mxu0 %v10460_v57  ;;  %v10481_v46 = vld [vmem:[%s12956_s13 + $0x300] sm:$0xff]   ;;  %v10484_v53 = vld [vmem:[%s12956_s13 + $0x3c8] sm:$0xff]   ;;  %v10489_v56 = vld [vmem:[%s12956_s13 + $0x310] sm:$0xff]  }
 0xb47   : > { %v11781_v23 = vpack.c.bf16 %v3154_v8, %v3138_v3  ;;  %v11783_v24 = vpack.c.bf16 %v3156_v10, %v3140_v6  ;;  %v10482_v33 = vld [vmem:[%s12956_s13 + $0x380] sm:$0xff]   ;;  %v10485_v54 = vld [vmem:[%s12956_s13 + $0x308] sm:$0xff]   ;;  %v10490_v57 = vld [vmem:[%s12956_s13 + $0x390] sm:$0xff]  }
 0xb48   : > { %v3171_v34 = vpack.c.bf16 %v3155_v29, %v3139_v19  ;;  %v3173_v35 = vpack.c.bf16 %v3157_v30, %v3141_v22  ;;  %9717 = vmatpush3.bf16.msra.mxu1 %v10461_v2  ;;  %v10486_v55 = vld [vmem:[%s12956_s13 + $0x388] sm:$0xff]   ;;  %v10491_v58 = vld [vmem:[%s12956_s13 + $0x358] sm:$0xff]   ;;  %v10495_v63 = vld [vmem:[%s12956_s13 + $0x360] sm:$0xff]  }
 0xb49   : > { %9739 = vmatpush3.bf16.msra.mxu0 %v10462_v15  ;;  %9718 = vmatprep.subr.bf16.mxu1 %v10463_v11  ;;  %v10492_v60 = vld [vmem:[%s12956_s13 + $0x3d8] sm:$0xff]   ;;  %v10496_v0 = vld [vmem:[%s12956_s13 + $0x3e0] sm:$0xff]   ;;  %v10499_v6 = vld [vmem:[%s12956_s13 + $0x368] sm:$0xff]  }
 0xb4a   : > { %9740 = vmatprep.subr.bf16.mxu0 %v10464_v18  ;;  %v10493_v61 = vld [vmem:[%s12956_s13 + $0x318] sm:$0xff]   ;;  %v10497_v2 = vld [vmem:[%s12956_s13 + $0x320] sm:$0xff]   ;;  %v10500_v8 = vld [vmem:[%s12956_s13 + $0x3e8] sm:$0xff]  }
 0xb4b   : > { %v10494_v62 = vld [vmem:[%s12956_s13 + $0x398] sm:$0xff]   ;;  %v10498_v3 = vld [vmem:[%s12956_s13 + $0x3a0] sm:$0xff]   ;;  %v10501_v10 = vld [vmem:[%s12956_s13 + $0x328] sm:$0xff]  }
 0xb4c   : > { %9719 = vmatpush3.bf16.msra.mxu1 %v10465_v37  ;;  %v10502_v15 = vld [vmem:[%s12956_s13 + $0x3a8] sm:$0xff]   ;;  %v10503_v11 = vld [vmem:[%s12956_s13 + $0x370] sm:$0xff]   ;;  %v10507_v30 = vld [vmem:[%s12956_s13 + $0x378] sm:$0xff]  }
 0xb4d   : > { %9741 = vmatpush3.bf16.msra.mxu0 %v10466_v38  ;;  %9720 = vmatprep.subr.bf16.mxu1 %v10467_v13  ;;  %v10504_v19 = vld [vmem:[%s12956_s13 + $0x3f0] sm:$0xff]   ;;  %v10508_v18 = vld [vmem:[%s12956_s13 + $0x3f8] sm:$0xff]   ;;  %v8811_v13 = vld [vmem:[%s12957_s14] ss:$0 sm:$0xff] }
 0xb4e   : > { %9742 = vmatprep.subr.bf16.mxu0 %v10468_v39  ;;  %v10505_v22 = vld [vmem:[%s12956_s13 + $0x330] sm:$0xff]  }
 0xb4f   : > { %v10506_v29 = vld [vmem:[%s12956_s13 + $0x3b0] sm:$0xff]  }
 0xb50   : > { %9721 = vmatpush3.bf16.msra.mxu1 %v10469_v41 }
 0xb51   : > { %9743 = vmatpush3.bf16.msra.mxu0 %v10470_v12  ;;  %9722 = vmatprep.subr.bf16.mxu1 %v10471_v16 }
 0xb52   : > { %9744 = vmatprep.subr.bf16.mxu0 %v10472_v42 }
 0xb54   : > { %9723 = vmatpush3.bf16.msra.mxu1 %v10473_v43 }
 0xb55   : > { %9745 = vmatpush3.bf16.msra.mxu0 %v10474_v44  ;;  %9724 = vmatprep.subr.bf16.mxu1 %v10475_v45 }
 0xb56   : > { %9746 = vmatprep.subr.bf16.mxu0 %v10476_v47 }
 0xb58   : > { %9725 = vmatpush3.bf16.msra.mxu1 %v10477_v48 }
 0xb59   : > { %9747 = vmatpush3.bf16.msra.mxu0 %v10478_v49  ;;  %9754 = vmatprep.subr.bf16.mxu1 %v10479_v50 }
 0xb5a   : > { %9776 = vmatprep.subr.bf16.mxu0 %v10480_v51 }
 0xb5b   : > { %4402 = vmatmul.mubr.bf16.vlgmr.msra.gmra.mrb[44].mxu1 %v11719_v7  ;;  %v10487_v7 = vld [vmem:[%s12956_s13 + $0x350] sm:$0xff]  }
 0xb5c   : > { %4443 = vmatmul.mubr.bf16.vlgmr.msra.gmra.mrb[44].mxu0 %v11721_v9  ;;  %9755 = vmatpush3.bf16.msra.mxu1 %v10481_v46  ;;  %v10488_v9 = vld [vmem:[%s12956_s13 + $0x3d0] sm:$0xff]  }
 0xb5d   : > { %4483 = vmatprep.mubr.bf16.mxu1 %v3171_v34  ;;  %9777 = vmatpush3.bf16.msra.mxu0 %v10482_v33  ;;  %v10509_v34 = vld [vmem:[%s12956_s13 + $0x338] sm:$0xff]  }
 0xb5e   : > { %4524 = vmatprep.mubr.bf16.mxu0 %v3173_v35  ;;  %9756 = vmatprep.subr.bf16.mxu1 %v10483_v52  ;;  %v10510_v35 = vld [vmem:[%s12956_s13 + $0x3b8] sm:$0xff]  }
 0xb5f   : > { %9778 = vmatprep.subr.bf16.mxu0 %v10484_v53 }
 0xb60   : > { %9757 = vmatpush3.bf16.msra.mxu1 %v10485_v54 }
 0xb61   : > { %9779 = vmatpush3.bf16.msra.mxu0 %v10486_v55  ;;  %9758 = vmatprep.subr.bf16.mxu1 %v10487_v7 }
 0xb62   : > { %9780 = vmatprep.subr.bf16.mxu0 %v10488_v9 }
 0xb64   : > { %9759 = vmatpush3.bf16.msra.mxu1 %v10489_v56 }
 0xb65   : > { %9781 = vmatpush3.bf16.msra.mxu0 %v10490_v57  ;;  %9760 = vmatprep.subr.bf16.mxu1 %v10491_v58 }
 0xb66   : > { %9782 = vmatprep.subr.bf16.mxu0 %v10492_v60 }
 0xb68   : > { %9761 = vmatpush3.bf16.msra.mxu1 %v10493_v61 }
 0xb69   : > { %9783 = vmatpush3.bf16.msra.mxu0 %v10494_v62  ;;  %9762 = vmatprep.subr.bf16.mxu1 %v10495_v63 }
 0xb6a   : > { %9784 = vmatprep.subr.bf16.mxu0 %v10496_v0 }
 0xb6c   : > { %9763 = vmatpush3.bf16.msra.mxu1 %v10497_v2 }
 0xb6d   : > { %9785 = vmatpush3.bf16.msra.mxu0 %v10498_v3  ;;  %9764 = vmatprep.subr.bf16.mxu1 %v10499_v6 }
 0xb6e   : > { %9786 = vmatprep.subr.bf16.mxu0 %v10500_v8 }
 0xb70   : > { %9765 = vmatpush3.bf16.msra.mxu1 %v10501_v10 }
 0xb71   : > { %9787 = vmatpush3.bf16.msra.mxu0 %v10502_v15  ;;  %9766 = vmatprep.subr.bf16.mxu1 %v10503_v11 }
 0xb72   : > { %9788 = vmatprep.subr.bf16.mxu0 %v10504_v19 }
 0xb74   : > { %9767 = vmatpush3.bf16.msra.mxu1 %v10505_v22 }
 0xb75   : > { %9789 = vmatpush3.bf16.msra.mxu0 %v10506_v29  ;;  %9768 = vmatprep.subr.bf16.mxu1 %v10507_v30 }
 0xb76   : > { %9790 = vmatprep.subr.bf16.mxu0 %v10508_v18 }
 0xb78   : > { %9769 = vmatpush3.bf16.msra.mxu1 %v10509_v34 }
 0xb79   : > { %9791 = vmatpush3.bf16.msra.mxu0 %v10510_v35  ;;  %10159 = vmatprep.subr.bf16.mxu1 %v10805_v1 }
 0xb7a   : > { %10171 = vmatprep.subr.bf16.mxu0 %v10805_v1 }
 0xb7b   : > { %4484 = vmatmul.mubr.bf16.vlgmr.msra.gmra.mrb[48].mxu1 %v11781_v23 }
 0xb7c   : > { %4525 = vmatmul.mubr.bf16.vlgmr.msra.gmra.mrb[48].mxu0 %v11783_v24  ;;  %10167 = vmatprep.mubr.msk.bf16.mxu1 %vm10806_vm0, %v10805_v1 }
 0xb7d   : > { %10179 = vmatprep.mubr.msk.bf16.mxu0 %vm10806_vm0, %v10805_v1 }
 0xbee   : > { %v9638_v37 = vpop.f32.mrb[36].mxu1  ;;  %v9660_v38 = vpop.f32.mrb[36].mxu0 }
 0xbef   : > { %v9639_v39 = vpop.f32.mrb[37].mxu1  ;;  %v9661_v41 = vpop.f32.mrb[37].mxu0 }
 0xbf0   : > { %v9640_v12 = vadd.f32 %v9639_v39, %v9638_v37  ;;  %v9662_v16 = vadd.f32 %v9661_v41, %v9660_v38  ;;  %v9641_v42 = vpop.f32.mrb[38].mxu1  ;;  %v9663_v23 = vpop.f32.mrb[38].mxu0 }
 0xbf1   : > { %v9642_v43 = vpop.f32.mrb[39].mxu1  ;;  %v9664_v24 = vpop.f32.mrb[39].mxu0 }
 0xbf2   : > { %v4240_v44 = vadd.f32 %v9640_v12, %v8811_v13  ;;  %v9643_v45 = vadd.f32 %v9642_v43, %v9641_v42  ;;  %v9665_v47 = vadd.f32 %v9664_v24, %v9663_v23 }
 0xbf4   : > { %v4281_v48 = vadd.f32 %v9662_v16, %v4240_v44  ;;  %v4243_v49 = vadd.f32 %v9643_v45, %v8811_v13 }
 0xbf6   : > { %v4284_v50 = vadd.f32 %v9665_v47, %v4243_v49 }
 0xc0e   : > { %v9682_v51 = vpop.f32.mrb[40].mxu1  ;;  %v9704_v46 = vpop.f32.mrb[40].mxu0 }
 0xc0f   : > { %v9683_v33 = vpop.f32.mrb[41].mxu1  ;;  %v9705_v52 = vpop.f32.mrb[41].mxu0 }
 0xc10   : > { %v9684_v53 = vadd.f32 %v9683_v33, %v9682_v51  ;;  %v9706_v54 = vadd.f32 %v9705_v52, %v9704_v46  ;;  %v9685_v55 = vpop.f32.mrb[42].mxu1  ;;  %v9707_v7 = vpop.f32.mrb[42].mxu0 }
 0xc11   : > { %v9686_v9 = vpop.f32.mrb[43].mxu1  ;;  %v9708_v56 = vpop.f32.mrb[43].mxu0 }
 0xc12   : > { %v4322_v57 = vadd.f32 %v9684_v53, %v4281_v48  ;;  %v9687_v58 = vadd.f32 %v9686_v9, %v9685_v55  ;;  %v9709_v60 = vadd.f32 %v9708_v56, %v9707_v7 }
 0xc14   : > { %v4363_v61 = vadd.f32 %v9706_v54, %v4322_v57  ;;  %v4325_v62 = vadd.f32 %v9687_v58, %v4284_v50 }
 0xc16   : > { %v4366_v63 = vadd.f32 %v9709_v60, %v4325_v62  ;;  %v10513_v62 = vld [vmem:[%s12996_s27 + $0x28] sm:$0xff]  }
 0xc2e   : > { %v9726_v0 = vpop.f32.mrb[44].mxu1 }
 0xc2f   : > { %v9748_v2 = vpop.f32.mrb[44].mxu0  ;;  %v9727_v3 = vpop.f32.mrb[45].mxu1 }
 0xc30   : > { %v9728_v6 = vadd.f32 %v9727_v3, %v9726_v0  ;;  %v9749_v8 = vpop.f32.mrb[45].mxu0  ;;  %v9729_v10 = vpop.f32.mrb[46].mxu1  ;;  %v10515_v0 = vld [vmem:[%s12996_s27 + $0x30] sm:$0xff]   ;;  %v10517_v3 = vld [vmem:[%s12996_s27 + $0x38] sm:$0xff]  }
 0xc31   : > { %v9750_v15 = vadd.f32 %v9749_v8, %v9748_v2  ;;  %v9751_v11 = vpop.f32.mrb[46].mxu0  ;;  %v9730_v19 = vpop.f32.mrb[47].mxu1  ;;  %v10516_v2 = vld [vmem:[%s12995_s21 + $0x30] sm:$0xff]  }
 0xc32   : > { %v4404_v22 = vadd.f32 %v9728_v6, %v4363_v61  ;;  %v9731_v29 = vadd.f32 %v9730_v19, %v9729_v10  ;;  %v9752_v30 = vpop.f32.mrb[47].mxu0  ;;  %v10512_v61 = vld [vmem:[%s12995_s21 + $0x20] sm:$0xff]   ;;  %v10518_v6 = vld [vmem:[%s12995_s21 + $0x38] sm:$0xff]  }
 0xc33   : > { %v9753_v18 = vadd.f32 %v9752_v30, %v9751_v11  ;;  %10172 = vmatpush3.bf16.msra.mxu0 %v10512_v61  ;;  %v8940_v30 = vld [vmem:[%s12958_s15] ss:$0 sm:$0xff] }
 0xc34   : > { %v4445_v34 = vadd.f32 %v9750_v15, %v4404_v22  ;;  %v4407_v35 = vadd.f32 %v9731_v29, %v4366_v63  ;;  %10173 = vmatprep.subr.bf16.mxu0 %v10805_v1  ;;  %v10514_v63 = vld [vmem:[%s12995_s21 + $0x28] sm:$0xff]  }
 0xc36   : > { %v4448_v37 = vadd.f32 %v9753_v18, %v4407_v35 }
 0xc37   : > { %10174 = vmatpush3.bf16.msra.mxu0 %v10514_v63 }
 0xc38   : > { %10175 = vmatprep.subr.bf16.mxu0 %v10805_v1 }
 0xc3b   : > { %10176 = vmatpush3.bf16.msra.mxu0 %v10516_v2 }
 0xc3c   : > { %10177 = vmatprep.subr.bf16.mxu0 %v10805_v1 }
 0xc3f   : > { %10178 = vmatpush3.bf16.msra.mxu0 %v10518_v6 }
 0xc40   : > { %10195 = vmatprep.subr.mxu0 %v10805_v1 }
 0xc4e   : > { %v9770_v38 = vpop.f32.mrb[48].mxu1 }
 0xc4f   : > { %v9792_v13 = vpop.f32.mrb[48].mxu0  ;;  %v9771_v39 = vpop.f32.mrb[49].mxu1 }
 0xc50   : > { %v9772_v41 = vadd.f32 %v9771_v39, %v9770_v38  ;;  %v9793_v12 = vpop.f32.mrb[49].mxu0  ;;  %v9773_v16 = vpop.f32.mrb[50].mxu1  ;;  %v8941_v38 = vld [vmem:[%s12959_s16] ss:$0 sm:$0xff] }
 0xc51   : > { %v9794_v42 = vadd.f32 %v9793_v12, %v9792_v13  ;;  %v9795_v23 = vpop.f32.mrb[50].mxu0  ;;  %v9774_v43 = vpop.f32.mrb[51].mxu1  ;;  %v10519_v12 = vld [vmem:[%s13000_s5 + $0x20] sm:$0xff]  }
 0xc52   : > { %v4486_v24 = vadd.f32 %v9772_v41, %v4445_v34  ;;  %v9775_v44 = vadd.f32 %v9774_v43, %v9773_v16  ;;  %v9796_v45 = vpop.f32.mrb[51].mxu0  ;;  %v10522_v43 = vld [vmem:[%s13000_s5 + $0x38] sm:$0xff]  }
 0xc53   : > { %v9797_v47 = vadd.f32 %v9796_v45, %v9795_v23  ;;  %v10521_v23 = vld [vmem:[%s13000_s5 + $0x30] sm:$0xff]  }
 0xc54   : > { %v4527_v48 = vadd.f32 %v9794_v42, %v4486_v24  ;;  %v4489_v49 = vadd.f32 %v9775_v44, %v4448_v37  ;;  %v10520_v42 = vld [vmem:[%s13000_s5 + $0x28] sm:$0xff]   ;;  %v8966_v24 = vld [vmem:[%s12998_s30 + $0x1] ss:$0 sm:$0xff] }
 0xc56   : > { %v4530_v50 = vadd.f32 %v9797_v47, %v4489_v49  ;;  %v4533_v51 = vadd.f32 %v4527_v48, %v11331_v20 }
 0xc58   : > { %v4535_v46 = vsel %vm675_vm1, %v4533_v51, 0.0  ;;  %v4534_v33 = vadd.f32 %v4530_v50, %v11333_v21  ;;  %v10511_v21 = vld [vmem:[%s12996_s27 + $0x20] sm:$0xff]  }
 0xc59   : > { %4536 = vadd.xlane.f32.xlu0 %v4535_v46  ;;  %10160 = vmatpush3.bf16.msra.mxu1 %v10511_v21  ;;  %v8951_v46 = vld [vmem:[%s12999_s3 + $0x1] ss:$0 sm:$0xff]  ;;  %s10808_s3 = smov [#allocation2]  }
 0xc5a   : > { %v4538_v52 = vsel %vm675_vm1, %v4534_v33, 0.0  ;;  %10161 = vmatprep.subr.bf16.mxu1 %v10805_v1  ;;  %s10745_s5 = sshll.u32 %s10808_s3, 4  ;;  %s10746_s5 = int_to_ptr.vmem [resolvable:$false] %s10745_s5 }
 0xc5b   : > { %4539 = vadd.xlane.f32.xlu1 %v4538_v52  ;;  %p10748_p0 = scmp.lt.s32.totalorder %s12895_s4, %s10746_s5 }
 0xc5d   : > { %10162 = vmatpush3.bf16.msra.mxu1 %v10513_v62 }
 0xc5e   : > { %10163 = vmatprep.subr.bf16.mxu1 %v10805_v1 }
 0xc61   : > { %10164 = vmatpush3.bf16.msra.mxu1 %v10515_v0 }
 0xc62   : > { %10165 = vmatprep.subr.bf16.mxu1 %v10805_v1 }
 0xc65   : > { %10166 = vmatpush3.bf16.msra.mxu1 %v10517_v3 }
 0xc66   : > { %10183 = vmatprep.subr.bf16.mxu1 %v10805_v1 }
 0xce6   : > { %v4537_v53 = vpop.xlane.xlu0 %4536 }
 0xce7   : > { %v4541_v54 = vmul.f32 0.015625, %v4537_v53 }
 0xce8   : > { %v4540_v55 = vpop.xlane.xlu1 %4539 }
 0xce9   : > { %v4543_v7 = vsub.f32 %v4533_v51, %v4541_v54  ;;  %v4542_v9 = vmul.f32 0.015625, %v4540_v55 }
 0xceb   : > { %v4544_v56 = vsub.f32 %v4534_v33, %v4542_v9  ;;  %v4545_v57 = vmul.f32 %v4543_v7, %v4543_v7 }
 0xced   : > { %v4547_v58 = vsel %vm675_vm1, %v4545_v57, 0.0  ;;  %v4546_v60 = vmul.f32 %v4544_v56, %v4544_v56 }
 0xcee   : > { %4548 = vadd.xlane.f32.xlu0 %v4547_v58  ;;  %v8981_v58 = vld [vmem:[%s13001_s6 + $0x1] ss:$0 sm:$0xff]  ;;  %s10747_s6 = scalar_lea.vmem %s10746_s5, 512 }
 0xcef   : > { %v4550_v20 = vsel %vm675_vm1, %v4546_v60, 0.0  ;;  %p10749_p1 = scmp.lt.s32.totalorder %s10747_s6, %s10741_s2 }
 0xcf0   : > { %4551 = vadd.xlane.f32.xlu1 %v4550_v20 }
 0xcf1   : > { %p10750_p2 = por %p10749_p1, %p10748_p0 }
 0xcf3   : > { %p10751_p3 = pnand %p10750_p2, %p10744_p13 }
 0xd7b   : > { %v4549_v8 = vpop.xlane.xlu0 %4548 }
 0xd7c   : > { %v4553_v10 = vmul.f32 0.015625, %v4549_v8 }
 0xd7d   : > { %v4552_v15 = vpop.xlane.xlu1 %4551 }
 0xd7e   : > { %v4555_v11 = vadd.f32 1e-05, %v4553_v10  ;;  %v4554_v19 = vmul.f32 0.015625, %v4552_v15 }
 0xd80   : > { %10695 = vrsqrt.f32 %v4555_v11  ;;  %v4556_v22 = vadd.f32 1e-05, %v4554_v19 }
 0xd82   : > { %10697 = vrsqrt.f32 %v4556_v22 }
 0xd8a   : > { %v10696_v29 = vpop.eup %10695 }
 0xd8b   : > { %v4559_v18 = vmul.f32 %v10696_v29, %v4543_v7 }
 0xd8c   : > { %v10698_v34 = vpop.eup %10697 }
 0xd8d   : > { %v4568_v35 = vmul.f32 %v8940_v30, %v4559_v18  ;;  %v4560_v37 = vmul.f32 %v10698_v34, %v4544_v56 }
 0xd8f   : > { %v4569_v13 = vmul.f32 %v8940_v30, %v4560_v37  ;;  %v11980_v39 = vadd.f32 %v8941_v38, %v4568_v35 }
 0xd91   : > { %v11982_v41 = vadd.f32 %v8941_v38, %v4569_v13 }
 0xd93   : > { %v4579_v16 = vpack.c.bf16 %v11982_v41, %v11980_v39 }
 0xd95   : > { %10168 = vmatmul.mubr.msk.bf16.vlgmr.msra.gmra.mrb[52].mxu1 %vm675_vm1, %v4579_v16  ;;  %10180 = vmatmul.mubr.msk.bf16.vlgmr.msra.gmra.mrb[52].mxu0 %vm675_vm1, %v4579_v16 }
 0xd96   : > { %10184 = vmatpush3.bf16.msra.mxu1 %v10519_v12  ;;  %10191 = vmatprep.mubr.msk.bf16.mxu1 %vm10806_vm0, %v10805_v1 }
 0xd97   : > { %10185 = vmatprep.subr.bf16.mxu1 %v10805_v1  ;;  %10197 = vmatprep.mubr.msk.f32.mxu0 %vm10806_vm0, %v10805_v1 }
 0xd9a   : > { %10186 = vmatpush3.bf16.msra.mxu1 %v10520_v42 }
 0xd9b   : > { %10187 = vmatprep.subr.bf16.mxu1 %v10805_v1 }
 0xd9e   : > { %10188 = vmatpush3.bf16.msra.mxu1 %v10521_v23 }
 0xd9f   : > { %10189 = vmatprep.subr.bf16.mxu1 %v10805_v1 }
 0xda2   : > { %10190 = vmatpush3.bf16.msra.mxu1 %v10522_v43 }
 0xda3   : > { %10200 = vmatprep.subr.mxu1 %v10805_v1 }
 0xda5   : > { %10192 = vmatmul.mubr.msk.bf16.vlgmr.msra.gmra.mrb[56].mxu1 %vm675_vm1, %v4579_v16 }
 0xda6   : > { %10202 = vmatprep.mubr.msk.f32.mxu1 %vm10806_vm0, %v10805_v1 }
 0xe68   : > { %v4658_v44 = vpop.f32.mrb[52].mxu1  ;;  %v4740_v45 = vpop.f32.mrb[52].mxu0 }
 0xe69   : > { %v12014_v47 = vadd.f32 %v8966_v24, %v4740_v45  ;;  %v10169_v48 = vpop.f32.mrb[53].mxu1  ;;  %v10181_v49 = vpop.f32.mrb[53].mxu0  ;;  %v12024_v55 = vadd.f32 %v8951_v46, %v4658_v44 }
 0xe6a   : > { %v4661_v50 = vpop.f32.mrb[54].mxu1  ;;  %v4743_v51 = vpop.f32.mrb[54].mxu0 }
 0xe6b   : > { %v4829_v33 = vmul.f32 %v12014_v47, %v11031_v17  ;;  %v10170_v52 = vpop.f32.mrb[55].mxu1  ;;  %v10182_v53 = vpop.f32.mrb[55].mxu0  ;;  %v12021_v54 = vadd.f32 %v8966_v24, %v4743_v51  ;;  %v5007_v9 = vmul.f32 %v12014_v47, %v11051_v32  ;;  %v12034_v56 = vadd.f32 %v8951_v46, %v4661_v50 }
 0xe6d   : > { %10196 = vmatpush3.xpose.msk.msra.mxu0 %vm675_vm1, %v4829_v33  ;;  %v4830_v7 = vmul.f32 %v12021_v54, %v11031_v17  ;;  %v5008_v57 = vmul.f32 %v12021_v54, %v11051_v32 }
 0xe6e   : > { %10205 = vmatprep.subr.mxu0 %v10805_v1 }
 0xe6f   : > { %10201 = vmatpush3.xpose.msk.msra.mxu1 %vm675_vm1, %v4830_v7 }
 0xe70   : > { %10198 = vmatmul.mubr.msk.f32.vlgmr.msra.gmra.mrb[14].mxu0 %vm675_vm1, %v12024_v55  ;;  %10210 = vmatprep.subr.mxu1 %v10805_v1 }
 0xe71   : > { %10206 = vmatpush3.xpose.msk.msra.mxu0 %vm675_vm1, %v5007_v9  ;;  %10207 = vmatprep.mubr.msk.f32.mxu0 %vm10806_vm0, %v10805_v1 }
 0xe72   : > { %10215 = vmatprep.subr.mxu0 %v10805_v1  ;;  %10203 = vmatmul.mubr.msk.f32.vlgmr.msra.gmra.mrb[18].mxu1 %vm675_vm1, %v12034_v56 }
 0xe73   : > { %10211 = vmatpush3.xpose.msk.msra.mxu1 %vm675_vm1, %v5008_v57  ;;  %10212 = vmatprep.mubr.msk.f32.mxu1 %vm10806_vm0, %v10805_v1 }
 0xe74   : > { %10208 = vmatmul.mubr.msk.f32.vlgmr.msra.gmra.mrb[56].mxu0 %vm675_vm1, %v12024_v55  ;;  %10220 = vmatprep.subr.mxu1 %v10805_v1 }
 0xe75   : > { %10217 = vmatprep.mubr.msk.f32.mxu0 %vm10806_vm0, %v10805_v1 }
 0xe76   : > { %10213 = vmatmul.mubr.msk.f32.vlgmr.msra.gmra.mrb[60].mxu1 %vm675_vm1, %v12034_v56 }
 0xe77   : > { %10222 = vmatprep.mubr.msk.f32.mxu1 %vm10806_vm0, %v10805_v1 }
 0xe78   : > { %v4822_v60 = vpop.f32.mrb[56].mxu1 }
 0xe79   : > { %v12060_v20 = vadd.f32 %v8981_v58, %v4822_v60  ;;  %v10193_v21 = vpop.f32.mrb[57].mxu1 }
 0xe7a   : > { %v4825_v61 = vpop.f32.mrb[58].mxu1 }
 0xe7b   : > { %v12062_v62 = vadd.f32 %v8981_v58, %v4825_v61  ;;  %v10194_v63 = vpop.f32.mrb[59].mxu1  ;;  %v5177_v0 = vmul.f32 %v12060_v20, %v11051_v32  ;;  %v5005_v21 = vmul.f32 %v12060_v20, %v11031_v17 }
 0xe7d   : > { %10216 = vmatpush3.msra.mxu0 %v5177_v0  ;;  %v5178_v2 = vmul.f32 %v12062_v62, %v11051_v32  ;;  %v5006_v0 = vmul.f32 %v12062_v62, %v11031_v17  ;;  %v5472_v17 = vmul.f32 %v12021_v54, %v11134_v40 }
 0xe7e   : > { %10225 = vmatprep.subr.mxu0 %v10805_v1 }
 0xe7f   : > { %10221 = vmatpush3.msra.mxu1 %v5178_v2 }
 0xe80   : > { %10230 = vmatprep.subr.mxu1 %v10805_v1 }
 0xf43   : > { %v4903_v3 = vpop.f32.mrb[14].mxu0 }
 0xf44   : > { %v10199_v6 = vpop.f32.mrb[15].mxu0  ;;  %v4983_v32 = vsel %vm1038_vm2, %v4903_v3, -inf }
 0xf45   : > { %v4979_v8 = vpop.f32.mrb[18].mxu1 }
 0xf46   : > { %v10204_v10 = vpop.f32.mrb[19].mxu1  ;;  %v4986_v18 = vsel %vm1038_vm2, %v4979_v8, -inf }
 0xf47   : > { %v5078_v15 = vpop.f32.mrb[56].mxu0 }
 0xf48   : > { %v10209_v11 = vpop.f32.mrb[57].mxu0  ;;  %v5155_v19 = vsel %vm1038_vm2, %v5078_v15, -inf }
 0xf49   : > { %5156 = vmax.xlane.f32.xlu0 %v5155_v19  ;;  %v5151_v22 = vpop.f32.mrb[60].mxu1  ;;  %v5642_v11 = vmul.f32 %v12062_v62, %v11134_v40 }
 0xf4a   : > { %v10214_v29 = vpop.f32.mrb[61].mxu1  ;;  %v5158_v30 = vsel %vm1038_vm2, %v5151_v22, -inf }
 0xf4b   : > { %5159 = vmax.xlane.f32.xlu1 %v5158_v30 }
 0xf4d   : > { %4984 = vmax.xlane.f32.xlu0 %v4983_v32 }
 0xf4f   : > { %4987 = vmax.xlane.f32.xlu1 %v4986_v18 }
 0xfd6   : > { %v5157_v34 = vpop.xlane.xlu0 %5156 }
 0xfd7   : > { %v5161_v35 = vsub.f32 %v5078_v15, %v5157_v34  ;;  %v5641_v15 = vmul.f32 %v12060_v20, %v11134_v40 }
 0xfd8   : > { %v5160_v38 = vpop.xlane.xlu1 %5159 }
 0xfd9   : > { %v5163_v37 = vmul.f32 1.442695, %v5161_v35  ;;  %v5162_v13 = vsub.f32 %v5151_v22, %v5160_v38 }
 0xfda   : > { %v4985_v12 = vpop.xlane.xlu0 %4984 }
 0xfdb   : > { %10699 = vpow2.f32 %v5163_v37  ;;  %v4989_v16 = vsub.f32 %v4903_v3, %v4985_v12  ;;  %v5165_v42 = vmul.f32 1.442695, %v5162_v13 }
 0xfdc   : > { %v4988_v43 = vpop.xlane.xlu1 %4987 }
 0xfdd   : > { %v4991_v23 = vmul.f32 1.442695, %v4989_v16  ;;  %10701 = vpow2.f32 %v5165_v42  ;;  %v4990_v24 = vsub.f32 %v4979_v8, %v4988_v43  ;;  %v5471_v8 = vmul.f32 %v12014_v47, %v11134_v40 }
 0xfdf   : > { %10703 = vpow2.f32 %v4991_v23  ;;  %v4993_v44 = vmul.f32 1.442695, %v4990_v24 }
 0xfe1   : > { %10705 = vpow2.f32 %v4993_v44 }
 0xfe5   : > { %v10700_v45 = vpop.eup %10699 }
 0xfe6   : > { %v5167_v48 = vsel %vm1038_vm2, %v10700_v45, 0.0 }
 0xfe7   : > { %5168 = vadd.xlane.f32.xlu0 %v5167_v48  ;;  %v10702_v49 = vpop.eup %10701  ;;  %v5791_v48 = vmul.f32 %v12014_v47, %v11179_v5  ;;  %v5962_v47 = vmul.f32 %v12062_v62, %v11179_v5 }
 0xfe8   : > { %v5170_v51 = vsel %vm1038_vm2, %v10702_v49, 0.0 }
 0xfe9   : > { %v10704_v50 = vpop.eup %10703  ;;  %5171 = vadd.xlane.f32.xlu1 %v5170_v51  ;;  %v5792_v51 = vmul.f32 %v12021_v54, %v11179_v5 }
 0xfea   : > { %v4995_v46 = vsel %vm1038_vm2, %v10704_v50, 0.0 }
 0xfeb   : > { %4996 = vadd.xlane.f32.xlu0 %v4995_v46  ;;  %v10706_v33 = vpop.eup %10705  ;;  %v5961_v46 = vmul.f32 %v12060_v20, %v11179_v5 }
 0xfec   : > { %v4998_v52 = vsel %vm1038_vm2, %v10706_v33, 0.0 }
 0xfed   : > { %4999 = vadd.xlane.f32.xlu1 %v4998_v52 }
0x1074   : > { %v5169_v53 = vpop.xlane.xlu0 %5168 }
0x1075   : > { %10707 = vrcp.f32 %v5169_v53 }
0x1076   : > { %v5172_v7 = vpop.xlane.xlu1 %5171 }
0x1077   : > { %10709 = vrcp.f32 %v5172_v7 }
0x1078   : > { %v4997_v9 = vpop.xlane.xlu0 %4996 }
0x1079   : > { %10711 = vrcp.f32 %v4997_v9 }
0x107a   : > { %v5000_v57 = vpop.xlane.xlu1 %4999 }
0x107b   : > { %10713 = vrcp.f32 %v5000_v57 }
0x107f   : > { %v10708_v58 = vpop.eup %10707 }
0x1080   : > { %v5175_v60 = vmul.f32 %v10708_v58, %v10700_v45 }
0x1081   : > { %v10710_v61 = vpop.eup %10709 }
0x1082   : > { %10218 = vmatmul.mubr.msk.f32.vlgmr.msra.gmra.mrb[58].mxu0 %vm1038_vm2, %v5175_v60  ;;  %v5176_v63 = vmul.f32 %v10710_v61, %v10702_v49 }
0x1083   : > { %10226 = vmatpush3.msra.mxu0 %v5005_v21  ;;  %10227 = vmatprep.mubr.msk.f32.mxu0 %vm10806_vm0, %v10805_v1  ;;  %v10712_v2 = vpop.eup %10711 }
0x1084   : > { %10235 = vmatprep.subr.mxu0 %v10805_v1  ;;  %10223 = vmatmul.mubr.msk.f32.vlgmr.msra.gmra.mrb[62].mxu1 %vm1038_vm2, %v5176_v63  ;;  %v5003_v6 = vmul.f32 %v10712_v2, %v10704_v50 }
0x1085   : > { %10231 = vmatpush3.msra.mxu1 %v5006_v0  ;;  %10232 = vmatprep.mubr.msk.f32.mxu1 %vm10806_vm0, %v10805_v1  ;;  %v10714_v3 = vpop.eup %10713 }
0x1086   : > { %10240 = vmatprep.subr.mxu1 %v10805_v1  ;;  %v5004_v10 = vmul.f32 %v10714_v3, %v10706_v33  ;;  %v10523_v3 = vld [vmem:[%s12950_s7 + $0x20] sm:$0xff]  }
0x108a   : > { %10228 = vmatmul.mubr.msk.f32.vlgmr.msra.gmra.mrb[58].mxu0 %vm1038_vm2, %v5003_v6 }
0x108b   : > { %10236 = vmatpush3.xpose.msk.msra.mxu0 %vm675_vm1, %v5471_v8  ;;  %10237 = vmatprep.mubr.msk.f32.mxu0 %vm10806_vm0, %v10805_v1 }
0x108c   : > { %10245 = vmatprep.subr.mxu0 %v10805_v1  ;;  %10233 = vmatmul.mubr.msk.f32.vlgmr.msra.gmra.mrb[62].mxu1 %vm1038_vm2, %v5004_v10 }
0x108d   : > { %10241 = vmatpush3.xpose.msk.msra.mxu1 %vm675_vm1, %v5472_v17  ;;  %10242 = vmatprep.mubr.msk.f32.mxu1 %vm10806_vm0, %v10805_v1  ;;  %v10524_v17 = vld [vmem:[%s12950_s7 + $0x28] sm:$0xff]  }
0x108e   : > { %10238 = vmatmul.mubr.msk.f32.vlgmr.msra.gmra.mrb[60].mxu0 %vm675_vm1, %v12024_v55  ;;  %10250 = vmatprep.subr.mxu1 %v10805_v1 }
0x108f   : > { %10246 = vmatpush3.msra.mxu0 %v5641_v15  ;;  %10247 = vmatprep.mubr.msk.f32.mxu0 %vm10806_vm0, %v10805_v1  ;;  %v10525_v15 = vld [vmem:[%s12950_s7 + $0x30] sm:$0xff]  }
0x1090   : > { %10243 = vmatmul.mubr.msk.f32.vlgmr.msra.gmra.mrb[64].mxu1 %vm675_vm1, %v12034_v56  ;;  %10255 = vmatprep.subr.mxu0 %v10805_v1 }
0x1091   : > { %10251 = vmatpush3.msra.mxu1 %v5642_v11  ;;  %10252 = vmatprep.mubr.msk.f32.mxu1 %vm10806_vm0, %v10805_v1  ;;  %v10526_v11 = vld [vmem:[%s12950_s7 + $0x38] sm:$0xff]  }
0x1092   : > { %10260 = vmatprep.subr.mxu1 %v10805_v1 }
0x1161   : > { %v5542_v19 = vpop.f32.mrb[60].mxu0 }
0x1162   : > { %v10239_v22 = vpop.f32.mrb[61].mxu0  ;;  %v5619_v29 = vsel %vm1038_vm2, %v5542_v19, -inf }
0x1163   : > { %5620 = vmax.xlane.f32.xlu0 %v5619_v29  ;;  %v5615_v40 = vpop.f32.mrb[64].mxu1 }
0x1164   : > { %v10244_v30 = vpop.f32.mrb[65].mxu1  ;;  %v5622_v32 = vsel %vm1038_vm2, %v5615_v40, -inf }
0x1165   : > { %5623 = vmax.xlane.f32.xlu1 %v5622_v32  ;;  %v9020_v32 = vld [vmem:[%s12951_s8 + $0x1] ss:$0 sm:$0xff] }
0x11f0   : > { %v5621_v18 = vpop.xlane.xlu0 %5620 }
0x11f1   : > { %v5625_v34 = vsub.f32 %v5542_v19, %v5621_v18 }
0x11f2   : > { %v5624_v37 = vpop.xlane.xlu1 %5623 }
0x11f3   : > { %v5627_v35 = vmul.f32 1.442695, %v5625_v34  ;;  %v5626_v38 = vsub.f32 %v5615_v40, %v5624_v37 }
0x11f5   : > { %10715 = vpow2.f32 %v5627_v35  ;;  %v5629_v13 = vmul.f32 1.442695, %v5626_v38 }
0x11f7   : > { %10717 = vpow2.f32 %v5629_v13 }
0x11ff   : > { %v10716_v12 = vpop.eup %10715 }
0x1200   : > { %v5631_v16 = vsel %vm1038_vm2, %v10716_v12, 0.0 }
0x1201   : > { %5632 = vadd.xlane.f32.xlu0 %v5631_v16  ;;  %v10718_v42 = vpop.eup %10717 }
0x1202   : > { %v5634_v23 = vsel %vm1038_vm2, %v10718_v42, 0.0 }
0x1203   : > { %5635 = vadd.xlane.f32.xlu1 %v5634_v23 }
0x128e   : > { %v5633_v43 = vpop.xlane.xlu0 %5632 }
0x128f   : > { %10719 = vrcp.f32 %v5633_v43 }
0x1290   : > { %v5636_v24 = vpop.xlane.xlu1 %5635 }
0x1291   : > { %10721 = vrcp.f32 %v5636_v24 }
0x1299   : > { %v10720_v44 = vpop.eup %10719 }
0x129a   : > { %v5639_v45 = vmul.f32 %v10720_v44, %v10716_v12 }
0x129b   : > { %v10722_v49 = vpop.eup %10721 }
0x129c   : > { %10248 = vmatmul.mubr.msk.f32.vlgmr.msra.gmra.mrb[58].mxu0 %vm1038_vm2, %v5639_v45  ;;  %v5640_v50 = vmul.f32 %v10722_v49, %v10718_v42 }
0x129d   : > { %10256 = vmatpush3.xpose.msk.msra.mxu0 %vm675_vm1, %v5791_v48  ;;  %10257 = vmatprep.mubr.msk.f32.mxu0 %vm10806_vm0, %v10805_v1 }
0x129e   : > { %10265 = vmatprep.subr.mxu0 %v10805_v1  ;;  %10253 = vmatmul.mubr.msk.f32.vlgmr.msra.gmra.mrb[62].mxu1 %vm1038_vm2, %v5640_v50 }
0x129f   : > { %10261 = vmatpush3.xpose.msk.msra.mxu1 %vm675_vm1, %v5792_v51  ;;  %10262 = vmatprep.mubr.msk.f32.mxu1 %vm10806_vm0, %v10805_v1 }
0x12a0   : > { %10258 = vmatmul.mubr.msk.f32.vlgmr.msra.gmra.mrb[62].mxu0 %vm675_vm1, %v12024_v55  ;;  %10270 = vmatprep.subr.mxu1 %v10805_v1 }
0x12a1   : > { %10266 = vmatpush3.msra.mxu0 %v5961_v46  ;;  %10267 = vmatprep.mubr.msk.f32.mxu0 %vm10806_vm0, %v10805_v1  ;;  %v9030_v46 = vld [vmem:[%s12954_s11 + $0x200] sm:$0xff] }
0x12a2   : > { %10263 = vmatmul.mubr.msk.f32.vlgmr.msra.gmra.mrb[66].mxu1 %vm675_vm1, %v12034_v56  ;;  %10275 = vmatprep.subr.bf16.mxu0 %v10805_v1 }
0x12a3   : > { %10271 = vmatpush3.msra.mxu1 %v5962_v47  ;;  %10272 = vmatprep.mubr.msk.f32.mxu1 %vm10806_vm0, %v10805_v1  ;;  %v9038_v47 = vld [vmem:[%s12954_s11 + $0x240] sm:$0xff] }
0x1373   : > { %v5862_v54 = vpop.f32.mrb[62].mxu0 }
0x1374   : > { %v10259_v55 = vpop.f32.mrb[63].mxu0  ;;  %v5939_v20 = vsel %vm1038_vm2, %v5862_v54, -inf }
0x1375   : > { %5940 = vmax.xlane.f32.xlu0 %v5939_v20  ;;  %v5935_v33 = vpop.f32.mrb[66].mxu1  ;;  %v9097_v55 = vcombine.high %v9030_v46, %v9038_v47  ;;  %v9039_v20 = vld [vmem:[%s12954_s11 + $0x248] sm:$0xff] }
0x1376   : > { %v10264_v52 = vpop.f32.mrb[67].mxu1  ;;  %v5942_v5 = vsel %vm1038_vm2, %v5935_v33, -inf }
0x1377   : > { %5943 = vmax.xlane.f32.xlu1 %v5942_v5  ;;  %6719 = vmatprep.subr.bf16.mxu1 %v9097_v55  ;;  %v9056_v55 = vld [vmem:[%s12954_s11 + $0x2d0] sm:$0xff] }
0x1402   : > { %v5941_v62 = vpop.xlane.xlu0 %5940 }
0x1403   : > { %v5945_v53 = vsub.f32 %v5862_v54, %v5941_v62  ;;  %v9031_v54 = vld [vmem:[%s12954_s11 + $0x208] sm:$0xff]  ;;  %v9046_v62 = vld [vmem:[%s12954_s11 + $0x280] sm:$0xff] }
0x1404   : > { %v5944_v56 = vpop.xlane.xlu1 %5943  ;;  %v9098_v52 = vcombine.low %v9031_v54, %v9039_v20  ;;  %v9099_v5 = vcombine.high %v9031_v54, %v9039_v20  ;;  %v9048_v54 = vld [vmem:[%s12954_s11 + $0x290] sm:$0xff] }
0x1405   : > { %v5947_v7 = vmul.f32 1.442695, %v5945_v53  ;;  %v5946_v9 = vsub.f32 %v5935_v33, %v5944_v56  ;;  %v9096_v33 = vcombine.low %v9030_v46, %v9038_v47  ;;  %v9054_v53 = vld [vmem:[%s12954_s11 + $0x2c0] sm:$0xff] }
0x1406   : > { %v9113_v56 = vcombine.high %v9046_v62, %v9054_v53  ;;  %v9029_v46 = vld [vmem:[%s12953_s10 + $0x1] ss:$0 sm:$0xff] }
0x1407   : > { %10723 = vpow2.f32 %v5947_v7  ;;  %v5949_v57 = vmul.f32 1.442695, %v5946_v9  ;;  %v9047_v7 = vld [vmem:[%s12954_s11 + $0x288] sm:$0xff] }
0x1408   : > { %v9055_v9 = vld [vmem:[%s12954_s11 + $0x2c8] sm:$0xff] }
0x1409   : > { %10725 = vpow2.f32 %v5949_v57  ;;  %v9112_v57 = vcombine.low %v9046_v62, %v9054_v53  ;;  %v9064_v53 = vld [vmem:[%s12954_s11 + $0x310] sm:$0xff] }
0x1411   : > { %v10724_v58 = vpop.eup %10723 }
0x1412   : > { %v5951_v60 = vsel %vm1038_vm2, %v10724_v58, 0.0 }
0x1413   : > { %5952 = vadd.xlane.f32.xlu0 %v5951_v60  ;;  %v10726_v21 = vpop.eup %10725  ;;  %v9115_v60 = vcombine.high %v9047_v7, %v9055_v9 }
0x1414   : > { %v5954_v61 = vsel %vm1038_vm2, %v10726_v21, 0.0 }
0x1415   : > { %5955 = vadd.xlane.f32.xlu1 %v5954_v61  ;;  %v9070_v61 = vld [vmem:[%s12954_s11 + $0x340] sm:$0xff] }
0x14a0   : > { %v5953_v63 = vpop.xlane.xlu0 %5952 }
0x14a1   : > { %10727 = vrcp.f32 %v5953_v63  ;;  %v9063_v63 = vld [vmem:[%s12954_s11 + $0x308] sm:$0xff] }
0x14a2   : > { %v5956_v0 = vpop.xlane.xlu1 %5955 }
0x14a3   : > { %10729 = vrcp.f32 %v5956_v0 }
0x14ab   : > { %v10728_v2 = vpop.eup %10727 }
0x14ac   : > { %v5959_v6 = vmul.f32 %v10728_v2, %v10724_v58  ;;  %v9114_v58 = vcombine.low %v9047_v7, %v9055_v9  ;;  %v9071_v2 = vld [vmem:[%s12954_s11 + $0x348] sm:$0xff]  ;;  %v9072_v7 = vld [vmem:[%s12954_s11 + $0x350] sm:$0xff]  ;;  %v9073_v9 = vld [vmem:[%s12954_s11 + $0x358] sm:$0xff] }
0x14ad   : > { %v10730_v8 = vpop.eup %10729 }
0x14ae   : > { %10268 = vmatmul.mubr.msk.f32.vlgmr.msra.gmra.mrb[58].mxu0 %vm1038_vm2, %v5959_v6  ;;  %v5960_v10 = vmul.f32 %v10730_v8, %v10726_v21  ;;  %v9062_v21 = vld [vmem:[%s12954_s11 + $0x300] sm:$0xff]  ;;  %v9130_v6 = vcombine.low %v9063_v63, %v9071_v2  ;;  %v9131_v8 = vcombine.high %v9063_v63, %v9071_v2  ;;  %v9088_v63 = vld [vmem:[%s12954_s11 + $0x3d0] sm:$0xff]  ;;  %v9089_v2 = vld [vmem:[%s12954_s11 + $0x3d8] sm:$0xff] }
0x14af   : > { %10276 = vmatpush3.bf16.msra.mxu0 %v10523_v3  ;;  %10283 = vmatprep.mubr.msk.bf16.mxu0 %vm10806_vm0, %v10805_v1  ;;  %v9129_v0 = vcombine.high %v9062_v21, %v9070_v61  ;;  %v9128_v3 = vcombine.low %v9062_v21, %v9070_v61  ;;  %v9080_v61 = vld [vmem:[%s12954_s11 + $0x390] sm:$0xff] }
0x14b0   : > { %10277 = vmatprep.subr.bf16.mxu0 %v10805_v1  ;;  %10273 = vmatmul.mubr.msk.f32.vlgmr.msra.gmra.mrb[62].mxu1 %vm1038_vm2, %v5960_v10  ;;  %v9078_v10 = vld [vmem:[%s12954_s11 + $0x380] sm:$0xff] }
0x14b1   : > { %6751 = vmatprep.mubr.bf16.mxu1 %v10807_v59  ;;  %6720 = vmatpush1.bf16.msra.mxu1 %v9096_v33 }
0x14b2   : > { %6721 = vmatprep.subr.bf16.mxu1 %v9113_v56  ;;  %v9065_v56 = vld [vmem:[%s12954_s11 + $0x318] sm:$0xff] }
0x14b3   : > { %10278 = vmatpush3.bf16.msra.mxu0 %v10524_v17  ;;  %v9086_v17 = vld [vmem:[%s12954_s11 + $0x3c0] sm:$0xff]  ;;  %v9135_v21 = vcombine.high %v9065_v56, %v9073_v9 }
0x14b4   : > { %10279 = vmatprep.subr.bf16.mxu0 %v10805_v1 }
0x14b5   : > { %6722 = vmatpush1.bf16.msra.mxu1 %v9112_v57  ;;  %v9116_v57 = vcombine.low %v9048_v54, %v9056_v55 }
0x14b6   : > { %6723 = vmatprep.subr.bf16.mxu1 %v9129_v0  ;;  %v9081_v0 = vld [vmem:[%s12954_s11 + $0x398] sm:$0xff] }
0x14b7   : > { %10280 = vmatpush3.bf16.msra.mxu0 %v10525_v15  ;;  %v9079_v15 = vld [vmem:[%s12954_s11 + $0x388] sm:$0xff] }
0x14b8   : > { %10281 = vmatprep.subr.bf16.mxu0 %v10805_v1 }
0x14b9   : > { %6724 = vmatpush1.bf16.msra.mxu1 %v9128_v3  ;;  %v9132_v3 = vcombine.low %v9064_v53, %v9072_v7 }
0x14bb   : > { %10282 = vmatpush3.bf16.msra.mxu0 %v10526_v11  ;;  %v9145_v11 = vcombine.high %v9078_v10, %v9086_v17 }
0x14bc   : > { %6762 = vmatprep.subr.bf16.mxu0 %v9099_v5  ;;  %v9117_v5 = vcombine.high %v9048_v54, %v9056_v55 }
0x14bd   : > { %6725 = vmatprep.subr.bf16.mxu1 %v9145_v11  ;;  %v9035_v11 = vld [vmem:[%s12954_s11 + $0x228] sm:$0xff] }
0x1581   : > { %v6032_v19 = vpop.f32.mrb[58].mxu0 }
0x1582   : > { %v10269_v22 = vpop.f32.mrb[59].mxu0 }
0x1583   : > { %v6105_v29 = vpop.f32.mrb[62].mxu1  ;;  %v9144_v22 = vcombine.low %v9078_v10, %v9086_v17  ;;  %v9151_v10 = vcombine.high %v9081_v0, %v9089_v2  ;;  %v9034_v17 = vld [vmem:[%s12954_s11 + $0x220] sm:$0xff] }
0x1584   : > { %v6111_v40 = vpack.c.bf16 %v6105_v29, %v6032_v19  ;;  %v10274_v30 = vpop.f32.mrb[63].mxu1  ;;  %v9087_v19 = vld [vmem:[%s12954_s11 + $0x3c8] sm:$0xff] }
0x1585   : > { %v9146_v29 = vcombine.low %v9079_v15, %v9087_v19  ;;  %6726 = vmatpush1.bf16.msra.mxu1 %v9144_v22  ;;  %v9032_v30 = vld [vmem:[%s12954_s11 + $0x210] sm:$0xff]  ;;  %v9148_v22 = vcombine.low %v9080_v61, %v9088_v63 }
0x1586   : > { %10284 = vmatmul.mubr.msk.bf16.vlgmr.msra.gmra.mrb[64].mxu0 %vm675_vm1, %v6111_v40  ;;  %v9147_v40 = vcombine.high %v9079_v15, %v9087_v19  ;;  %v9042_v15 = vld [vmem:[%s12954_s11 + $0x260] sm:$0xff]  ;;  %v9043_v19 = vld [vmem:[%s12954_s11 + $0x268] sm:$0xff] }
0x1587   : > { %6794 = vmatprep.mubr.bf16.mxu0 %v10807_v59  ;;  %6763 = vmatpush1.bf16.msra.mxu0 %v9098_v52 }
0x1588   : > { %6764 = vmatprep.subr.bf16.mxu0 %v9115_v60  ;;  %v9133_v60 = vcombine.high %v9064_v53, %v9072_v7  ;;  %v9045_v53 = vld [vmem:[%s12954_s11 + $0x278] sm:$0xff] }
0x158b   : > { %6765 = vmatpush1.bf16.msra.mxu0 %v9114_v58 }
0x158c   : > { %6766 = vmatprep.subr.bf16.mxu0 %v9131_v8  ;;  %v9149_v8 = vcombine.high %v9080_v61, %v9088_v63  ;;  %v9061_v61 = vld [vmem:[%s12954_s11 + $0x2f8] sm:$0xff] }
0x158f   : > { %6767 = vmatpush1.bf16.msra.mxu0 %v9130_v6  ;;  %v9134_v6 = vcombine.low %v9065_v56, %v9073_v9 }
0x1590   : > { %6768 = vmatprep.subr.bf16.mxu0 %v9147_v40  ;;  %v9105_v40 = vcombine.high %v9034_v17, %v9042_v15 }
0x1593   : > { %6769 = vmatpush1.bf16.msra.mxu0 %v9146_v29  ;;  %v9150_v29 = vcombine.low %v9081_v0, %v9089_v2 }
0x1659   : > { %v6190_v18 = vpop.f32.mrb[64].mxu0 }
0x165a   : > { %v6191_v34 = vadd.f32 %v9020_v32, %v6190_v18  ;;  %v10285_v35 = vpop.f32.mrb[65].mxu0  ;;  %v9033_v18 = vld [vmem:[%s12954_s11 + $0x218] sm:$0xff] }
0x165b   : > { %v6193_v37 = vpop.f32.mrb[66].mxu0 }
0x165c   : > { %v6194_v38 = vadd.f32 %v9020_v32, %v6193_v37  ;;  %v10286_v13 = vpop.f32.mrb[67].mxu0  ;;  %v6197_v12 = vadd.f32 %v6191_v34, %v11980_v39  ;;  %v9040_v32 = vld [vmem:[%s12954_s11 + $0x250] sm:$0xff]  ;;  %v9041_v37 = vld [vmem:[%s12954_s11 + $0x258] sm:$0xff] }
0x165d   : > { %v9100_v34 = vcombine.low %v9032_v30, %v9040_v32  ;;  %v9101_v35 = vcombine.high %v9032_v30, %v9040_v32  ;;  %v9103_v13 = vcombine.high %v9033_v18, %v9041_v37  ;;  %v9107_v30 = vcombine.high %v9035_v11, %v9043_v19  ;;  %v9050_v32 = vld [vmem:[%s12954_s11 + $0x2a0] sm:$0xff] }
0x165e   : > { %v6199_v16 = vsel %vm675_vm1, %v6197_v12, 0.0  ;;  %v6198_v42 = vadd.f32 %v6194_v38, %v11982_v41  ;;  %v9102_v38 = vcombine.low %v9033_v18, %v9041_v37  ;;  %v9058_v18 = vld [vmem:[%s12954_s11 + $0x2e0] sm:$0xff]  ;;  %v9104_v37 = vcombine.low %v9034_v17, %v9042_v15  ;;  %v9077_v17 = vld [vmem:[%s12954_s11 + $0x378] sm:$0xff] }
0x165f   : > { %6200 = vadd.xlane.f32.xlu0 %v6199_v16  ;;  %6805 = vmatprep.subr.bf16.mxu1 %v9101_v35  ;;  %v9059_v35 = vld [vmem:[%s12954_s11 + $0x2e8] sm:$0xff] }
0x1660   : > { %v6202_v23 = vsel %vm675_vm1, %v6198_v42, 0.0  ;;  %6848 = vmatprep.subr.bf16.mxu0 %v9103_v13  ;;  %v9121_v13 = vcombine.high %v9050_v32, %v9058_v18 }
0x1661   : > { %6203 = vadd.xlane.f32.xlu1 %v6202_v23 }
0x16ec   : > { %v6201_v43 = vpop.xlane.xlu0 %6200 }
0x16ed   : > { %v6205_v24 = vmul.f32 0.015625, %v6201_v43 }
0x16ee   : > { %v6204_v44 = vpop.xlane.xlu1 %6203 }
0x16ef   : > { %v12182_v45 = vsub.f32 %v6197_v12, %v6205_v24  ;;  %v6206_v48 = vmul.f32 0.015625, %v6204_v44 }
0x16f1   : > { %v12184_v49 = vsub.f32 %v6198_v42, %v6206_v48  ;;  %v6209_v50 = vmul.f32 %v12182_v45, %v12182_v45  ;;  %v9027_v48 = vld [vmem:[%s12952_s9 + $0x1] ss:$0 sm:$0xff] }
0x16f3   : > { %v6211_v39 = vsel %vm675_vm1, %v6209_v50, 0.0  ;;  %v6210_v41 = vmul.f32 %v12184_v49, %v12184_v49 }
0x16f4   : > { %6212 = vadd.xlane.f32.xlu0 %v6211_v39 }
0x16f5   : > { %v6214_v51 = vsel %vm675_vm1, %v6210_v41, 0.0 }
0x16f6   : > { %6215 = vadd.xlane.f32.xlu1 %v6214_v51 }
0x1781   : > { %v6213_v12 = vpop.xlane.xlu0 %6212 }
0x1782   : > { %v6217_v16 = vmul.f32 0.015625, %v6213_v12 }
0x1783   : > { %v6216_v42 = vpop.xlane.xlu1 %6215 }
0x1784   : > { %v6219_v23 = vadd.f32 1e-05, %v6217_v16  ;;  %v6218_v43 = vmul.f32 0.015625, %v6216_v42  ;;  %v9066_v16 = vld [vmem:[%s12954_s11 + $0x320] sm:$0xff] }
0x1785   : > { %v9074_v42 = vld [vmem:[%s12954_s11 + $0x360] sm:$0xff] }
0x1786   : > { %10731 = vrsqrt.f32 %v6219_v23  ;;  %v6220_v24 = vadd.f32 1e-05, %v6218_v43  ;;  %v9067_v23 = vld [vmem:[%s12954_s11 + $0x328] sm:$0xff] }
0x1787   : > { %v9075_v43 = vld [vmem:[%s12954_s11 + $0x368] sm:$0xff] }
0x1788   : > { %10733 = vrsqrt.f32 %v6220_v24  ;;  %v9120_v24 = vcombine.low %v9050_v32, %v9058_v18  ;;  %v9138_v54 = vcombine.low %v9067_v23, %v9075_v43  ;;  %v9093_v32 = vld [vmem:[%s12954_s11 + $0x3f8] sm:$0xff] }
0x1790   : > { %v10732_v44 = vpop.eup %10731 }
0x1791   : > { %v6223_v50 = vmul.f32 %v10732_v44, %v12182_v45  ;;  %v9049_v45 = vld [vmem:[%s12954_s11 + $0x298] sm:$0xff] }
0x1792   : > { %v10734_v39 = vpop.eup %10733 }
0x1793   : > { %v6233_v41 = vmul.f32 %v9027_v48, %v6223_v50  ;;  %v6224_v51 = vmul.f32 %v10734_v39, %v12184_v49  ;;  %v9057_v49 = vld [vmem:[%s12954_s11 + $0x2d8] sm:$0xff]  ;;  %v9139_v50 = vcombine.high %v9067_v23, %v9075_v43  ;;  %v9082_v39 = vld [vmem:[%s12954_s11 + $0x3a0] sm:$0xff]  ;;  %v10531_v23 = vld [vmem:[%s12956_s13 + $0x448] sm:$0xff]  }
0x1794   : > { %v9119_v62 = vcombine.high %v9049_v45, %v9057_v49  ;;  %v9118_v58 = vcombine.low %v9049_v45, %v9057_v49  ;;  %v9036_v49 = vld [vmem:[%s12954_s11 + $0x230] sm:$0xff]  ;;  %v10532_v43 = vld [vmem:[%s12956_s13 + $0x4c8] sm:$0xff]  }
0x1795   : > { %v6234_v47 = vmul.f32 %v9027_v48, %v6224_v51  ;;  %v12272_v20 = vadd.f32 %v9029_v46, %v6233_v41  ;;  %v9137_v48 = vcombine.high %v9066_v16, %v9074_v42  ;;  %v9090_v41 = vld [vmem:[%s12954_s11 + $0x3e0] sm:$0xff]  ;;  %v9083_v51 = vld [vmem:[%s12954_s11 + $0x3a8] sm:$0xff] }
0x1796   : > { %v9153_v55 = vcombine.high %v9082_v39, %v9090_v41  ;;  %v9152_v7 = vcombine.low %v9082_v39, %v9090_v41  ;;  %v10538_v39 = vld [vmem:[%s12956_s13 + $0x490] sm:$0xff]   ;;  %v10539_v41 = vld [vmem:[%s12956_s13 + $0x458] sm:$0xff]  }
0x1797   : > { %v12274_v33 = vadd.f32 %v9029_v46, %v6234_v47  ;;  %v9091_v46 = vld [vmem:[%s12954_s11 + $0x3e8] sm:$0xff]  ;;  %v9136_v47 = vcombine.low %v9066_v16, %v9074_v42  ;;  %v10529_v16 = vld [vmem:[%s12956_s13 + $0x400] sm:$0xff]  }
0x1798   : > { %v9155_v45 = vcombine.high %v9083_v51, %v9091_v46  ;;  %v9154_v56 = vcombine.low %v9083_v51, %v9091_v46  ;;  %v10530_v42 = vld [vmem:[%s12956_s13 + $0x480] sm:$0xff]   ;;  %v10540_v51 = vld [vmem:[%s12956_s13 + $0x4d8] sm:$0xff]  }
0x1799   : > { %v12278_v52 = vpack.c.bf16 %v12274_v33, %v12272_v20  ;;  %v10541_v46 = vld [vmem:[%s12956_s13 + $0x418] sm:$0xff]  }
0x179b   : > { %9160 = vmatmul.mubr.msk.bf16.vlgmr.msra.gmra.mrb[68].mxu1 %vm675_vm1, %v12278_v52  ;;  %9161 = vmatmul.mubr.msk.bf16.vlgmr.msra.gmra.mrb[68].mxu0 %vm675_vm1, %v12278_v52 }
0x179c   : > { %6806 = vmatpush1.bf16.msra.mxu1 %v9100_v34  ;;  %6849 = vmatpush1.bf16.msra.mxu0 %v9102_v38  ;;  %v9051_v34 = vld [vmem:[%s12954_s11 + $0x2a8] sm:$0xff]  ;;  %v9106_v38 = vcombine.low %v9035_v11, %v9043_v19 }
0x179d   : > { %6807 = vmatprep.subr.bf16.mxu1 %v9117_v5  ;;  %6850 = vmatprep.subr.bf16.mxu0 %v9119_v62  ;;  %v9123_v12 = vcombine.high %v9051_v34, %v9059_v35  ;;  %v9122_v44 = vcombine.low %v9051_v34, %v9059_v35  ;;  %v9044_v5 = vld [vmem:[%s12954_s11 + $0x270] sm:$0xff]  ;;  %v9037_v62 = vld [vmem:[%s12954_s11 + $0x238] sm:$0xff] }
0x179e   : > { %6837 = vmatprep.mubr.bf16.mxu1 %v10807_v59  ;;  %6880 = vmatprep.mubr.bf16.mxu0 %v10807_v59  ;;  %v9109_v9 = vcombine.high %v9036_v49, %v9044_v5  ;;  %v9108_v63 = vcombine.low %v9036_v49, %v9044_v5  ;;  %v9110_v0 = vcombine.low %v9037_v62, %v9045_v53  ;;  %v10546_v49 = vld [vmem:[%s12956_s13 + $0x4a0] sm:$0xff]   ;;  %v10547_v5 = vld [vmem:[%s12956_s13 + $0x468] sm:$0xff]  }
0x17a0   : > { %6808 = vmatpush1.bf16.msra.mxu1 %v9116_v57  ;;  %6851 = vmatpush1.bf16.msra.mxu0 %v9118_v58  ;;  %v9111_v57 = vcombine.high %v9037_v62, %v9045_v53  ;;  %v9052_v58 = vld [vmem:[%s12954_s11 + $0x2b0] sm:$0xff]  ;;  %v10548_v62 = vld [vmem:[%s12956_s13 + $0x4e8] sm:$0xff]  }
0x17a1   : > { %6809 = vmatprep.subr.bf16.mxu1 %v9133_v60  ;;  %6852 = vmatprep.subr.bf16.mxu0 %v9135_v21  ;;  %v9060_v60 = vld [vmem:[%s12954_s11 + $0x2f0] sm:$0xff]  ;;  %v9053_v21 = vld [vmem:[%s12954_s11 + $0x2b8] sm:$0xff]  ;;  %v10549_v53 = vld [vmem:[%s12956_s13 + $0x428] sm:$0xff]  }
0x17a2   : > { %v9125_v2 = vcombine.high %v9052_v58, %v9060_v60  ;;  %v9124_v15 = vcombine.low %v9052_v58, %v9060_v60  ;;  %v9126_v11 = vcombine.low %v9053_v21, %v9061_v61  ;;  %v10554_v58 = vld [vmem:[%s12956_s13 + $0x4b0] sm:$0xff]   ;;  %v10555_v60 = vld [vmem:[%s12956_s13 + $0x478] sm:$0xff]  }
0x17a4   : > { %6810 = vmatpush1.bf16.msra.mxu1 %v9132_v3  ;;  %6853 = vmatpush1.bf16.msra.mxu0 %v9134_v6  ;;  %v9127_v3 = vcombine.high %v9053_v21, %v9061_v61  ;;  %v9068_v6 = vld [vmem:[%s12954_s11 + $0x330] sm:$0xff]  ;;  %v10556_v21 = vld [vmem:[%s12956_s13 + $0x4f8] sm:$0xff]  }
0x17a5   : > { %6811 = vmatprep.subr.bf16.mxu1 %v9149_v8  ;;  %6854 = vmatprep.subr.bf16.mxu0 %v9151_v10  ;;  %v9076_v8 = vld [vmem:[%s12954_s11 + $0x370] sm:$0xff]  ;;  %v9069_v10 = vld [vmem:[%s12954_s11 + $0x338] sm:$0xff] }
0x17a6   : > { %v9141_v19 = vcombine.high %v9068_v6, %v9076_v8  ;;  %v9140_v18 = vcombine.low %v9068_v6, %v9076_v8  ;;  %v9142_v34 = vcombine.low %v9069_v10, %v9077_v17  ;;  %v10557_v61 = vld [vmem:[%s12956_s13 + $0x438] sm:$0xff]  }
0x17a8   : > { %6812 = vmatpush1.bf16.msra.mxu1 %v9148_v22  ;;  %6855 = vmatpush1.bf16.msra.mxu0 %v9150_v29  ;;  %v9143_v22 = vcombine.high %v9069_v10, %v9077_v17  ;;  %v9084_v29 = vld [vmem:[%s12954_s11 + $0x3b0] sm:$0xff] }
0x17a9   : > { %6891 = vmatprep.subr.bf16.mxu1 %v9105_v40  ;;  %6934 = vmatprep.subr.bf16.mxu0 %v9107_v30  ;;  %v9092_v40 = vld [vmem:[%s12954_s11 + $0x3f0] sm:$0xff]  ;;  %v9085_v30 = vld [vmem:[%s12954_s11 + $0x3b8] sm:$0xff] }
0x17aa   : > { %v9157_v35 = vcombine.high %v9084_v29, %v9092_v40 }
0x17ab   : > { %9162 = vmatmul.mubr.msk.bf16.vlgmr.msra.gmra.mrb[72].mxu1 %vm675_vm1, %v12278_v52  ;;  %9163 = vmatmul.mubr.msk.bf16.vlgmr.msra.gmra.mrb[72].mxu0 %vm675_vm1, %v12278_v52 }
0x17ac   : > { %6892 = vmatpush1.bf16.msra.mxu1 %v9104_v37  ;;  %6935 = vmatpush1.bf16.msra.mxu0 %v9106_v38  ;;  %v9159_v37 = vcombine.high %v9085_v30, %v9093_v32  ;;  %v9156_v38 = vcombine.low %v9084_v29, %v9092_v40 }
0x17ad   : > { %6893 = vmatprep.subr.bf16.mxu1 %v9121_v13  ;;  %6936 = vmatprep.subr.bf16.mxu0 %v9123_v12  ;;  %v9158_v13 = vcombine.low %v9085_v30, %v9093_v32  ;;  %v10527_v12 = vld [vmem:[%s12956_s13 + $0x440] sm:$0xff]  }
0x17ae   : > { %6923 = vmatprep.mubr.bf16.mxu1 %v10807_v59  ;;  %6966 = vmatprep.mubr.bf16.mxu0 %v10807_v59 }
0x17b0   : > { %6894 = vmatpush1.bf16.msra.mxu1 %v9120_v24  ;;  %6937 = vmatpush1.bf16.msra.mxu0 %v9122_v44  ;;  %v10533_v24 = vld [vmem:[%s12956_s13 + $0x408] sm:$0xff]  }
0x17b1   : > { %6895 = vmatprep.subr.bf16.mxu1 %v9137_v48  ;;  %6938 = vmatprep.subr.bf16.mxu0 %v9139_v50  ;;  %v10534_v44 = vld [vmem:[%s12956_s13 + $0x488] sm:$0xff]   ;;  %v10535_v48 = vld [vmem:[%s12956_s13 + $0x450] sm:$0xff]  }
0x17b2   : > { %v10537_v50 = vld [vmem:[%s12956_s13 + $0x410] sm:$0xff]  }
0x17b4   : > { %6896 = vmatpush1.bf16.msra.mxu1 %v9136_v47  ;;  %6939 = vmatpush1.bf16.msra.mxu0 %v9138_v54  ;;  %v10542_v47 = vld [vmem:[%s12956_s13 + $0x498] sm:$0xff]   ;;  %v10543_v54 = vld [vmem:[%s12956_s13 + $0x460] sm:$0xff]  }
0x17b5   : > { %6897 = vmatprep.subr.bf16.mxu1 %v9153_v55  ;;  %6940 = vmatprep.subr.bf16.mxu0 %v9155_v45  ;;  %v10544_v55 = vld [vmem:[%s12956_s13 + $0x4e0] sm:$0xff]  }
0x17b6   : > { %v10545_v45 = vld [vmem:[%s12956_s13 + $0x420] sm:$0xff]  }
0x17b8   : > { %6898 = vmatpush1.bf16.msra.mxu1 %v9152_v7  ;;  %6941 = vmatpush1.bf16.msra.mxu0 %v9154_v56  ;;  %v10550_v7 = vld [vmem:[%s12956_s13 + $0x4a8] sm:$0xff]   ;;  %v10551_v56 = vld [vmem:[%s12956_s13 + $0x470] sm:$0xff]  }
0x17b9   : > { %6977 = vmatprep.subr.bf16.mxu1 %v9109_v9  ;;  %7020 = vmatprep.subr.bf16.mxu0 %v9111_v57  ;;  %v10552_v9 = vld [vmem:[%s12956_s13 + $0x4f0] sm:$0xff]  }
0x17ba   : > { %v10553_v57 = vld [vmem:[%s12956_s13 + $0x430] sm:$0xff]  }
0x17bb   : > { %9164 = vmatmul.mubr.msk.bf16.vlgmr.msra.gmra.mrb[76].mxu1 %vm675_vm1, %v12278_v52  ;;  %9165 = vmatmul.mubr.msk.bf16.vlgmr.msra.gmra.mrb[76].mxu0 %vm675_vm1, %v12278_v52 }
0x17bc   : > { %6978 = vmatpush1.bf16.msra.mxu1 %v9108_v63  ;;  %7021 = vmatpush1.bf16.msra.mxu0 %v9110_v0  ;;  %v10558_v63 = vld [vmem:[%s12956_s13 + $0x4b8] sm:$0xff]   ;;  %v10559_v0 = vld [vmem:[%s12956_s13 + $0x540] sm:$0xff]  }
0x17bd   : > { %6979 = vmatprep.subr.bf16.mxu1 %v9125_v2  ;;  %7022 = vmatprep.subr.bf16.mxu0 %v9127_v3  ;;  %v10560_v2 = vld [vmem:[%s12956_s13 + $0x5c0] sm:$0xff]   ;;  %v9094_v3 = vld [vmem:[%s12955_s12 + $0x10] sm:$0xff] }
0x17be   : > { %7009 = vmatprep.mubr.bf16.mxu1 %v10807_v59  ;;  %7052 = vmatprep.mubr.bf16.mxu0 %v10807_v59  ;;  %v10528_v59 = vld [vmem:[%s12956_s13 + $0x4c0] sm:$0xff]   ;;  %v6319_v6 = vrot.slane %v9094_v3, %v11019_v14  ;;  %v6327_v8 = vrot.slane %v9094_v3, %v11126_v36  ;;  %v6323_v10 = vrot.slane %v9094_v3, %v11041_v26 }
0x17bf   : > { %v6331_v17 = vrot.slane %v9094_v3, %v11175_v4 }
0x17c0   : > { %6980 = vmatpush1.bf16.msra.mxu1 %v9124_v15  ;;  %7023 = vmatpush1.bf16.msra.mxu0 %v9126_v11 }
0x17c1   : > { %6981 = vmatprep.subr.bf16.mxu1 %v9141_v19  ;;  %7024 = vmatprep.subr.bf16.mxu0 %v9143_v22 }
0x17c4   : > { %6982 = vmatpush1.bf16.msra.mxu1 %v9140_v18  ;;  %7025 = vmatpush1.bf16.msra.mxu0 %v9142_v34 }
0x17c5   : > { %6983 = vmatprep.subr.bf16.mxu1 %v9157_v35  ;;  %7026 = vmatprep.subr.bf16.mxu0 %v9159_v37 }
0x17c8   : > { %6984 = vmatpush1.bf16.msra.mxu1 %v9156_v38  ;;  %7027 = vmatpush1.bf16.msra.mxu0 %v9158_v13 }
0x17c9   : > { %9850 = vmatprep.subr.bf16.mxu1 %v10527_v12  ;;  %9872 = vmatprep.subr.bf16.mxu0 %v10528_v59 }
0x17cb   : > { %9166 = vmatmul.mubr.msk.bf16.vlgmr.msra.gmra.mrb[80].mxu1 %vm675_vm1, %v12278_v52  ;;  %9167 = vmatmul.mubr.msk.bf16.vlgmr.msra.gmra.mrb[80].mxu0 %vm675_vm1, %v12278_v52  ;;  %v10536_v52 = vld [vmem:[%s12956_s13 + $0x4d0] sm:$0xff]  }
0x17cc   : > { %9851 = vmatpush3.bf16.msra.mxu1 %v10529_v16  ;;  %9873 = vmatpush3.bf16.msra.mxu0 %v10530_v42 }
0x17cd   : > { %9852 = vmatprep.subr.bf16.mxu1 %v10531_v23  ;;  %9874 = vmatprep.subr.bf16.mxu0 %v10532_v43 }
0x17d0   : > { %9853 = vmatpush3.bf16.msra.mxu1 %v10533_v24  ;;  %9875 = vmatpush3.bf16.msra.mxu0 %v10534_v44 }
0x17d1   : > { %9854 = vmatprep.subr.bf16.mxu1 %v10535_v48  ;;  %9876 = vmatprep.subr.bf16.mxu0 %v10536_v52 }
0x17d4   : > { %9855 = vmatpush3.bf16.msra.mxu1 %v10537_v50  ;;  %9877 = vmatpush3.bf16.msra.mxu0 %v10538_v39 }
0x17d5   : > { %9856 = vmatprep.subr.bf16.mxu1 %v10539_v41  ;;  %9878 = vmatprep.subr.bf16.mxu0 %v10540_v51 }
0x17d8   : > { %9857 = vmatpush3.bf16.msra.mxu1 %v10541_v46  ;;  %9879 = vmatpush3.bf16.msra.mxu0 %v10542_v47  ;;  %v10561_v46 = vld [vmem:[%s12956_s13 + $0x500] sm:$0xff]  }
0x17d9   : > { %9858 = vmatprep.subr.bf16.mxu1 %v10543_v54  ;;  %9880 = vmatprep.subr.bf16.mxu0 %v10544_v55  ;;  %v10562_v47 = vld [vmem:[%s12956_s13 + $0x580] sm:$0xff]   ;;  %v10563_v54 = vld [vmem:[%s12956_s13 + $0x548] sm:$0xff]  }
0x17da   : > { %v10564_v55 = vld [vmem:[%s12956_s13 + $0x5c8] sm:$0xff]  }
0x17dc   : > { %9859 = vmatpush3.bf16.msra.mxu1 %v10545_v45  ;;  %9881 = vmatpush3.bf16.msra.mxu0 %v10546_v49  ;;  %v10565_v45 = vld [vmem:[%s12956_s13 + $0x508] sm:$0xff]  }
0x17dd   : > { %9860 = vmatprep.subr.bf16.mxu1 %v10547_v5  ;;  %9882 = vmatprep.subr.bf16.mxu0 %v10548_v62  ;;  %v10566_v49 = vld [vmem:[%s12956_s13 + $0x588] sm:$0xff]   ;;  %v6335_v5 = vrot.slane %v9094_v3, %v11603_v25  ;;  %v6343_v62 = vrot.slane %v9094_v3, %v11606_v27 }
0x17e0   : > { %9861 = vmatpush3.bf16.msra.mxu1 %v10549_v53  ;;  %9883 = vmatpush3.bf16.msra.mxu0 %v10550_v7  ;;  %v10567_v53 = vld [vmem:[%s12956_s13 + $0x550] sm:$0xff]  }
0x17e1   : > { %9862 = vmatprep.subr.bf16.mxu1 %v10551_v56  ;;  %9884 = vmatprep.subr.bf16.mxu0 %v10552_v9  ;;  %v10568_v7 = vld [vmem:[%s12956_s13 + $0x5d0] sm:$0xff]   ;;  %v6339_v56 = vrot.slane %v9094_v3, %v11609_v28  ;;  %v6347_v9 = vrot.slane %v9094_v3, %v11612_v31  ;;  %v10571_v3 = vld [vmem:[%s12956_s13 + $0x558] sm:$0xff]  }
0x17e4   : > { %9863 = vmatpush3.bf16.msra.mxu1 %v10553_v57  ;;  %9885 = vmatpush3.bf16.msra.mxu0 %v10554_v58 }
0x17e5   : > { %9864 = vmatprep.subr.bf16.mxu1 %v10555_v60  ;;  %9886 = vmatprep.subr.bf16.mxu0 %v10556_v21  ;;  %v10569_v60 = vld [vmem:[%s12956_s13 + $0x510] sm:$0xff]  }
0x17e6   : > { %v10570_v21 = vld [vmem:[%s12956_s13 + $0x590] sm:$0xff]  }
0x17e8   : > { %9865 = vmatpush3.bf16.msra.mxu1 %v10557_v61  ;;  %9887 = vmatpush3.bf16.msra.mxu0 %v10558_v63 }
0x17e9   : > { %9894 = vmatprep.subr.bf16.mxu1 %v10559_v0  ;;  %9916 = vmatprep.subr.bf16.mxu0 %v10560_v2 }
0x186e   : > { %v6753_v15 = vpop.f32.mrb[68].mxu1  ;;  %v6796_v11 = vpop.f32.mrb[68].mxu0 }
0x186f   : > { %v6754_v19 = vadd.f32 %v6753_v15, %v6319_v6  ;;  %v6797_v22 = vadd.f32 %v6796_v11, %v6327_v8  ;;  %v6755_v29 = vpop.f32.mrb[69].mxu1  ;;  %v6798_v40 = vpop.f32.mrb[69].mxu0 }
0x1870   : > { %v6756_v30 = vadd.f32 %v6755_v29, %v6323_v10  ;;  %v6799_v32 = vadd.f32 %v6798_v40, %v6331_v17  ;;  %v6757_v18 = vpop.f32.mrb[70].mxu1  ;;  %v6800_v34 = vpop.f32.mrb[70].mxu0 }
0x1871   : > { %v6758_v35 = vadd.f32 %v6757_v18, %v6319_v6  ;;  %v6801_v37 = vadd.f32 %v6800_v34, %v6327_v8  ;;  %v6759_v38 = vpop.f32.mrb[71].mxu1  ;;  %v6802_v13 = vpop.f32.mrb[71].mxu0  ;;  %v7063_v16 = vmax.f32 %v6754_v19, 0.0  ;;  %v7065_v42 = vmax.f32 %v6797_v22, 0.0  ;;  %v10572_v6 = vld [vmem:[%s12956_s13 + $0x5d8] sm:$0xff]  }
0x1872   : > { %v6760_v12 = vadd.f32 %v6759_v38, %v6323_v10  ;;  %v6803_v59 = vadd.f32 %v6802_v13, %v6331_v17  ;;  %v7064_v24 = vmax.f32 %v6756_v30, 0.0  ;;  %v7066_v44 = vmax.f32 %v6799_v32, 0.0  ;;  %v10573_v32 = vld [vmem:[%s12956_s13 + $0x518] sm:$0xff]   ;;  %v10575_v13 = vld [vmem:[%s12956_s13 + $0x560] sm:$0xff]  }
0x1873   : > { %v7079_v23 = vmax.f32 %v6758_v35, 0.0  ;;  %v7081_v43 = vmax.f32 %v6801_v37, 0.0  ;;  %v10574_v18 = vld [vmem:[%s12956_s13 + $0x598] sm:$0xff]  }
0x1874   : > { %v7080_v48 = vmax.f32 %v6760_v12, 0.0  ;;  %v7082_v52 = vmax.f32 %v6803_v59, 0.0  ;;  %v10576_v12 = vld [vmem:[%s12956_s13 + $0x5e0] sm:$0xff]  }
0x1875   : > { %v7095_v50 = vpack.c.bf16 %v7079_v23, %v7063_v16  ;;  %v7097_v39 = vpack.c.bf16 %v7081_v43, %v7065_v42 }
0x1876   : > { %v7096_v41 = vpack.c.bf16 %v7080_v48, %v7064_v24  ;;  %v7098_v51 = vpack.c.bf16 %v7082_v52, %v7066_v44  ;;  %v10577_v52 = vld [vmem:[%s12956_s13 + $0x520] sm:$0xff]  }
0x1878   : > { %8176 = vmatprep.mubr.bf16.mxu1 %v7096_v41  ;;  %8217 = vmatprep.mubr.bf16.mxu0 %v7098_v51  ;;  %v10580_v41 = vld [vmem:[%s12956_s13 + $0x5e8] sm:$0xff]   ;;  %v12602_v51 = vld [vmem:[%s12955_s12 + $0x18] sm:$0xff] }
0x1879   : > { %8177 = vmatmul.mubr.bf16.vlgmr.msra.gmra.mrb[84].mxu1 %v7095_v50  ;;  %8218 = vmatmul.mubr.bf16.vlgmr.msra.gmra.mrb[84].mxu0 %v7097_v39  ;;  %v10578_v50 = vld [vmem:[%s12956_s13 + $0x5a0] sm:$0xff]   ;;  %v10579_v39 = vld [vmem:[%s12956_s13 + $0x568] sm:$0xff]  }
0x187a   : > { %9895 = vmatpush3.bf16.msra.mxu1 %v10561_v46  ;;  %9917 = vmatpush3.bf16.msra.mxu0 %v10562_v47  ;;  %v10581_v46 = vld [vmem:[%s12956_s13 + $0x528] sm:$0xff]  }
0x187b   : > { %9896 = vmatprep.subr.bf16.mxu1 %v10563_v54  ;;  %9918 = vmatprep.subr.bf16.mxu0 %v10564_v55  ;;  %v10582_v47 = vld [vmem:[%s12956_s13 + $0x5a8] sm:$0xff]   ;;  %v6351_v54 = vrot.slane %v12602_v51, %v11019_v14  ;;  %v6359_v55 = vrot.slane %v12602_v51, %v11126_v36  ;;  %v10585_v14 = vld [vmem:[%s12956_s13 + $0x530] sm:$0xff]  }
0x187c   : > { %v10586_v36 = vld [vmem:[%s12956_s13 + $0x5b0] sm:$0xff]  }
0x187e   : > { %v6839_v57 = vpop.f32.mrb[72].mxu1  ;;  %v6882_v58 = vpop.f32.mrb[72].mxu0  ;;  %9897 = vmatpush3.bf16.msra.mxu1 %v10565_v45  ;;  %9919 = vmatpush3.bf16.msra.mxu0 %v10566_v49  ;;  %v10583_v45 = vld [vmem:[%s12956_s13 + $0x570] sm:$0xff]  }
0x187f   : > { %v6840_v61 = vadd.f32 %v6839_v57, %v6335_v5  ;;  %v6883_v63 = vadd.f32 %v6882_v58, %v6343_v62  ;;  %v6841_v0 = vpop.f32.mrb[73].mxu1  ;;  %v6884_v2 = vpop.f32.mrb[73].mxu0  ;;  %9898 = vmatprep.subr.bf16.mxu1 %v10567_v53  ;;  %9920 = vmatprep.subr.bf16.mxu0 %v10568_v7  ;;  %v10584_v49 = vld [vmem:[%s12956_s13 + $0x5f0] sm:$0xff]  }
0x1880   : > { %v6842_v8 = vadd.f32 %v6841_v0, %v6339_v56  ;;  %v6885_v10 = vadd.f32 %v6884_v2, %v6347_v9  ;;  %v6843_v17 = vpop.f32.mrb[74].mxu1  ;;  %v6886_v15 = vpop.f32.mrb[74].mxu0 }
0x1881   : > { %v6844_v11 = vadd.f32 %v6843_v17, %v6335_v5  ;;  %v6887_v19 = vadd.f32 %v6886_v15, %v6343_v62  ;;  %v6845_v22 = vpop.f32.mrb[75].mxu1  ;;  %v6888_v29 = vpop.f32.mrb[75].mxu0  ;;  %v7067_v34 = vmax.f32 %v6840_v61, 0.0  ;;  %v7069_v35 = vmax.f32 %v6883_v63, 0.0  ;;  %v10589_v17 = vld [vmem:[%s12956_s13 + $0x538] sm:$0xff]  }
0x1882   : > { %v6846_v40 = vadd.f32 %v6845_v22, %v6339_v56  ;;  %v6889_v30 = vadd.f32 %v6888_v29, %v6347_v9  ;;  %9899 = vmatpush3.bf16.msra.mxu1 %v10569_v60  ;;  %9921 = vmatpush3.bf16.msra.mxu0 %v10570_v21  ;;  %v7068_v59 = vmax.f32 %v6842_v8, 0.0  ;;  %v7070_v16 = vmax.f32 %v6885_v10, 0.0  ;;  %v10590_v15 = vld [vmem:[%s12956_s13 + $0x5b8] sm:$0xff]  }
0x1883   : > { %v7083_v37 = vmax.f32 %v6844_v11, 0.0  ;;  %v7085_v38 = vmax.f32 %v6887_v19, 0.0  ;;  %9900 = vmatprep.subr.bf16.mxu1 %v10571_v3  ;;  %9922 = vmatprep.subr.bf16.mxu0 %v10572_v6  ;;  %v6355_v5 = vrot.slane %v12602_v51, %v11041_v26  ;;  %v6363_v62 = vrot.slane %v12602_v51, %v11175_v4  ;;  %v10587_v26 = vld [vmem:[%s12956_s13 + $0x578] sm:$0xff]  }
0x1884   : > { %v7084_v42 = vmax.f32 %v6846_v40, 0.0  ;;  %v7086_v23 = vmax.f32 %v6889_v30, 0.0  ;;  %v10588_v4 = vld [vmem:[%s12956_s13 + $0x5f8] sm:$0xff]   ;;  %v10591_v40 = vld [vmem:[%s12956_s13 + $0x640] sm:$0xff]  }
0x1885   : > { %v12583_v43 = vpack.c.bf16 %v7083_v37, %v7067_v34  ;;  %v12585_v24 = vpack.c.bf16 %v7085_v38, %v7069_v35  ;;  %v10592_v30 = vld [vmem:[%s12956_s13 + $0x6c0] sm:$0xff]  }
0x1886   : > { %v7100_v44 = vpack.c.bf16 %v7084_v42, %v7068_v59  ;;  %v7102_v48 = vpack.c.bf16 %v7086_v23, %v7070_v16  ;;  %9901 = vmatpush3.bf16.msra.mxu1 %v10573_v32  ;;  %9923 = vmatpush3.bf16.msra.mxu0 %v10574_v18  ;;  %v10593_v59 = vld [vmem:[%s12956_s13 + $0x600] sm:$0xff]   ;;  %v10595_v42 = vld [vmem:[%s12956_s13 + $0x648] sm:$0xff]  }
0x1887   : > { %9902 = vmatprep.subr.bf16.mxu1 %v10575_v13  ;;  %9924 = vmatprep.subr.bf16.mxu0 %v10576_v12  ;;  %v10594_v16 = vld [vmem:[%s12956_s13 + $0x680] sm:$0xff]   ;;  %v10596_v23 = vld [vmem:[%s12956_s13 + $0x6c8] sm:$0xff]  }
0x1888   : > { %8258 = vmatprep.mubr.bf16.mxu1 %v7100_v44  ;;  %8299 = vmatprep.mubr.bf16.mxu0 %v7102_v48  ;;  %v10597_v44 = vld [vmem:[%s12956_s13 + $0x608] sm:$0xff]   ;;  %v6367_v48 = vrot.slane %v12602_v51, %v11603_v25  ;;  %v10600_v25 = vld [vmem:[%s12956_s13 + $0x6d0] sm:$0xff]  }
0x188a   : > { %9903 = vmatpush3.bf16.msra.mxu1 %v10577_v52  ;;  %9925 = vmatpush3.bf16.msra.mxu0 %v10578_v50  ;;  %v6375_v52 = vrot.slane %v12602_v51, %v11606_v27  ;;  %v6371_v50 = vrot.slane %v12602_v51, %v11609_v28  ;;  %v10602_v28 = vld [vmem:[%s12956_s13 + $0x690] sm:$0xff]  }
0x188b   : > { %9904 = vmatprep.subr.bf16.mxu1 %v10579_v39  ;;  %9926 = vmatprep.subr.bf16.mxu0 %v10580_v41  ;;  %v6379_v39 = vrot.slane %v12602_v51, %v11612_v31  ;;  %v10603_v31 = vld [vmem:[%s12956_s13 + $0x658] sm:$0xff]  }
0x188e   : > { %v6925_v53 = vpop.f32.mrb[76].mxu1  ;;  %v6968_v7 = vpop.f32.mrb[76].mxu0  ;;  %9905 = vmatpush3.bf16.msra.mxu1 %v10581_v46  ;;  %9927 = vmatpush3.bf16.msra.mxu0 %v10582_v47  ;;  %v10601_v46 = vld [vmem:[%s12956_s13 + $0x610] sm:$0xff]  }
0x188f   : > { %v6926_v56 = vadd.f32 %v6925_v53, %v6351_v54  ;;  %v6969_v9 = vadd.f32 %v6968_v7, %v6359_v55  ;;  %v6927_v57 = vpop.f32.mrb[77].mxu1  ;;  %v6970_v58 = vpop.f32.mrb[77].mxu0  ;;  %9906 = vmatprep.subr.bf16.mxu1 %v10583_v45  ;;  %9928 = vmatprep.subr.bf16.mxu0 %v10584_v49  ;;  %v10604_v53 = vld [vmem:[%s12956_s13 + $0x6d8] sm:$0xff]  }
0x1890   : > { %v6928_v60 = vadd.f32 %v6927_v57, %v6355_v5  ;;  %v6971_v21 = vadd.f32 %v6970_v58, %v6363_v62  ;;  %v6929_v61 = vpop.f32.mrb[78].mxu1  ;;  %v6972_v63 = vpop.f32.mrb[78].mxu0  ;;  %v10605_v58 = vld [vmem:[%s12956_s13 + $0x618] sm:$0xff]  }
0x1891   : > { %v6930_v0 = vadd.f32 %v6929_v61, %v6351_v54  ;;  %v6973_v2 = vadd.f32 %v6972_v63, %v6359_v55  ;;  %v6931_v3 = vpop.f32.mrb[79].mxu1  ;;  %v6974_v6 = vpop.f32.mrb[79].mxu0  ;;  %v7071_v11 = vmax.f32 %v6926_v56, 0.0  ;;  %v7073_v19 = vmax.f32 %v6969_v9, 0.0  ;;  %v10606_v61 = vld [vmem:[%s12956_s13 + $0x698] sm:$0xff]   ;;  %v10607_v63 = vld [vmem:[%s12956_s13 + $0x660] sm:$0xff]  }
0x1892   : > { %v6932_v8 = vadd.f32 %v6931_v3, %v6355_v5  ;;  %v6975_v10 = vadd.f32 %v6974_v6, %v6363_v62  ;;  %9907 = vmatpush3.bf16.msra.mxu1 %v10585_v14  ;;  %9929 = vmatpush3.bf16.msra.mxu0 %v10586_v36  ;;  %v7072_v32 = vmax.f32 %v6928_v60, 0.0  ;;  %v7074_v18 = vmax.f32 %v6971_v21, 0.0 }
0x1893   : > { %v7087_v22 = vmax.f32 %v6930_v0, 0.0  ;;  %v7089_v29 = vmax.f32 %v6973_v2, 0.0  ;;  %9908 = vmatprep.subr.bf16.mxu1 %v10587_v26  ;;  %9930 = vmatprep.subr.bf16.mxu0 %v10588_v4 }
0x1894   : > { %v7088_v34 = vmax.f32 %v6932_v8, 0.0  ;;  %v7090_v35 = vmax.f32 %v6975_v10, 0.0  ;;  %v10608_v8 = vld [vmem:[%s12956_s13 + $0x6e0] sm:$0xff]  }
0x1895   : > { %v12648_v37 = vpack.c.bf16 %v7087_v22, %v7071_v11  ;;  %v12650_v38 = vpack.c.bf16 %v7089_v29, %v7073_v19  ;;  %v10609_v19 = vld [vmem:[%s12956_s13 + $0x620] sm:$0xff]   ;;  %v10611_v29 = vld [vmem:[%s12956_s13 + $0x668] sm:$0xff]  }
0x1896   : > { %v7104_v13 = vpack.c.bf16 %v7088_v34, %v7072_v32  ;;  %v7106_v12 = vpack.c.bf16 %v7090_v35, %v7074_v18  ;;  %9909 = vmatpush3.bf16.msra.mxu1 %v10589_v17  ;;  %9931 = vmatpush3.bf16.msra.mxu0 %v10590_v15  ;;  %v10610_v22 = vld [vmem:[%s12956_s13 + $0x6a0] sm:$0xff]   ;;  %v10614_v32 = vld [vmem:[%s12956_s13 + $0x6a8] sm:$0xff]   ;;  %v10615_v18 = vld [vmem:[%s12956_s13 + $0x670] sm:$0xff]  }
0x1897   : > { %9938 = vmatprep.subr.bf16.mxu1 %v10591_v40  ;;  %9960 = vmatprep.subr.bf16.mxu0 %v10592_v30  ;;  %v10612_v40 = vld [vmem:[%s12956_s13 + $0x6e8] sm:$0xff]   ;;  %v10616_v34 = vld [vmem:[%s12956_s13 + $0x6f0] sm:$0xff]  }
0x1898   : > { %v10613_v30 = vld [vmem:[%s12956_s13 + $0x628] sm:$0xff]   ;;  %v10617_v35 = vld [vmem:[%s12956_s13 + $0x630] sm:$0xff]  }
0x1899   : > { %8259 = vmatmul.mubr.bf16.vlgmr.msra.gmra.mrb[88].mxu1 %v12583_v43  ;;  %8300 = vmatmul.mubr.bf16.vlgmr.msra.gmra.mrb[88].mxu0 %v12585_v24  ;;  %v10598_v43 = vld [vmem:[%s12956_s13 + $0x688] sm:$0xff]   ;;  %v10599_v24 = vld [vmem:[%s12956_s13 + $0x650] sm:$0xff]  }
0x189a   : > { %9939 = vmatpush3.bf16.msra.mxu1 %v10593_v59  ;;  %8340 = vmatprep.mubr.bf16.mxu1 %v7104_v13  ;;  %v10618_v13 = vld [vmem:[%s12956_s13 + $0x6b0] sm:$0xff]   ;;  %v10620_v59 = vld [vmem:[%s12956_s13 + $0x6f8] sm:$0xff]  }
0x189b   : > { %9961 = vmatpush3.bf16.msra.mxu0 %v10594_v16  ;;  %8381 = vmatprep.mubr.bf16.mxu0 %v7106_v12  ;;  %v10619_v12 = vld [vmem:[%s12956_s13 + $0x678] sm:$0xff]  }
0x189c   : > { %9940 = vmatprep.subr.bf16.mxu1 %v10595_v42  ;;  %9962 = vmatprep.subr.bf16.mxu0 %v10596_v23  ;;  %v10621_v16 = vld [vmem:[%s12956_s13 + $0x638] sm:$0xff]   ;;  %v10623_v23 = vld [vmem:[%s12956_s13 + $0x740] sm:$0xff]  }
0x189d   : > { %v10622_v42 = vld [vmem:[%s12956_s13 + $0x6b8] sm:$0xff]  }
0x189e   : > { %v7011_v27 = vpop.f32.mrb[80].mxu1  ;;  %v7054_v41 = vpop.f32.mrb[80].mxu0  ;;  %9941 = vmatpush3.bf16.msra.mxu1 %v10597_v44  ;;  %v10624_v44 = vld [vmem:[%s12956_s13 + $0x7c0] sm:$0xff]  }
0x189f   : > { %v7012_v47 = vadd.f32 %v7011_v27, %v6367_v48  ;;  %v7055_v54 = vadd.f32 %v7054_v41, %v6375_v52  ;;  %9963 = vmatpush3.bf16.msra.mxu0 %v10598_v43  ;;  %v7013_v55 = vpop.f32.mrb[81].mxu1  ;;  %v7056_v45 = vpop.f32.mrb[81].mxu0  ;;  %9942 = vmatprep.subr.bf16.mxu1 %v10599_v24  ;;  %v10627_v43 = vld [vmem:[%s12956_s13 + $0x748] sm:$0xff]   ;;  %v10634_v27 = vld [vmem:[%s12956_s13 + $0x790] sm:$0xff]   ;;  %v10635_v41 = vld [vmem:[%s12956_s13 + $0x758] sm:$0xff]  }
0x18a0   : > { %v7014_v51 = vadd.f32 %v7013_v55, %v6371_v50  ;;  %v7057_v49 = vadd.f32 %v7056_v45, %v6379_v39  ;;  %v7015_v5 = vpop.f32.mrb[82].mxu1  ;;  %v7058_v62 = vpop.f32.mrb[82].mxu0  ;;  %9964 = vmatprep.subr.bf16.mxu0 %v10600_v25  ;;  %v10628_v24 = vld [vmem:[%s12956_s13 + $0x7c8] sm:$0xff]   ;;  %v10633_v25 = vld [vmem:[%s12956_s13 + $0x710] sm:$0xff]   ;;  %v10639_v55 = vld [vmem:[%s12956_s13 + $0x760] sm:$0xff]  }
0x18a1   : > { %v7016_v7 = vadd.f32 %v7015_v5, %v6367_v48  ;;  %v7059_v14 = vadd.f32 %v7058_v62, %v6375_v52  ;;  %v7017_v36 = vpop.f32.mrb[83].mxu1  ;;  %v7060_v56 = vpop.f32.mrb[83].mxu0  ;;  %v7075_v26 = vmax.f32 %v7012_v47, 0.0  ;;  %v7077_v4 = vmax.f32 %v7055_v54, 0.0  ;;  %v10625_v48 = vld [vmem:[%s12956_s13 + $0x700] sm:$0xff]   ;;  %v10637_v47 = vld [vmem:[%s12956_s13 + $0x718] sm:$0xff]  }
0x18a2   : > { %v7018_v9 = vadd.f32 %v7017_v36, %v6371_v50  ;;  %v7061_v57 = vadd.f32 %v7060_v56, %v6379_v39  ;;  %9943 = vmatpush3.bf16.msra.mxu1 %v10601_v46  ;;  %v7076_v0 = vmax.f32 %v7014_v51, 0.0  ;;  %v7078_v2 = vmax.f32 %v7057_v49, 0.0  ;;  %v10626_v52 = vld [vmem:[%s12956_s13 + $0x780] sm:$0xff]   ;;  %v10629_v50 = vld [vmem:[%s12956_s13 + $0x708] sm:$0xff]   ;;  %v10636_v46 = vld [vmem:[%s12956_s13 + $0x7d8] sm:$0xff]  }
0x18a3   : > { %v7091_v60 = vmax.f32 %v7016_v7, 0.0  ;;  %v7093_v21 = vmax.f32 %v7059_v14, 0.0  ;;  %9965 = vmatpush3.bf16.msra.mxu0 %v10602_v28  ;;  %9944 = vmatprep.subr.bf16.mxu1 %v10603_v31  ;;  %v10630_v39 = vld [vmem:[%s12956_s13 + $0x788] sm:$0xff]   ;;  %v10638_v54 = vld [vmem:[%s12956_s13 + $0x798] sm:$0xff]   ;;  %v10640_v45 = vld [vmem:[%s12956_s13 + $0x7e0] sm:$0xff]  }
0x18a4   : > { %v7092_v3 = vmax.f32 %v7018_v9, 0.0  ;;  %v7094_v6 = vmax.f32 %v7061_v57, 0.0  ;;  %9966 = vmatprep.subr.bf16.mxu0 %v10604_v53  ;;  %v10641_v28 = vld [vmem:[%s12956_s13 + $0x720] sm:$0xff]   ;;  %v10643_v51 = vld [vmem:[%s12956_s13 + $0x768] sm:$0xff]   ;;  %v10647_v53 = vld [vmem:[%s12956_s13 + $0x770] sm:$0xff]  }
0x18a5   : > { %v12710_v10 = vpack.c.bf16 %v7091_v60, %v7075_v26  ;;  %v12712_v17 = vpack.c.bf16 %v7093_v21, %v7077_v4  ;;  %v10642_v31 = vld [vmem:[%s12956_s13 + $0x7a0] sm:$0xff]   ;;  %v10644_v49 = vld [vmem:[%s12956_s13 + $0x7e8] sm:$0xff]   ;;  %v10648_v7 = vld [vmem:[%s12956_s13 + $0x7f0] sm:$0xff]  }
0x18a6   : > { %v7108_v15 = vpack.c.bf16 %v7092_v3, %v7076_v0  ;;  %v7110_v11 = vpack.c.bf16 %v7094_v6, %v7078_v2  ;;  %9945 = vmatpush3.bf16.msra.mxu1 %v10605_v58  ;;  %v10645_v5 = vld [vmem:[%s12956_s13 + $0x728] sm:$0xff]   ;;  %v10649_v14 = vld [vmem:[%s12956_s13 + $0x730] sm:$0xff]   ;;  %v10651_v56 = vld [vmem:[%s12956_s13 + $0x778] sm:$0xff]  }
0x18a7   : > { %9967 = vmatpush3.bf16.msra.mxu0 %v10606_v61  ;;  %9946 = vmatprep.subr.bf16.mxu1 %v10607_v63  ;;  %v10646_v62 = vld [vmem:[%s12956_s13 + $0x7a8] sm:$0xff]   ;;  %v10650_v36 = vld [vmem:[%s12956_s13 + $0x7b0] sm:$0xff]   ;;  %v10652_v9 = vld [vmem:[%s12956_s13 + $0x7f8] sm:$0xff]  }
0x18a8   : > { %9968 = vmatprep.subr.bf16.mxu0 %v10608_v8  ;;  %v10653_v57 = vld [vmem:[%s12956_s13 + $0x738] sm:$0xff]   ;;  %v9425_v60 = vld [vmem:[%s12957_s14 + $0x1] ss:$0 sm:$0xff] }
0x18a9   : > { %v10654_v58 = vld [vmem:[%s12956_s13 + $0x7b8] sm:$0xff]  }
0x18aa   : > { %9947 = vmatpush3.bf16.msra.mxu1 %v10609_v19 }
0x18ab   : > { %9969 = vmatpush3.bf16.msra.mxu0 %v10610_v22  ;;  %9948 = vmatprep.subr.bf16.mxu1 %v10611_v29 }
0x18ac   : > { %9970 = vmatprep.subr.bf16.mxu0 %v10612_v40 }
0x18ae   : > { %9949 = vmatpush3.bf16.msra.mxu1 %v10613_v30 }
0x18af   : > { %9971 = vmatpush3.bf16.msra.mxu0 %v10614_v32  ;;  %9950 = vmatprep.subr.bf16.mxu1 %v10615_v18 }
0x18b0   : > { %9972 = vmatprep.subr.bf16.mxu0 %v10616_v34 }
0x18b2   : > { %9951 = vmatpush3.bf16.msra.mxu1 %v10617_v35 }
0x18b3   : > { %9973 = vmatpush3.bf16.msra.mxu0 %v10618_v13  ;;  %9952 = vmatprep.subr.bf16.mxu1 %v10619_v12 }
0x18b4   : > { %9974 = vmatprep.subr.bf16.mxu0 %v10620_v59 }
0x18b6   : > { %9953 = vmatpush3.bf16.msra.mxu1 %v10621_v16 }
0x18b7   : > { %9975 = vmatpush3.bf16.msra.mxu0 %v10622_v42  ;;  %9982 = vmatprep.subr.bf16.mxu1 %v10623_v23 }
0x18b8   : > { %10004 = vmatprep.subr.bf16.mxu0 %v10624_v44 }
0x18b9   : > { %8341 = vmatmul.mubr.bf16.vlgmr.msra.gmra.mrb[92].mxu1 %v12648_v37  ;;  %v10631_v37 = vld [vmem:[%s12956_s13 + $0x750] sm:$0xff]  }
0x18ba   : > { %8382 = vmatmul.mubr.bf16.vlgmr.msra.gmra.mrb[92].mxu0 %v12650_v38  ;;  %9983 = vmatpush3.bf16.msra.mxu1 %v10625_v48  ;;  %v10632_v38 = vld [vmem:[%s12956_s13 + $0x7d0] sm:$0xff]  }
0x18bb   : > { %8422 = vmatprep.mubr.bf16.mxu1 %v7108_v15  ;;  %10005 = vmatpush3.bf16.msra.mxu0 %v10626_v52 }
0x18bc   : > { %8463 = vmatprep.mubr.bf16.mxu0 %v7110_v11  ;;  %9984 = vmatprep.subr.bf16.mxu1 %v10627_v43 }
0x18bd   : > { %10006 = vmatprep.subr.bf16.mxu0 %v10628_v24 }
0x18be   : > { %9985 = vmatpush3.bf16.msra.mxu1 %v10629_v50 }
0x18bf   : > { %10007 = vmatpush3.bf16.msra.mxu0 %v10630_v39  ;;  %9986 = vmatprep.subr.bf16.mxu1 %v10631_v37 }
0x18c0   : > { %10008 = vmatprep.subr.bf16.mxu0 %v10632_v38 }
0x18c2   : > { %9987 = vmatpush3.bf16.msra.mxu1 %v10633_v25 }
0x18c3   : > { %10009 = vmatpush3.bf16.msra.mxu0 %v10634_v27  ;;  %9988 = vmatprep.subr.bf16.mxu1 %v10635_v41 }
0x18c4   : > { %10010 = vmatprep.subr.bf16.mxu0 %v10636_v46 }
0x18c6   : > { %9989 = vmatpush3.bf16.msra.mxu1 %v10637_v47 }
0x18c7   : > { %10011 = vmatpush3.bf16.msra.mxu0 %v10638_v54  ;;  %9990 = vmatprep.subr.bf16.mxu1 %v10639_v55 }
0x18c8   : > { %10012 = vmatprep.subr.bf16.mxu0 %v10640_v45 }
0x18ca   : > { %9991 = vmatpush3.bf16.msra.mxu1 %v10641_v28 }
0x18cb   : > { %10013 = vmatpush3.bf16.msra.mxu0 %v10642_v31  ;;  %9992 = vmatprep.subr.bf16.mxu1 %v10643_v51 }
0x18cc   : > { %10014 = vmatprep.subr.bf16.mxu0 %v10644_v49 }
0x18ce   : > { %9993 = vmatpush3.bf16.msra.mxu1 %v10645_v5 }
0x18cf   : > { %10015 = vmatpush3.bf16.msra.mxu0 %v10646_v62  ;;  %9994 = vmatprep.subr.bf16.mxu1 %v10647_v53 }
0x18d0   : > { %10016 = vmatprep.subr.bf16.mxu0 %v10648_v7 }
0x18d2   : > { %9995 = vmatpush3.bf16.msra.mxu1 %v10649_v14 }
0x18d3   : > { %10017 = vmatpush3.bf16.msra.mxu0 %v10650_v36  ;;  %9996 = vmatprep.subr.bf16.mxu1 %v10651_v56 }
0x18d4   : > { %10018 = vmatprep.subr.bf16.mxu0 %v10652_v9 }
0x18d6   : > { %9997 = vmatpush3.bf16.msra.mxu1 %v10653_v57 }
0x18d7   : > { %10019 = vmatpush3.bf16.msra.mxu0 %v10654_v58  ;;  %10287 = vmatprep.subr.bf16.mxu1 %v10805_v1 }
0x18d9   : > { %8423 = vmatmul.mubr.bf16.vlgmr.msra.gmra.mrb[96].mxu1 %v12710_v10 }
0x18da   : > { %8464 = vmatmul.mubr.bf16.vlgmr.msra.gmra.mrb[96].mxu0 %v12712_v17  ;;  %10295 = vmatprep.mubr.msk.bf16.mxu1 %vm10806_vm0, %v10805_v1 }
0x194c   : > { %v9866_v26 = vpop.f32.mrb[84].mxu1  ;;  %v9888_v4 = vpop.f32.mrb[84].mxu0 }
0x194d   : > { %v9867_v21 = vpop.f32.mrb[85].mxu1  ;;  %v9889_v61 = vpop.f32.mrb[85].mxu0 }
0x194e   : > { %v9868_v63 = vadd.f32 %v9867_v21, %v9866_v26  ;;  %v9890_v0 = vadd.f32 %v9889_v61, %v9888_v4  ;;  %v9869_v2 = vpop.f32.mrb[86].mxu1  ;;  %v9891_v3 = vpop.f32.mrb[86].mxu0 }
0x194f   : > { %v9870_v6 = vpop.f32.mrb[87].mxu1  ;;  %v9892_v8 = vpop.f32.mrb[87].mxu0 }
0x1950   : > { %v8179_v10 = vadd.f32 %v9868_v63, %v9425_v60  ;;  %v9871_v15 = vadd.f32 %v9870_v6, %v9869_v2  ;;  %v9893_v17 = vadd.f32 %v9892_v8, %v9891_v3 }
0x1952   : > { %v8220_v11 = vadd.f32 %v9890_v0, %v8179_v10  ;;  %v8182_v19 = vadd.f32 %v9871_v15, %v9425_v60 }
0x1954   : > { %v8223_v22 = vadd.f32 %v9893_v17, %v8182_v19 }
0x196c   : > { %v9910_v29 = vpop.f32.mrb[88].mxu1  ;;  %v9932_v40 = vpop.f32.mrb[88].mxu0 }
0x196d   : > { %v9911_v30 = vpop.f32.mrb[89].mxu1  ;;  %v9933_v32 = vpop.f32.mrb[89].mxu0 }
0x196e   : > { %v9912_v18 = vadd.f32 %v9911_v30, %v9910_v29  ;;  %v9934_v34 = vadd.f32 %v9933_v32, %v9932_v40  ;;  %v9913_v35 = vpop.f32.mrb[90].mxu1  ;;  %v9935_v13 = vpop.f32.mrb[90].mxu0  ;;  %v10656_v29 = vld [vmem:[%s12960_s17 + $0x8] sm:$0xff]   ;;  %v10657_v40 = vld [vmem:[%s12960_s17 + $0x10] sm:$0xff]   ;;  %v10658_v30 = vld [vmem:[%s12960_s17 + $0x18] sm:$0xff]  }
0x196f   : > { %v9914_v12 = vpop.f32.mrb[91].mxu1  ;;  %v9936_v59 = vpop.f32.mrb[91].mxu0 }
0x1970   : > { %v8261_v16 = vadd.f32 %v9912_v18, %v8220_v11  ;;  %v9915_v42 = vadd.f32 %v9914_v12, %v9913_v35  ;;  %v9937_v23 = vadd.f32 %v9936_v59, %v9935_v13 }
0x1972   : > { %v8302_v44 = vadd.f32 %v9934_v34, %v8261_v16  ;;  %v8264_v48 = vadd.f32 %v9915_v42, %v8223_v22  ;;  %v9555_v16 = vld [vmem:[%s12958_s15 + $0x1] ss:$0 sm:$0xff] }
0x1974   : > { %v8305_v52 = vadd.f32 %v9937_v23, %v8264_v48  ;;  %v9557_v48 = vld [vmem:[%s12959_s16 + $0x1] ss:$0 sm:$0xff] }
0x198c   : > { %v9954_v43 = vpop.f32.mrb[92].mxu1 }
0x198d   : > { %v9976_v24 = vpop.f32.mrb[92].mxu0  ;;  %v9955_v50 = vpop.f32.mrb[93].mxu1 }
0x198e   : > { %v9956_v39 = vadd.f32 %v9955_v50, %v9954_v43  ;;  %v9977_v37 = vpop.f32.mrb[93].mxu0  ;;  %v9957_v38 = vpop.f32.mrb[94].mxu1 }
0x198f   : > { %v9978_v25 = vadd.f32 %v9977_v37, %v9976_v24  ;;  %v9979_v27 = vpop.f32.mrb[94].mxu0  ;;  %v9958_v41 = vpop.f32.mrb[95].mxu1 }
0x1990   : > { %v8343_v46 = vadd.f32 %v9956_v39, %v8302_v44  ;;  %v9959_v47 = vadd.f32 %v9958_v41, %v9957_v38  ;;  %v9980_v54 = vpop.f32.mrb[95].mxu0  ;;  %v9558_v39 = vld [vmem:[%s12961_s18] ss:$0 sm:$0xff] }
0x1991   : > { %v9981_v55 = vadd.f32 %v9980_v54, %v9979_v27 }
0x1992   : > { %v8384_v45 = vadd.f32 %v9978_v25, %v8343_v46  ;;  %v8346_v28 = vadd.f32 %v9959_v47, %v8305_v52 }
0x1994   : > { %v8387_v31 = vadd.f32 %v9981_v55, %v8346_v28 }
0x19ac   : > { %v9998_v51 = vpop.f32.mrb[96].mxu1 }
0x19ad   : > { %v10020_v49 = vpop.f32.mrb[96].mxu0  ;;  %v9999_v5 = vpop.f32.mrb[97].mxu1 }
0x19ae   : > { %v10000_v62 = vadd.f32 %v9999_v5, %v9998_v51  ;;  %v10021_v53 = vpop.f32.mrb[97].mxu0  ;;  %v10001_v7 = vpop.f32.mrb[98].mxu1 }
0x19af   : > { %v10022_v14 = vadd.f32 %v10021_v53, %v10020_v49  ;;  %v10023_v36 = vpop.f32.mrb[98].mxu0  ;;  %v10002_v56 = vpop.f32.mrb[99].mxu1 }
0x19b0   : > { %v8425_v9 = vadd.f32 %v10000_v62, %v8384_v45  ;;  %v10003_v57 = vadd.f32 %v10002_v56, %v10001_v7  ;;  %v10024_v58 = vpop.f32.mrb[99].mxu0 }
0x19b1   : > { %v10025_v26 = vadd.f32 %v10024_v58, %v10023_v36 }
0x19b2   : > { %v8466_v4 = vadd.f32 %v10022_v14, %v8425_v9  ;;  %v8428_v60 = vadd.f32 %v10003_v57, %v8387_v31 }
0x19b4   : > { %v8469_v21 = vadd.f32 %v10025_v26, %v8428_v60  ;;  %v8472_v61 = vadd.f32 %v8466_v4, %v12272_v20 }
0x19b6   : > { %v8474_v63 = vsel %vm675_vm1, %v8472_v61, 0.0  ;;  %v8473_v0 = vadd.f32 %v8469_v21, %v12274_v33  ;;  %v10655_v33 = vld [vmem:[%s12960_s17] sm:$0xff]  }
0x19b7   : > { %8475 = vadd.xlane.f32.xlu0 %v8474_v63  ;;  %10288 = vmatpush3.bf16.msra.mxu1 %v10655_v33 }
0x19b8   : > { %v8477_v2 = vsel %vm675_vm1, %v8473_v0, 0.0  ;;  %10289 = vmatprep.subr.bf16.mxu1 %v10805_v1 }
0x19b9   : > { %8478 = vadd.xlane.f32.xlu1 %v8477_v2 }
0x19bb   : > { %10290 = vmatpush3.bf16.msra.mxu1 %v10656_v29 }
0x19bc   : > { %10291 = vmatprep.subr.bf16.mxu1 %v10805_v1 }
0x19bf   : > { %10292 = vmatpush3.bf16.msra.mxu1 %v10657_v40 }
0x19c0   : > { %10293 = vmatprep.subr.bf16.mxu1 %v10805_v1 }
0x19c3   : > { %10294 = vmatpush3.bf16.msra.mxu1 %v10658_v30 }
0x1a44   : > { %v8476_v3 = vpop.xlane.xlu0 %8475 }
0x1a45   : > { %v8480_v6 = vmul.f32 0.015625, %v8476_v3 }
0x1a46   : > { %v8479_v8 = vpop.xlane.xlu1 %8478 }
0x1a47   : > { %v8482_v10 = vsub.f32 %v8472_v61, %v8480_v6  ;;  %v8481_v15 = vmul.f32 0.015625, %v8479_v8 }
0x1a49   : > { %v8483_v17 = vsub.f32 %v8473_v0, %v8481_v15  ;;  %v8484_v11 = vmul.f32 %v8482_v10, %v8482_v10 }
0x1a4b   : > { %v8486_v19 = vsel %vm675_vm1, %v8484_v11, 0.0  ;;  %v8485_v22 = vmul.f32 %v8483_v17, %v8483_v17 }
0x1a4c   : > { %8487 = vadd.xlane.f32.xlu0 %v8486_v19 }
0x1a4d   : > { %v8489_v20 = vsel %vm675_vm1, %v8485_v22, 0.0 }
0x1a4e   : > { %8490 = vadd.xlane.f32.xlu1 %v8489_v20 }
0x1ad9   : > { %v8488_v32 = vpop.xlane.xlu0 %8487 }
0x1ada   : > { %v8492_v18 = vmul.f32 0.015625, %v8488_v32 }
0x1adb   : > { %v8491_v34 = vpop.xlane.xlu1 %8490 }
0x1adc   : > { %v8494_v35 = vadd.f32 1e-05, %v8492_v18  ;;  %v8493_v13 = vmul.f32 0.015625, %v8491_v34 }
0x1ade   : > { %10735 = vrsqrt.f32 %v8494_v35  ;;  %v8495_v12 = vadd.f32 1e-05, %v8493_v13 }
0x1ae0   : > { %10737 = vrsqrt.f32 %v8495_v12 }
0x1ae8   : > { %v10736_v59 = vpop.eup %10735 }
0x1ae9   : > { %v8498_v42 = vmul.f32 %v10736_v59, %v8482_v10 }
0x1aea   : > { %v10738_v23 = vpop.eup %10737 }
0x1aeb   : > { %v8508_v44 = vmul.f32 %v9555_v16, %v8498_v42  ;;  %v8499_v1 = vmul.f32 %v10738_v23, %v8483_v17 }
0x1aed   : > { %v8509_v52 = vmul.f32 %v9555_v16, %v8499_v1  ;;  %v8518_v43 = vadd.f32 %v9557_v48, %v8508_v44 }
0x1aef   : > { %v8519_v24 = vadd.f32 %v9557_v48, %v8509_v52 }
0x1af1   : > { %v8520_v50 = vpack.c.bf16 %v8519_v24, %v8518_v43 }
0x1af3   : > { %10296 = vmatmul.mubr.msk.bf16.vlgmr.msra.gmra.mrb[100].mxu1 %vm675_vm1, %v8520_v50 }
0x1bc6   : > { %v8597_v37 = vpop.f32.mrb[100].mxu1 }
0x1bc7   : > { %v8598_v38 = vadd.f32 %v9558_v39, %v8597_v37  ;;  %v10297_v25 = vpop.f32.mrb[101].mxu1 }
0x1bc8   : > { %v8600_v27 = vpop.f32.mrb[102].mxu1 }
0x1bc9   : > { %8604 = vst [vmem:[%s623_s0] sm:$0xff] %v8598_v38  ;;  %v8601_v41 = vadd.f32 %v9558_v39, %v8600_v27  ;;  %v10298_v46 = vpop.f32.mrb[103].mxu1 }
0x1bcb   : > { %8605 = vst [vmem:[%s623_s0 + $0x8] sm:$0xff] %v8601_v41 }
0x1bcc   : > { %10754 = shalt.err (!%p10751_p3)
}
0x1bcd   : > { %s10755_s24 = scalar_lea.hbm %s12900_s26, 256  ;;  %s10759_s3 = scalar_lea.hbm %s13003_s25, 512 }
0x1bce   : > { %p10756_p4 = scmp.ne.s32.totalorder %s12900_s26, %s10755_s24  ;;  %p10760_p9 = scmp.lt.u32.totalorder %s12900_s26, %s13003_s25 }
0x1bcf   : > { %p10761_p10 = scmp.lt.u32.totalorder %s10759_s3, %s10755_s24  ;;  %p10763_p12 = scmp.lt.u32.totalorder %s10755_s24, %s12900_s26 }
0x1bd0   : > { %p10757_p7 = pnand %p10756_p4, %p10954_p5 }
0x1bd1   : > { %p10762_p11 = por %p10761_p10, %p10760_p9 }
0x1bd2   : > { %p10758_p8 = pneg %p10757_p7 }
0x1bd3   : > { %p10764_p13 = por %p10763_p12, %p10762_p11 }
0x1bd5   : > { %p10765_p0 = pnand %p10764_p13, %p10758_p8 }
0x1bd7   : > { %10768 = shalt.err (!%p10765_p0)
}
0x1bd8   : > { %s10809_s6 = smov 128   ;;  %s10810_s1 = smov 8  }
0x1bd9   : > { %10323 = dma.vmem_to_hbm [thread:$0]  (%p10954_p5), %s12895_s4, 256, %s12900_s26, %s12902_s29, %s10809_s6, %s10809_s6, %s10810_s1  }
0x1bda PF: > { %s13004_s2 = sld [smem:[#allocation7_spill]]  ;;  %s13005_s0 = sld [smem:[#allocation5_spill]] }
0x1be0   : > { %p10329_p1 = scmp.ge.s32.totalorder %s13004_s2, 2  ;;  %s8635_s20 = sand.u32 1, %s13005_s0  }
0x1be1   : > { %s8636_s24 = scalar_lea.sflag [#allocation3], %s8635_s20 }
0x1be2   : > { %p10326_p2 = pnand %p10329_p1, %p10958_p6 }
0x1be4   : > { %10786 = dma.done.wait (!%p10326_p2), %s8636_s24, 256  }
0x1be5   : > { %10788 = vsyncadd (!%p10326_p2), %s8636_s24, 4294967040  ;;  %s13007_s24 = sld [smem:[#allocation8_spill]]  ;;  %s13008_s3 = sld [smem:[#allocation6_spill]] }
0x1be6   : > { %s13009_s23 = sld [smem:[#allocation9_spill]]  ;;  %s13010_s1 = smov %s10795_s22 }
0x1beb   : > { %p30_p3 = scmp.ge.s32.totalorder %s13007_s24, 4   ;;  %s13011_s22 = smov %s13008_s3 }
0x1bed   :  { %32 = sbr.rel (!%p30_p3) target bundleno = 12 (0xc), region = 151 }
0x1bf4   :  { %8641 = vsyncpa [#allocation3], 1 }
0x1bf5   :  { %8643 = vsyncpa [#allocation3 + $0x1], 1 }

</bundles_post_ra>
